<compile_context>
chip_gen: v7x
topology: tpu7x:2x2x1
jax: 0.10.0
libtpu: 0.0.40
codegen_flags: <defaults>
</compile_context>

<pallas_src>
import functools

import jax
import jax.numpy as jnp
from jax.experimental import pallas as pl
from jax.experimental.pallas import tpu as pltpu

EPS_BN = 1e-5
SIGMA_LB = 1e-8


# --------------------------------------------------------------------------
# generation-aware VMEM / grid policy
# --------------------------------------------------------------------------
def _tpu_budget():
    try:
        cap = int(pltpu.get_tpu_info().vmem_capacity_bytes)
    except Exception:
        cap = 64 << 20                              # conservative (v7x per-TC)
    limit = max(32 << 20, min((cap * 3) // 4, 96 << 20))
    # v7x: ~64 MiB/TC, 2 TCs per chip -> keep >= 2 parallel grid steps.
    # v5e / v6e: 1 TC, 128 MiB -> one big grid step amortizes per-step overhead.
    min_grid = 2 if cap <= (96 << 20) else 1
    return limit, min_grid


_VMEM_LIMIT, _MIN_GRID = _tpu_budget()


def _compiler_params():
    return pltpu.CompilerParams(dimension_semantics=("parallel",),
                                vmem_limit_bytes=_VMEM_LIMIT)


def _pick_tb(n, l, max_chan):
    """Batch rows folded into one grid step.  Largest tb that (a) divides N,
    (b) keeps the lane block a multiple of 128 (or spans the full array),
    (c) keeps >= _MIN_GRID steps when possible (v7x megacore), and (d) fits a
    conservative per-step VMEM budget (double-buffered ins/outs + stacked acts)."""
    per_row = 13 * max_chan * l * 4
    divisors = [d for d in range(n, 0, -1) if n % d == 0]
    aligned = [d for d in divisors if (d * l) % 128 == 0 or d == n] or [n]
    fitting = [d for d in aligned if d * per_row <= _VMEM_LIMIT] or [min(aligned)]
    pref = [d for d in fitting if n // d >= _MIN_GRID]
    return max(pref or fitting)


# --------------------------------------------------------------------------
# layout / packing helpers
# --------------------------------------------------------------------------
def _pack_w(w):
    """(ntaps, Cout, Cin) -> (Cout, ntaps*Cin); columns grouped by tap then cin."""
    ntaps, cout, cin = w.shape
    return jnp.transpose(w, (1, 0, 2)).reshape(cout, ntaps * cin)


def _to_cm(x):                                      # (N, C, L) -> (C, N*L)
    n, c, l = x.shape
    return jnp.transpose(x, (1, 0, 2)).reshape(c, n * l)


def _from_cm(x, n, l):                              # (C, N*L) -> (N, C, L)
    c = x.shape[0]
    return jnp.transpose(x.reshape(c, n, l), (1, 0, 2))


# --------------------------------------------------------------------------
# in-kernel helpers: sequence-boundary masks and tap shifts (conv k=3, pad=1)
# --------------------------------------------------------------------------
def _seq_masks(tbl, l):
    """Lane masks that are True where a left / right neighbour exists inside the
    same sequence (batch rows are laid out back-to-back along the lane axis)."""
    idx = jax.lax.broadcasted_iota(jnp.int32, (1, tbl), 1)
    pos = (idx & (l - 1)) if (l & (l - 1)) == 0 else (idx % l)
    return pos != 0, pos != (l - 1)


def _shift_taps(x, ntaps, mask_l, mask_r):
    """x: (Cin, TBL).  Active taps of a width-3 padding=1 conv:
    tap0 -> x[l-1], tap1 -> x[l], tap2 -> x[l+1]
    (mask 'A' keeps tap0, 'B' keeps taps 0..1, unmasked keeps 0..2)."""
    zero = jnp.zeros_like(x[:, :1])
    out = [jnp.where(mask_l, jnp.concatenate([zero, x[:, :-1]], axis=1), 0.0)]
    if ntaps >= 2:
        out.append(x)
    if ntaps >= 3:
        out.append(jnp.where(mask_r, jnp.concatenate([x[:, 1:], zero], axis=1), 0.0))
    return out


# --------------------------------------------------------------------------
# generic fused masked-conv kernel ('stats' and 'affine' epilogues)
# --------------------------------------------------------------------------
def _conv_kernel(*refs, terms, L, epilogue):
    """terms: tuple of (ntaps, has_prologue).
    refs: [x_1, (pro_1)?, x_2, (pro_2)?, ..., W, (x0)?] + outputs."""
    tbl = refs[0].shape[-1]
    mask_l, mask_r = _seq_masks(tbl, L)

    idx = 0
    pieces = []
    for (ntaps, has_pro) in terms:
        x = refs[idx][...]
        idx += 1
        if has_pro:                                  # producer BN affine + PReLU
            p = refs[idx][...]                       # (Cin, 3): scale, shift, alpha
            idx += 1
            z = x * p[:, 0:1] + p[:, 1:2]
            x = jnp.where(z >= 0.0, z, p[:, 2:3] * z)
        pieces += _shift_taps(x, ntaps, mask_l, mask_r)
    stacked = pieces[0] if len(pieces) == 1 else jnp.concatenate(pieces, axis=0)

    w_ref = refs[idx]
    idx += 1
    k = w_ref.shape[-1]
    if k <= 4:                                       # tiny contraction -> VPU
        w = w_ref[...].astype(jnp.float32)
        acc = w[:, 0:1] * stacked[0:1, :]
        for j in range(1, k):
            acc = acc + w[:, j:j + 1] * stacked[j:j + 1, :]
    else:                                            # one bf16 MXU matmul, f32 acc
        acc = jnp.dot(w_ref[...], stacked.astype(jnp.bfloat16),
                      preferred_element_type=jnp.float32)

    if epilogue == 'stats':
        o_ref, st_ref = refs[idx], refs[idx + 1]
        o_ref[...] = acc                             # raw pre-BN conv output
        s = jnp.sum(acc, axis=-1, keepdims=True)     # (Cout, 1) per-step sum
        d = acc - s * (1.0 / tbl)
        m2 = jnp.sum(d * d, axis=-1, keepdims=True)  # centered sum of squares
        st_ref[0] = jnp.concatenate([s, m2], axis=-1)
    else:  # 'affine': channel 0 = mu, channel 1 = sigma
        x0_ref, y_ref, nls_ref = refs[idx], refs[idx + 1], refs[idx + 2]
        sigma = jnp.maximum(acc[1:2, :], SIGMA_LB)   # LowerBound forward
        y_ref[...] = acc[0:1, :] + sigma * x0_ref[...]
        nls_ref[...] = -jnp.log(sigma)


def _fused_conv(term_list, *, epilogue, N, L, tb, x0=None):
    """term_list: [(x_cm (Cin, N*L) f32, w (ntaps, Cout, Cin), pro or None)];
    pro = (scale, shift, alpha) each (Cin,).  All terms / taps share one packed
    (Cout, K) weight and one stacked activation -> a single matmul per grid step."""
    cout = term_list[0][1].shape[1]
    grid = N // tb
    inputs, in_specs, meta, w_cols = [], [], [], []
    for (x, w, pro) in term_list:
        cin = x.shape[0]
        inputs.append(x)
        in_specs.append(pl.BlockSpec((cin, tb * L), lambda n: (0, n)))
        if pro is not None:
            inputs.append(jnp.stack([jnp.asarray(v, jnp.float32).reshape(cin)
                                     for v in pro], axis=1))          # (Cin, 3)
            in_specs.append(pl.BlockSpec((cin, 3), lambda n: (0, 0)))
        w_cols.append(_pack_w(jnp.asarray(w, jnp.float32)))
        meta.append((w.shape[0], pro is not None))

    w_big = w_cols[0] if len(w_cols) == 1 else jnp.concatenate(w_cols, axis=1)
    k = w_big.shape[1]
    if k > 4:
        w_big = w_big.astype(jnp.bfloat16)           # MXU operands in bf16
    inputs.append(w_big)
    in_specs.append(pl.BlockSpec((cout, k), lambda n: (0, 0)))

    if epilogue == 'stats':
        out_shape = (jax.ShapeDtypeStruct((cout, N * L), jnp.float32),
                     jax.ShapeDtypeStruct((grid, cout, 2), jnp.float32))
        out_specs = (pl.BlockSpec((cout, tb * L), lambda n: (0, n)),
                     pl.BlockSpec((1, cout, 2), lambda n: (n, 0, 0)))
    else:  # 'affine'
        inputs.append(x0)
        in_specs.append(pl.BlockSpec((1, tb * L), lambda n: (0, n)))
        out_shape = (jax.ShapeDtypeStruct((1, N * L), jnp.float32),
                     jax.ShapeDtypeStruct((1, N * L), jnp.float32))
        out_specs = (pl.BlockSpec((1, tb * L), lambda n: (0, n)),
                     pl.BlockSpec((1, tb * L), lambda n: (0, n)))

    kernel = functools.partial(_conv_kernel, terms=tuple(meta), L=L, epilogue=epilogue)
    return pl.pallas_call(kernel, out_shape=out_shape, grid=(grid,),
                          in_specs=in_specs, out_specs=out_specs,
                          compiler_params=_compiler_params())(*inputs)


# --------------------------------------------------------------------------
# fused ResNetBlockUnMasked: both convs + skip + biases + PReLUs in one call
# --------------------------------------------------------------------------
def _unmasked_block_kernel(x_ref, w1_ref, w2_ref, par_ref, o_ref, *, L):
    x = x_ref[...]                                   # (I, TBL) f32
    tbl = x.shape[-1]
    mask_l, mask_r = _seq_masks(tbl, L)
    par = par_ref[...]                               # (O, 4): b1, a1, b2, a2
    b1, a1, b2, a2 = par[:, 0:1], par[:, 1:2], par[:, 2:3], par[:, 3:4]

    xs = jnp.concatenate(_shift_taps(x, 3, mask_l, mask_r), axis=0)     # (3I, TBL)
    h = jnp.dot(w1_ref[...], xs.astype(jnp.bfloat16),
                preferred_element_type=jnp.float32) + b1
    h = jnp.where(h >= 0.0, h, a1 * h)               # h1 stays in VMEM/vregs

    hs = jnp.concatenate(_shift_taps(h, 3, mask_l, mask_r) + [xs], axis=0)
    y = jnp.dot(w2_ref[...], hs.astype(jnp.bfloat16),
                preferred_element_type=jnp.float32) + b2
    o_ref[...] = jnp.where(y >= 0.0, y, a2 * y)


def _unmasked_block(p, x_cm, *, N, L, tb):
    i_ch = x_cm.shape[0]
    o_ch = p['conv1']['w'].shape[1]
    w1 = _pack_w(p['conv1']['w']).astype(jnp.bfloat16)                   # (O, 3I)
    w2 = jnp.concatenate([_pack_w(p['conv2']['w']),
                          _pack_w(p['conv_skip']['w'])],
                         axis=1).astype(jnp.bfloat16)                    # (O, 3O+3I)
    par = jnp.stack([p['conv1']['b'], p['alpha1'],
                     p['conv2']['b'], p['alpha2']], axis=1).astype(jnp.float32)
    grid = N // tb
    return pl.pallas_call(
        functools.partial(_unmasked_block_kernel, L=L),
        out_shape=jax.ShapeDtypeStruct((o_ch, N * L), jnp.float32),
        grid=(grid,),
        in_specs=[pl.BlockSpec((i_ch, tb * L), lambda n: (0, n)),
                  pl.BlockSpec((o_ch, 3 * i_ch), lambda n: (0, 0)),
                  pl.BlockSpec((o_ch, 3 * (o_ch + i_ch)), lambda n: (0, 0)),
                  pl.BlockSpec((o_ch, 4), lambda n: (0, 0))],
        out_specs=pl.BlockSpec((o_ch, tb * L), lambda n: (0, n)),
        compiler_params=_compiler_params(),
    )(x_cm, w1, w2, par)


# --------------------------------------------------------------------------
# BatchNorm (training batch stats) from per-step centered partials (tiny, in JAX)
# --------------------------------------------------------------------------
def _bn_scale_shift(stats, gamma, beta, n_step, count):
    """stats: (G, C, 2) = per-grid-step (sum, centered SS); parallel-variance merge."""
    s_g, m2_g = stats[..., 0], stats[..., 1]         # (G, C)
    mean_g = s_g / n_step
    mean = jnp.sum(s_g, axis=0) / count              # (C,)
    m2 = jnp.sum(m2_g, axis=0) + n_step * jnp.sum((mean_g - mean[None, :]) ** 2, axis=0)
    var = m2 / count                                 # biased (training-mode BN)
    scale = gamma * jax.lax.rsqrt(var + EPS_BN)
    shift = beta - mean * scale
    return scale, shift


# --------------------------------------------------------------------------
# AffineLayer forward
# --------------------------------------------------------------------------
def affine_layer_apply(params, x_ncl, cond_inputs):
    """x_ncl: (N, 1, L); cond_inputs: tuple of (N, Ci, L) (unpack path) or (N, C, L)."""
    if isinstance(cond_inputs, (tuple, list)):
        cond = jnp.concatenate(list(cond_inputs), axis=1)
    else:
        cond = cond_inputs
    x_ncl = x_ncl.astype(jnp.float32)
    cond = cond.astype(jnp.float32)
    N, _, L = x_ncl.shape
    C = cond.shape[1]
    H = params['first_block']['conv1']['w'].shape[1]
    count = float(N * L)

    x = _to_cm(x_ncl)                                # (1, N*L)
    c = _to_cm(cond)                                 # (C, N*L)
    tb = _pick_tb(N, L, 2 * H + C + 2)
    n_step = float(tb * L)

    # feature_net: two fused unmasked ResNet blocks (C -> H -> C)
    feat = _unmasked_block(params['fnet1'], c, N=N, L=L, tb=tb)
    feat = _unmasked_block(params['fnet2'], feat, N=N, L=L, tb=tb)

    # first_block: masked ResNet block (1 -> H), mask 'A', training-mode BatchNorm
    fp = params['first_block']
    z1, st1 = _fused_conv([(x, fp['conv1']['w'], None)],
                          epilogue='stats', N=N, L=L, tb=tb)
    sc1, sh1 = _bn_scale_shift(st1, fp['bn1_g'], fp['bn1_b'], n_step, count)
    z2, st2 = _fused_conv([(z1, fp['conv2']['w'], (sc1, sh1, fp['alpha1'])),
                           (x, fp['conv_skip']['w'], None)],
                          epilogue='stats', N=N, L=L, tb=tb)
    sc2, sh2 = _bn_scale_shift(st2, fp['bn2_g'], fp['bn2_b'], n_step, count)
    fb_pro = (sc2, sh2, fp['alpha2'])                # BN2 + PReLU fused downstream

    # second_block[0]: masked ResNet on cat([first_block, feat]) without
    # materializing the concat: weights split along Cin, multiple terms per conv.
    sp = params['sb_block']
    w1_fb, w1_ft = sp['conv1']['w'][:, :, :H], sp['conv1']['w'][:, :, H:]
    wsk_fb, wsk_ft = sp['conv_skip']['w'][:, :, :H], sp['conv_skip']['w'][:, :, H:]
    zs1, ss1 = _fused_conv([(z2, w1_fb, fb_pro), (feat, w1_ft, None)],
                           epilogue='stats', N=N, L=L, tb=tb)
    scs1, shs1 = _bn_scale_shift(ss1, sp['bn1_g'], sp['bn1_b'], n_step, count)
    zs2, ss2 = _fused_conv([(zs1, sp['conv2']['w'], (scs1, shs1, sp['alpha1'])),
                            (z2, wsk_fb, fb_pro),
                            (feat, wsk_ft, None)],
                           epilogue='stats', N=N, L=L, tb=tb)
    scs2, shs2 = _bn_scale_shift(ss2, sp['bn2_g'], sp['bn2_b'], n_step, count)

    # second_block[1]: MaskedConv1d('B', H, 2) fused with LowerBound + affine output
    y_cm, nls_cm = _fused_conv(
        [(zs2, params['sb_final']['w'], (scs2, shs2, sp['alpha2']))],
        epilogue='affine', N=N, L=L, tb=tb, x0=x)
    return _from_cm(y_cm, N, L), _from_cm(nls_cm, N, L)


# --------------------------------------------------------------------------
# deterministic parameter initialization (shapes follow the PyTorch module)
# --------------------------------------------------------------------------
def _init_conv(keys, cin, cout, mask=None, bias=True):
    # PyTorch Conv1d weight layout (Cout, Cin, kW=3); only ACTIVE taps are kept:
    # mask 'A' -> tap 0 ; mask 'B' -> taps 0,1 ; unmasked -> taps 0,1,2.
    w = jax.random.normal(next(keys), (cout, cin, 3), jnp.float32) / jnp.sqrt(3.0 * cin)
    ntaps = {'A': 1, 'B': 2, None: 3}[mask]
    p = {'w': jnp.transpose(w[:, :, :ntaps], (2, 0, 1))}       # (ntaps, Cout, Cin)
    p['b'] = (jax.random.normal(next(keys), (cout,), jnp.float32) * 0.05
              if bias else None)
    return p


def _init_unmasked_block(keys, cin, cout):
    return {
        'conv1': _init_conv(keys, cin, cout, bias=True),
        'conv2': _init_conv(keys, cout, cout, bias=True),
        'conv_skip': _init_conv(keys, cin, cout, bias=False),
        'alpha1': jnp.full((cout,), 0.2, jnp.float32),
        'alpha2': jnp.full((cout,), 0.2, jnp.float32),
    }


def _init_masked_block(keys, cin, cout, first):
    m = 'A' if first else 'B'
    return {
        'conv1': _init_conv(keys, cin, cout, mask=m, bias=False),
        'conv2': _init_conv(keys, cout, cout, mask='B', bias=False),
        'conv_skip': _init_conv(keys, cin, cout, mask=m, bias=False),
        'alpha1': jnp.full((cout,), 0.2, jnp.float32),
        'alpha2': jnp.full((cout,), 0.2, jnp.float32),
        'bn1_g': jnp.ones((cout,), jnp.float32), 'bn1_b': jnp.zeros((cout,), jnp.float32),
        'bn2_g': jnp.ones((cout,), jnp.float32), 'bn2_b': jnp.zeros((cout,), jnp.float32),
    }


def init_affine_layer(key, cond_inputs, h_cha):
    keys = iter(jax.random.split(key, 64))
    return {
        'fnet1': _init_unmasked_block(keys, cond_inputs, h_cha),
        'fnet2': _init_unmasked_block(keys, h_cha, cond_inputs),
        'first_block': _init_masked_block(keys, 1, h_cha, first=True),
        'sb_block': _init_masked_block(keys, h_cha + cond_inputs, h_cha, first=False),
        'sb_final': _init_conv(keys, h_cha, 2, mask='B', bias=False),
    }


# --------------------------------------------------------------------------
# pure-JAX reference (independent path via lax.conv) for the correctness check
# --------------------------------------------------------------------------
def _ref_conv1d(x, w_taps, b=None):
    ntaps, cout, cin = w_taps.shape
    w_full = jnp.zeros((cout, cin, 3), jnp.float32)
    w_full = w_full.at[:, :, :ntaps].set(jnp.transpose(w_taps, (1, 2, 0)))
    out = jax.lax.conv_general_dilated(
        x, w_full, window_strides=(1,), padding=[(1, 1)],
        dimension_numbers=('NCH', 'OIH', 'NCH'),
        precision=jax.lax.Precision.HIGHEST)
    if b is not None:
        out = out + b.reshape(1, -1, 1)
    return out


def _ref_prelu(x, a):
    return jnp.where(x >= 0, x, a.reshape(1, -1, 1) * x)


def _ref_bn(x, g, b):
    mean = jnp.mean(x, axis=(0, 2), keepdims=True)
    var = jnp.mean(jnp.square(x - mean), axis=(0, 2), keepdims=True)
    return (x - mean) * jax.lax.rsqrt(var + EPS_BN) * g.reshape(1, -1, 1) + b.reshape(1, -1, 1)


def _ref_unmasked(p, x):
    h = _ref_prelu(_ref_conv1d(x, p['conv1']['w'], p['conv1']['b']), p['alpha1'])
    return _ref_prelu(_ref_conv1d(h, p['conv2']['w'], p['conv2']['b'])
                      + _ref_conv1d(x, p['conv_skip']['w']), p['alpha2'])


def _ref_masked(p, x):
    h = _ref_prelu(_ref_bn(_ref_conv1d(x, p['conv1']['w']), p['bn1_g'], p['bn1_b']),
                   p['alpha1'])
    return _ref_prelu(_ref_bn(_ref_conv1d(h, p['conv2']['w'])
                              + _ref_conv1d(x, p['conv_skip']['w']),
                              p['bn2_g'], p['bn2_b']), p['alpha2'])


def _ref_apply(params, x, cond_tuple):
    cond = jnp.concatenate(list(cond_tuple), axis=1).astype(jnp.float32)
    x = x.astype(jnp.float32)
    feat = _ref_unmasked(params['fnet2'], _ref_unmasked(params['fnet1'], cond))
    fb = _ref_masked(params['first_block'], x)
    fv = jnp.concatenate([fb, feat], axis=1)
    sb = _ref_masked(params['sb_block'], fv)
    out = _ref_conv1d(sb, params['sb_final']['w'])
    mu, sg = out[:, 0:1, :], out[:, 1:2, :]
    sg = jnp.maximum(sg, SIGMA_LB)
    return mu + sg * x, -jnp.log(sg)


# --------------------------------------------------------------------------
if __name__ == "__main__":
    N, L, C, H = 4, 128, 3, 32          # batch, seq len, COND_INPUTS, h_cha (small)
    key = jax.random.PRNGKey(0)
    kp, kx, kc = jax.random.split(key, 3)

    params = init_affine_layer(kp, C, H)
    x = jax.random.normal(kx, (N, 1, L), jnp.float32)
    # unpack=True path (COND_INPUTS > 1): tuple of per-feature (N, 1, L) tensors
    cond = tuple(jax.random.normal(jax.random.fold_in(kc, i), (N, 1, L), jnp.float32)
                 for i in range(C))

    y, neg_log_sigma = jax.jit(affine_layer_apply)(params, x, cond)
    jax.block_until_ready((y, neg_log_sigma))

    assert y.shape == (N, 1, L) and neg_log_sigma.shape == (N, 1, L)
    assert bool(jnp.all(jnp.isfinite(y))) and bool(jnp.all(jnp.isfinite(neg_log_sigma)))

    # correctness check against an independent pure-JAX/XLA reference
    y_ref, nls_ref = _ref_apply(params, x, cond)
    sig_k, sig_r = jnp.exp(-neg_log_sigma), jnp.exp(-nls_ref)
    err_y = float(jnp.max(jnp.abs(y - y_ref)))
    err_s = float(jnp.max(jnp.abs(sig_k - sig_r)))
    # bf16 MXU operands (f32 accumulation / epilogues) across ~7 fused convs.
    tol_y = 6e-2 * (1.0 + float(jnp.max(jnp.abs(y_ref))))
    tol_s = 6e-2 * (1.0 + float(jnp.max(jnp.abs(sig_r))))
    assert err_y <= tol_y, f"y mismatch vs reference: {err_y} > {tol_y}"
    assert err_s <= tol_s, f"sigma mismatch vs reference: {err_s} > {tol_s}"

    print("KERNEL_OK")
</pallas_src>

<mosaic_0001>
module attributes {stable_mosaic.version = 11 : i64} {
  func.func @_conv_kernel(%arg0: i32, %arg1: memref<1x256xf32, #tpu.memory_space<vmem>>, %arg2: memref<32x1xf32, #tpu.memory_space<vmem>>, %arg3: memref<32x256xf32, #tpu.memory_space<vmem>>, %arg4: memref<1x32x2xf32, #tpu.memory_space<vmem>>) attributes {dimension_semantics = [#tpu.dimension_semantics<parallel>], iteration_bounds = array<i64: 2>, scalar_prefetch = 0 : i64, scratch_operands = 0 : i64, tpu.core_type = #tpu.core_type<tc>, window_params = [{transform_indices = @transform_0, window_bounds = array<i64: 1, 256>}, {pipeline_mode = #tpu.pipeline_mode<synchronous>, transform_indices = @transform_1, window_bounds = array<i64: 32, 1>}, {transform_indices = @transform_2, window_bounds = array<i64: 32, 256>}, {transform_indices = @transform_3, window_bounds = array<i64: 1, 32, 2>}]} {
    %0 = tpu.iota {dimensions = array<i32: 1>} : vector<1x256xi32>
    %c127_i32 = arith.constant 127 : i32
    %1 = vector.broadcast %c127_i32 : i32 to vector<1x256xi32>
    %2 = arith.andi %0, %1 : vector<1x256xi32>
    %c0_i32 = arith.constant 0 : i32
    %3 = vector.broadcast %c0_i32 : i32 to vector<1x256xi32>
    %4 = arith.cmpi ne, %2, %3 : vector<1x256xi32>
    %c0 = arith.constant 0 : index
    %c0_0 = arith.constant 0 : index
    %5 = vector.load %arg1[%c0, %c0_0] : memref<1x256xf32, #tpu.memory_space<vmem>>, vector<1x256xf32>
    %cst = arith.constant 0.000000e+00 : f32
    %6 = vector.broadcast %cst : f32 to vector<1x1xf32>
    %7 = vector.extract_strided_slice %5 {offsets = [0, 0], sizes = [1, 255], strides = [1, 1]} : vector<1x256xf32> to vector<1x255xf32>
    %8 = tpu.concatenate %6, %7 in 1 : vector<1x1xf32>, vector<1x255xf32> -> vector<1x256xf32>
    %cst_1 = arith.constant 0.000000e+00 : f32
    %9 = vector.broadcast %cst_1 : f32 to vector<1x256xf32>
    %10 = arith.select %4, %8, %9 : vector<1x256xi1>, vector<1x256xf32>
    %c0_2 = arith.constant 0 : index
    %c0_3 = arith.constant 0 : index
    %11 = vector.load %arg2[%c0_2, %c0_3] : memref<32x1xf32, #tpu.memory_space<vmem>>, vector<32x1xf32>
    %12 = vector.broadcast %11 : vector<32x1xf32> to vector<32x256xf32>
    %13 = vector.broadcast %10 : vector<1x256xf32> to vector<32x256xf32>
    %14 = arith.mulf %12, %13 : vector<32x256xf32>
    %c0_4 = arith.constant 0 : index
    %c0_5 = arith.constant 0 : index
    %15 = vector.load %arg3[%c0_4, %c0_5] : memref<32x256xf32, #tpu.memory_space<vmem>>, vector<32x256xf32>
    tpu.vector_store %arg3[%c0_4, %c0_5], %14 {strides = array<i32>} : memref<32x256xf32, #tpu.memory_space<vmem>>, vector<32x256xf32>,
    %cst_6 = arith.constant dense<0.000000e+00> : vector<32xf32>
    %16 = vector.multi_reduction <add>, %14, %cst_6 [1] : vector<32x256xf32> to vector<32xf32>
    %17 = vector.shape_cast %16 : vector<32xf32> to vector<32x1xf32>
    %cst_7 = arith.constant 3.906250e-03 : f32
    %18 = vector.broadcast %cst_7 : f32 to vector<32x1xf32>
    %19 = arith.mulf %17, %18 : vector<32x1xf32>
    %20 = vector.broadcast %19 : vector<32x1xf32> to vector<32x256xf32>
    %21 = arith.subf %14, %20 : vector<32x256xf32>
    %22 = arith.mulf %21, %21 : vector<32x256xf32>
    %cst_8 = arith.constant dense<0.000000e+00> : vector<32xf32>
    %23 = vector.multi_reduction <add>, %22, %cst_8 [1] : vector<32x256xf32> to vector<32xf32>
    %24 = vector.shape_cast %23 : vector<32xf32> to vector<32x1xf32>
    %25 = tpu.concatenate %17, %24 in 1 : vector<32x1xf32>, vector<32x1xf32> -> vector<32x2xf32>
    %c0_9 = arith.constant 0 : index
    %c0_10 = arith.constant 0 : index
    %c0_11 = arith.constant 0 : index
    %26 = vector.load %arg4[%c0_9, %c0_10, %c0_11] : memref<1x32x2xf32, #tpu.memory_space<vmem>>, vector<1x32x2xf32>
    %27 = vector.shape_cast %26 : vector<1x32x2xf32> to vector<32x2xf32>
    %28 = vector.shape_cast %25 : vector<32x2xf32> to vector<1x32x2xf32>
    tpu.vector_store %arg4[%c0_9, %c0_10, %c0_11], %28 {strides = array<i32>} : memref<1x32x2xf32, #tpu.memory_space<vmem>>, vector<1x32x2xf32>,
    return
  }
  func.func @transform_0(%arg0: i32) -> (i32, i32) {
    %c0_i32 = arith.constant 0 : i32
    %c0_i32_0 = arith.constant 0 : i32
    return %c0_i32, %arg0 : i32, i32
  }
  func.func @transform_1(%arg0: i32) -> (i32, i32) {
    %c0_i32 = arith.constant 0 : i32
    %c0_i32_0 = arith.constant 0 : i32
    %c0_i32_1 = arith.constant 0 : i32
    return %c0_i32, %c0_i32_0 : i32, i32
  }
  func.func @transform_2(%arg0: i32) -> (i32, i32) {
    %c0_i32 = arith.constant 0 : i32
    %c0_i32_0 = arith.constant 0 : i32
    return %c0_i32, %arg0 : i32, i32
  }
  func.func @transform_3(%arg0: i32) -> (i32, i32, i32) {
    %c0_i32 = arith.constant 0 : i32
    %c0_i32_0 = arith.constant 0 : i32
    %c0_i32_1 = arith.constant 0 : i32
    return %arg0, %c0_i32, %c0_i32_0 : i32, i32, i32
  }
}

module attributes {stable_mosaic.version = 11 : i64} {
  func.func @_conv_kernel(%arg0: i32, %arg1: memref<32x256xf32, #tpu.memory_space<vmem>>, %arg2: memref<32x3xf32, #tpu.memory_space<vmem>>, %arg3: memref<1x256xf32, #tpu.memory_space<vmem>>, %arg4: memref<32x65xbf16, #tpu.memory_space<vmem>>, %arg5: memref<32x256xf32, #tpu.memory_space<vmem>>, %arg6: memref<1x32x2xf32, #tpu.memory_space<vmem>>) attributes {dimension_semantics = [#tpu.dimension_semantics<parallel>], iteration_bounds = array<i64: 2>, scalar_prefetch = 0 : i64, scratch_operands = 0 : i64, tpu.core_type = #tpu.core_type<tc>, window_params = [{transform_indices = @transform_0, window_bounds = array<i64: 32, 256>}, {pipeline_mode = #tpu.pipeline_mode<synchronous>, transform_indices = @transform_1, window_bounds = array<i64: 32, 3>}, {transform_indices = @transform_2, window_bounds = array<i64: 1, 256>}, {pipeline_mode = #tpu.pipeline_mode<synchronous>, transform_indices = @transform_3, window_bounds = array<i64: 32, 65>}, {transform_indices = @transform_4, window_bounds = array<i64: 32, 256>}, {transform_indices = @transform_5, window_bounds = array<i64: 1, 32, 2>}]} {
    %0 = tpu.iota {dimensions = array<i32: 1>} : vector<1x256xi32>
    %c127_i32 = arith.constant 127 : i32
    %1 = vector.broadcast %c127_i32 : i32 to vector<1x256xi32>
    %2 = arith.andi %0, %1 : vector<1x256xi32>
    %c0_i32 = arith.constant 0 : i32
    %3 = vector.broadcast %c0_i32 : i32 to vector<1x256xi32>
    %4 = arith.cmpi ne, %2, %3 : vector<1x256xi32>
    %c0 = arith.constant 0 : index
    %c0_0 = arith.constant 0 : index
    %5 = vector.load %arg1[%c0, %c0_0] : memref<32x256xf32, #tpu.memory_space<vmem>>, vector<32x256xf32>
    %c0_1 = arith.constant 0 : index
    %c0_2 = arith.constant 0 : index
    %6 = vector.load %arg2[%c0_1, %c0_2] : memref<32x3xf32, #tpu.memory_space<vmem>>, vector<32x3xf32>
    %7 = vector.extract_strided_slice %6 {offsets = [0, 0], sizes = [32, 1], strides = [1, 1]} : vector<32x3xf32> to vector<32x1xf32>
    %8 = vector.broadcast %7 : vector<32x1xf32> to vector<32x256xf32>
    %9 = arith.mulf %5, %8 : vector<32x256xf32>
    %10 = vector.extract_strided_slice %6 {offsets = [0, 1], sizes = [32, 1], strides = [1, 1]} : vector<32x3xf32> to vector<32x1xf32>
    %11 = vector.broadcast %10 : vector<32x1xf32> to vector<32x256xf32>
    %12 = arith.addf %9, %11 : vector<32x256xf32>
    %cst = arith.constant 0.000000e+00 : f32
    %13 = vector.broadcast %cst : f32 to vector<32x256xf32>
    %14 = arith.cmpf oge, %12, %13 : vector<32x256xf32>
    %15 = vector.extract_strided_slice %6 {offsets = [0, 2], sizes = [32, 1], strides = [1, 1]} : vector<32x3xf32> to vector<32x1xf32>
    %16 = vector.broadcast %15 : vector<32x1xf32> to vector<32x256xf32>
    %17 = arith.mulf %16, %12 : vector<32x256xf32>
    %18 = arith.select %14, %12, %17 : vector<32x256xi1>, vector<32x256xf32>
    %cst_3 = arith.constant 0.000000e+00 : f32
    %19 = vector.broadcast %cst_3 : f32 to vector<32x1xf32>
    %20 = vector.extract_strided_slice %18 {offsets = [0, 0], sizes = [32, 255], strides = [1, 1]} : vector<32x256xf32> to vector<32x255xf32>
    %21 = tpu.concatenate %19, %20 in 1 : vector<32x1xf32>, vector<32x255xf32> -> vector<32x256xf32>
    %cst_4 = arith.constant 0.000000e+00 : f32
    %22 = vector.shape_cast %4 : vector<1x256xi1> to vector<1x256xi1>
    %23 = vector.broadcast %22 : vector<1x256xi1> to vector<32x256xi1>
    %24 = vector.broadcast %cst_4 : f32 to vector<32x256xf32>
    %25 = arith.select %23, %21, %24 : vector<32x256xi1>, vector<32x256xf32>
    %c0_5 = arith.constant 0 : index
    %c0_6 = arith.constant 0 : index
    %26 = vector.load %arg3[%c0_5, %c0_6] : memref<1x256xf32, #tpu.memory_space<vmem>>, vector<1x256xf32>
    %cst_7 = arith.constant 0.000000e+00 : f32
    %27 = vector.broadcast %cst_7 : f32 to vector<1x1xf32>
    %28 = vector.extract_strided_slice %26 {offsets = [0, 0], sizes = [1, 255], strides = [1, 1]} : vector<1x256xf32> to vector<1x255xf32>
    %29 = tpu.concatenate %27, %28 in 1 : vector<1x1xf32>, vector<1x255xf32> -> vector<1x256xf32>
    %cst_8 = arith.constant 0.000000e+00 : f32
    %30 = vector.broadcast %cst_8 : f32 to vector<1x256xf32>
    %31 = arith.select %4, %29, %30 : vector<1x256xi1>, vector<1x256xf32>
    %32 = tpu.concatenate %25, %18, %31 in 0 : vector<32x256xf32>, vector<32x256xf32>, vector<1x256xf32> -> vector<65x256xf32>
    %c0_9 = arith.constant 0 : index
    %c0_10 = arith.constant 0 : index
    %33 = vector.load %arg4[%c0_9, %c0_10] : memref<32x65xbf16, #tpu.memory_space<vmem>>, vector<32x65xbf16>
    %34 = arith.truncf %32 : vector<65x256xf32> to vector<65x256xbf16>
    %cst_11 = arith.constant dense<0.000000e+00> : vector<32x256xf32>
    %35 = tpu.matmul %33, %34, %cst_11 {dimension_numbers = #tpu.dot_dimension_numbers<[1], [0], [0], [1], [0, 0, 1, 1], [], []>} : vector<32x65xbf16>, vector<65x256xbf16>, vector<32x256xf32> -> vector<32x256xf32>
    %c0_12 = arith.constant 0 : index
    %c0_13 = arith.constant 0 : index
    %36 = vector.load %arg5[%c0_12, %c0_13] : memref<32x256xf32, #tpu.memory_space<vmem>>, vector<32x256xf32>
    tpu.vector_store %arg5[%c0_12, %c0_13], %35 {strides = array<i32>} : memref<32x256xf32, #tpu.memory_space<vmem>>, vector<32x256xf32>,
    %cst_14 = arith.constant dense<0.000000e+00> : vector<32xf32>
    %37 = vector.multi_reduction <add>, %35, %cst_14 [1] : vector<32x256xf32> to vector<32xf32>
    %38 = vector.shape_cast %37 : vector<32xf32> to vector<32x1xf32>
    %cst_15 = arith.constant 3.906250e-03 : f32
    %39 = vector.broadcast %cst_15 : f32 to vector<32x1xf32>
    %40 = arith.mulf %38, %39 : vector<32x1xf32>
    %41 = vector.broadcast %40 : vector<32x1xf32> to vector<32x256xf32>
    %42 = arith.subf %35, %41 : vector<32x256xf32>
    %43 = arith.mulf %42, %42 : vector<32x256xf32>
    %cst_16 = arith.constant dense<0.000000e+00> : vector<32xf32>
    %44 = vector.multi_reduction <add>, %43, %cst_16 [1] : vector<32x256xf32> to vector<32xf32>
    %45 = vector.shape_cast %44 : vector<32xf32> to vector<32x1xf32>
    %46 = tpu.concatenate %38, %45 in 1 : vector<32x1xf32>, vector<32x1xf32> -> vector<32x2xf32>
    %c0_17 = arith.constant 0 : index
    %c0_18 = arith.constant 0 : index
    %c0_19 = arith.constant 0 : index
    %47 = vector.load %arg6[%c0_17, %c0_18, %c0_19] : memref<1x32x2xf32, #tpu.memory_space<vmem>>, vector<1x32x2xf32>
    %48 = vector.shape_cast %47 : vector<1x32x2xf32> to vector<32x2xf32>
    %49 = vector.shape_cast %46 : vector<32x2xf32> to vector<1x32x2xf32>
    tpu.vector_store %arg6[%c0_17, %c0_18, %c0_19], %49 {strides = array<i32>} : memref<1x32x2xf32, #tpu.memory_space<vmem>>, vector<1x32x2xf32>,
    return
  }
  func.func @transform_0(%arg0: i32) -> (i32, i32) {
    %c0_i32 = arith.constant 0 : i32
    %c0_i32_0 = arith.constant 0 : i32
    return %c0_i32, %arg0 : i32, i32
  }
  func.func @transform_1(%arg0: i32) -> (i32, i32) {
    %c0_i32 = arith.constant 0 : i32
    %c0_i32_0 = arith.constant 0 : i32
    %c0_i32_1 = arith.constant 0 : i32
    return %c0_i32, %c0_i32_0 : i32, i32
  }
  func.func @transform_2(%arg0: i32) -> (i32, i32) {
    %c0_i32 = arith.constant 0 : i32
    %c0_i32_0 = arith.constant 0 : i32
    return %c0_i32, %arg0 : i32, i32
  }
  func.func @transform_3(%arg0: i32) -> (i32, i32) {
    %c0_i32 = arith.constant 0 : i32
    %c0_i32_0 = arith.constant 0 : i32
    %c0_i32_1 = arith.constant 0 : i32
    return %c0_i32, %c0_i32_0 : i32, i32
  }
  func.func @transform_4(%arg0: i32) -> (i32, i32) {
    %c0_i32 = arith.constant 0 : i32
    %c0_i32_0 = arith.constant 0 : i32
    return %c0_i32, %arg0 : i32, i32
  }
  func.func @transform_5(%arg0: i32) -> (i32, i32, i32) {
    %c0_i32 = arith.constant 0 : i32
    %c0_i32_0 = arith.constant 0 : i32
    %c0_i32_1 = arith.constant 0 : i32
    return %arg0, %c0_i32, %c0_i32_0 : i32, i32, i32
  }
}

module attributes {stable_mosaic.version = 11 : i64} {
  func.func @_unmasked_block_kernel(%arg0: i32, %arg1: memref<3x256xf32, #tpu.memory_space<vmem>>, %arg2: memref<32x9xbf16, #tpu.memory_space<vmem>>, %arg3: memref<32x105xbf16, #tpu.memory_space<vmem>>, %arg4: memref<32x4xf32, #tpu.memory_space<vmem>>, %arg5: memref<32x256xf32, #tpu.memory_space<vmem>>) attributes {dimension_semantics = [#tpu.dimension_semantics<parallel>], iteration_bounds = array<i64: 2>, scalar_prefetch = 0 : i64, scratch_operands = 0 : i64, tpu.core_type = #tpu.core_type<tc>, window_params = [{transform_indices = @transform_0, window_bounds = array<i64: 3, 256>}, {pipeline_mode = #tpu.pipeline_mode<synchronous>, transform_indices = @transform_1, window_bounds = array<i64: 32, 9>}, {pipeline_mode = #tpu.pipeline_mode<synchronous>, transform_indices = @transform_2, window_bounds = array<i64: 32, 105>}, {pipeline_mode = #tpu.pipeline_mode<synchronous>, transform_indices = @transform_3, window_bounds = array<i64: 32, 4>}, {transform_indices = @transform_4, window_bounds = array<i64: 32, 256>}]} {
    %c0 = arith.constant 0 : index
    %c0_0 = arith.constant 0 : index
    %0 = vector.load %arg1[%c0, %c0_0] : memref<3x256xf32, #tpu.memory_space<vmem>>, vector<3x256xf32>
    %1 = tpu.iota {dimensions = array<i32: 1>} : vector<1x256xi32>
    %c127_i32 = arith.constant 127 : i32
    %2 = vector.broadcast %c127_i32 : i32 to vector<1x256xi32>
    %3 = arith.andi %1, %2 : vector<1x256xi32>
    %c0_i32 = arith.constant 0 : i32
    %4 = vector.broadcast %c0_i32 : i32 to vector<1x256xi32>
    %5 = arith.cmpi ne, %3, %4 : vector<1x256xi32>
    %c127_i32_1 = arith.constant 127 : i32
    %6 = vector.broadcast %c127_i32_1 : i32 to vector<1x256xi32>
    %7 = arith.cmpi ne, %3, %6 : vector<1x256xi32>
    %c0_2 = arith.constant 0 : index
    %c0_3 = arith.constant 0 : index
    %8 = vector.load %arg4[%c0_2, %c0_3] : memref<32x4xf32, #tpu.memory_space<vmem>>, vector<32x4xf32>
    %9 = vector.extract_strided_slice %8 {offsets = [0, 0], sizes = [32, 1], strides = [1, 1]} : vector<32x4xf32> to vector<32x1xf32>
    %10 = vector.extract_strided_slice %8 {offsets = [0, 1], sizes = [32, 1], strides = [1, 1]} : vector<32x4xf32> to vector<32x1xf32>
    %11 = vector.extract_strided_slice %8 {offsets = [0, 2], sizes = [32, 1], strides = [1, 1]} : vector<32x4xf32> to vector<32x1xf32>
    %12 = vector.extract_strided_slice %8 {offsets = [0, 3], sizes = [32, 1], strides = [1, 1]} : vector<32x4xf32> to vector<32x1xf32>
    %cst = arith.constant 0.000000e+00 : f32
    %13 = vector.broadcast %cst : f32 to vector<3x1xf32>
    %14 = vector.extract_strided_slice %0 {offsets = [0, 0], sizes = [3, 255], strides = [1, 1]} : vector<3x256xf32> to vector<3x255xf32>
    %15 = tpu.concatenate %13, %14 in 1 : vector<3x1xf32>, vector<3x255xf32> -> vector<3x256xf32>
    %cst_4 = arith.constant 0.000000e+00 : f32
    %16 = vector.shape_cast %5 : vector<1x256xi1> to vector<1x256xi1>
    %17 = vector.broadcast %16 : vector<1x256xi1> to vector<3x256xi1>
    %18 = vector.broadcast %cst_4 : f32 to vector<3x256xf32>
    %19 = arith.select %17, %15, %18 : vector<3x256xi1>, vector<3x256xf32>
    %20 = vector.extract_strided_slice %0 {offsets = [0, 1], sizes = [3, 255], strides = [1, 1]} : vector<3x256xf32> to vector<3x255xf32>
    %21 = tpu.concatenate %20, %13 in 1 : vector<3x255xf32>, vector<3x1xf32> -> vector<3x256xf32>
    %cst_5 = arith.constant 0.000000e+00 : f32
    %22 = vector.shape_cast %7 : vector<1x256xi1> to vector<1x256xi1>
    %23 = vector.broadcast %22 : vector<1x256xi1> to vector<3x256xi1>
    %24 = vector.broadcast %cst_5 : f32 to vector<3x256xf32>
    %25 = arith.select %23, %21, %24 : vector<3x256xi1>, vector<3x256xf32>
    %26 = tpu.concatenate %19, %0, %25 in 0 : vector<3x256xf32>, vector<3x256xf32>, vector<3x256xf32> -> vector<9x256xf32>
    %c0_6 = arith.constant 0 : index
    %c0_7 = arith.constant 0 : index
    %27 = vector.load %arg2[%c0_6, %c0_7] : memref<32x9xbf16, #tpu.memory_space<vmem>>, vector<32x9xbf16>
    %28 = arith.truncf %26 : vector<9x256xf32> to vector<9x256xbf16>
    %cst_8 = arith.constant dense<0.000000e+00> : vector<32x256xf32>
    %29 = tpu.matmul %27, %28, %cst_8 {dimension_numbers = #tpu.dot_dimension_numbers<[1], [0], [0], [1], [0, 0, 1, 1], [], []>} : vector<32x9xbf16>, vector<9x256xbf16>, vector<32x256xf32> -> vector<32x256xf32>
    %30 = vector.broadcast %9 : vector<32x1xf32> to vector<32x256xf32>
    %31 = arith.addf %29, %30 : vector<32x256xf32>
    %cst_9 = arith.constant 0.000000e+00 : f32
    %32 = vector.broadcast %cst_9 : f32 to vector<32x256xf32>
    %33 = arith.cmpf oge, %31, %32 : vector<32x256xf32>
    %34 = vector.broadcast %10 : vector<32x1xf32> to vector<32x256xf32>
    %35 = arith.mulf %34, %31 : vector<32x256xf32>
    %36 = arith.select %33, %31, %35 : vector<32x256xi1>, vector<32x256xf32>
    %cst_10 = arith.constant 0.000000e+00 : f32
    %37 = vector.broadcast %cst_10 : f32 to vector<32x1xf32>
    %38 = vector.extract_strided_slice %36 {offsets = [0, 0], sizes = [32, 255], strides = [1, 1]} : vector<32x256xf32> to vector<32x255xf32>
    %39 = tpu.concatenate %37, %38 in 1 : vector<32x1xf32>, vector<32x255xf32> -> vector<32x256xf32>
    %cst_11 = arith.constant 0.000000e+00 : f32
    %40 = vector.shape_cast %5 : vector<1x256xi1> to vector<1x256xi1>
    %41 = vector.broadcast %40 : vector<1x256xi1> to vector<32x256xi1>
    %42 = vector.broadcast %cst_11 : f32 to vector<32x256xf32>
    %43 = arith.select %41, %39, %42 : vector<32x256xi1>, vector<32x256xf32>
    %44 = vector.extract_strided_slice %36 {offsets = [0, 1], sizes = [32, 255], strides = [1, 1]} : vector<32x256xf32> to vector<32x255xf32>
    %45 = tpu.concatenate %44, %37 in 1 : vector<32x255xf32>, vector<32x1xf32> -> vector<32x256xf32>
    %cst_12 = arith.constant 0.000000e+00 : f32
    %46 = vector.shape_cast %7 : vector<1x256xi1> to vector<1x256xi1>
    %47 = vector.broadcast %46 : vector<1x256xi1> to vector<32x256xi1>
    %48 = vector.broadcast %cst_12 : f32 to vector<32x256xf32>
    %49 = arith.select %47, %45, %48 : vector<32x256xi1>, vector<32x256xf32>
    %50 = tpu.concatenate %43, %36, %49, %26 in 0 : vector<32x256xf32>, vector<32x256xf32>, vector<32x256xf32>, vector<9x256xf32> -> vector<105x256xf32>
    %c0_13 = arith.constant 0 : index
    %c0_14 = arith.constant 0 : index
    %51 = vector.load %arg3[%c0_13, %c0_14] : memref<32x105xbf16, #tpu.memory_space<vmem>>, vector<32x105xbf16>
    %52 = arith.truncf %50 : vector<105x256xf32> to vector<105x256xbf16>
    %cst_15 = arith.constant dense<0.000000e+00> : vector<32x256xf32>
    %53 = tpu.matmul %51, %52, %cst_15 {dimension_numbers = #tpu.dot_dimension_numbers<[1], [0], [0], [1], [0, 0, 1, 1], [], []>} : vector<32x105xbf16>, vector<105x256xbf16>, vector<32x256xf32> -> vector<32x256xf32>
    %54 = vector.broadcast %11 : vector<32x1xf32> to vector<32x256xf32>
    %55 = arith.addf %53, %54 : vector<32x256xf32>
    %cst_16 = arith.constant 0.000000e+00 : f32
    %56 = vector.broadcast %cst_16 : f32 to vector<32x256xf32>
    %57 = arith.cmpf oge, %55, %56 : vector<32x256xf32>
    %58 = vector.broadcast %12 : vector<32x1xf32> to vector<32x256xf32>
    %59 = arith.mulf %58, %55 : vector<32x256xf32>
    %60 = arith.select %57, %55, %59 : vector<32x256xi1>, vector<32x256xf32>
    %c0_17 = arith.constant 0 : index
    %c0_18 = arith.constant 0 : index
    %61 = vector.load %arg5[%c0_17, %c0_18] : memref<32x256xf32, #tpu.memory_space<vmem>>, vector<32x256xf32>
    tpu.vector_store %arg5[%c0_17, %c0_18], %60 {strides = array<i32>} : memref<32x256xf32, #tpu.memory_space<vmem>>, vector<32x256xf32>,
    return
  }
  func.func @transform_0(%arg0: i32) -> (i32, i32) {
    %c0_i32 = arith.constant 0 : i32
    %c0_i32_0 = arith.constant 0 : i32
    return %c0_i32, %arg0 : i32, i32
  }
  func.func @transform_1(%arg0: i32) -> (i32, i32) {
    %c0_i32 = arith.constant 0 : i32
    %c0_i32_0 = arith.constant 0 : i32
    %c0_i32_1 = arith.constant 0 : i32
    return %c0_i32, %c0_i32_0 : i32, i32
  }
  func.func @transform_2(%arg0: i32) -> (i32, i32) {
    %c0_i32 = arith.constant 0 : i32
    %c0_i32_0 = arith.constant 0 : i32
    %c0_i32_1 = arith.constant 0 : i32
    return %c0_i32, %c0_i32_0 : i32, i32
  }
  func.func @transform_3(%arg0: i32) -> (i32, i32) {
    %c0_i32 = arith.constant 0 : i32
    %c0_i32_0 = arith.constant 0 : i32
    %c0_i32_1 = arith.constant 0 : i32
    return %c0_i32, %c0_i32_0 : i32, i32
  }
  func.func @transform_4(%arg0: i32) -> (i32, i32) {
    %c0_i32 = arith.constant 0 : i32
    %c0_i32_0 = arith.constant 0 : i32
    return %c0_i32, %arg0 : i32, i32
  }
}

module attributes {stable_mosaic.version = 11 : i64} {
  func.func @_conv_kernel(%arg0: i32, %arg1: memref<32x256xf32, #tpu.memory_space<vmem>>, %arg2: memref<32x3xf32, #tpu.memory_space<vmem>>, %arg3: memref<3x256xf32, #tpu.memory_space<vmem>>, %arg4: memref<32x70xbf16, #tpu.memory_space<vmem>>, %arg5: memref<32x256xf32, #tpu.memory_space<vmem>>, %arg6: memref<1x32x2xf32, #tpu.memory_space<vmem>>) attributes {dimension_semantics = [#tpu.dimension_semantics<parallel>], iteration_bounds = array<i64: 2>, scalar_prefetch = 0 : i64, scratch_operands = 0 : i64, tpu.core_type = #tpu.core_type<tc>, window_params = [{transform_indices = @transform_0, window_bounds = array<i64: 32, 256>}, {pipeline_mode = #tpu.pipeline_mode<synchronous>, transform_indices = @transform_1, window_bounds = array<i64: 32, 3>}, {transform_indices = @transform_2, window_bounds = array<i64: 3, 256>}, {pipeline_mode = #tpu.pipeline_mode<synchronous>, transform_indices = @transform_3, window_bounds = array<i64: 32, 70>}, {transform_indices = @transform_4, window_bounds = array<i64: 32, 256>}, {transform_indices = @transform_5, window_bounds = array<i64: 1, 32, 2>}]} {
    %0 = tpu.iota {dimensions = array<i32: 1>} : vector<1x256xi32>
    %c127_i32 = arith.constant 127 : i32
    %1 = vector.broadcast %c127_i32 : i32 to vector<1x256xi32>
    %2 = arith.andi %0, %1 : vector<1x256xi32>
    %c0_i32 = arith.constant 0 : i32
    %3 = vector.broadcast %c0_i32 : i32 to vector<1x256xi32>
    %4 = arith.cmpi ne, %2, %3 : vector<1x256xi32>
    %c0 = arith.constant 0 : index
    %c0_0 = arith.constant 0 : index
    %5 = vector.load %arg1[%c0, %c0_0] : memref<32x256xf32, #tpu.memory_space<vmem>>, vector<32x256xf32>
    %c0_1 = arith.constant 0 : index
    %c0_2 = arith.constant 0 : index
    %6 = vector.load %arg2[%c0_1, %c0_2] : memref<32x3xf32, #tpu.memory_space<vmem>>, vector<32x3xf32>
    %7 = vector.extract_strided_slice %6 {offsets = [0, 0], sizes = [32, 1], strides = [1, 1]} : vector<32x3xf32> to vector<32x1xf32>
    %8 = vector.broadcast %7 : vector<32x1xf32> to vector<32x256xf32>
    %9 = arith.mulf %5, %8 : vector<32x256xf32>
    %10 = vector.extract_strided_slice %6 {offsets = [0, 1], sizes = [32, 1], strides = [1, 1]} : vector<32x3xf32> to vector<32x1xf32>
    %11 = vector.broadcast %10 : vector<32x1xf32> to vector<32x256xf32>
    %12 = arith.addf %9, %11 : vector<32x256xf32>
    %cst = arith.constant 0.000000e+00 : f32
    %13 = vector.broadcast %cst : f32 to vector<32x256xf32>
    %14 = arith.cmpf oge, %12, %13 : vector<32x256xf32>
    %15 = vector.extract_strided_slice %6 {offsets = [0, 2], sizes = [32, 1], strides = [1, 1]} : vector<32x3xf32> to vector<32x1xf32>
    %16 = vector.broadcast %15 : vector<32x1xf32> to vector<32x256xf32>
    %17 = arith.mulf %16, %12 : vector<32x256xf32>
    %18 = arith.select %14, %12, %17 : vector<32x256xi1>, vector<32x256xf32>
    %cst_3 = arith.constant 0.000000e+00 : f32
    %19 = vector.broadcast %cst_3 : f32 to vector<32x1xf32>
    %20 = vector.extract_strided_slice %18 {offsets = [0, 0], sizes = [32, 255], strides = [1, 1]} : vector<32x256xf32> to vector<32x255xf32>
    %21 = tpu.concatenate %19, %20 in 1 : vector<32x1xf32>, vector<32x255xf32> -> vector<32x256xf32>
    %cst_4 = arith.constant 0.000000e+00 : f32
    %22 = vector.shape_cast %4 : vector<1x256xi1> to vector<1x256xi1>
    %23 = vector.broadcast %22 : vector<1x256xi1> to vector<32x256xi1>
    %24 = vector.broadcast %cst_4 : f32 to vector<32x256xf32>
    %25 = arith.select %23, %21, %24 : vector<32x256xi1>, vector<32x256xf32>
    %c0_5 = arith.constant 0 : index
    %c0_6 = arith.constant 0 : index
    %26 = vector.load %arg3[%c0_5, %c0_6] : memref<3x256xf32, #tpu.memory_space<vmem>>, vector<3x256xf32>
    %cst_7 = arith.constant 0.000000e+00 : f32
    %27 = vector.broadcast %cst_7 : f32 to vector<3x1xf32>
    %28 = vector.extract_strided_slice %26 {offsets = [0, 0], sizes = [3, 255], strides = [1, 1]} : vector<3x256xf32> to vector<3x255xf32>
    %29 = tpu.concatenate %27, %28 in 1 : vector<3x1xf32>, vector<3x255xf32> -> vector<3x256xf32>
    %cst_8 = arith.constant 0.000000e+00 : f32
    %30 = vector.shape_cast %4 : vector<1x256xi1> to vector<1x256xi1>
    %31 = vector.broadcast %30 : vector<1x256xi1> to vector<3x256xi1>
    %32 = vector.broadcast %cst_8 : f32 to vector<3x256xf32>
    %33 = arith.select %31, %29, %32 : vector<3x256xi1>, vector<3x256xf32>
    %34 = tpu.concatenate %25, %18, %33, %26 in 0 : vector<32x256xf32>, vector<32x256xf32>, vector<3x256xf32>, vector<3x256xf32> -> vector<70x256xf32>
    %c0_9 = arith.constant 0 : index
    %c0_10 = arith.constant 0 : index
    %35 = vector.load %arg4[%c0_9, %c0_10] : memref<32x70xbf16, #tpu.memory_space<vmem>>, vector<32x70xbf16>
    %36 = arith.truncf %34 : vector<70x256xf32> to vector<70x256xbf16>
    %cst_11 = arith.constant dense<0.000000e+00> : vector<32x256xf32>
    %37 = tpu.matmul %35, %36, %cst_11 {dimension_numbers = #tpu.dot_dimension_numbers<[1], [0], [0], [1], [0, 0, 1, 1], [], []>} : vector<32x70xbf16>, vector<70x256xbf16>, vector<32x256xf32> -> vector<32x256xf32>
    %c0_12 = arith.constant 0 : index
    %c0_13 = arith.constant 0 : index
    %38 = vector.load %arg5[%c0_12, %c0_13] : memref<32x256xf32, #tpu.memory_space<vmem>>, vector<32x256xf32>
    tpu.vector_store %arg5[%c0_12, %c0_13], %37 {strides = array<i32>} : memref<32x256xf32, #tpu.memory_space<vmem>>, vector<32x256xf32>,
    %cst_14 = arith.constant dense<0.000000e+00> : vector<32xf32>
    %39 = vector.multi_reduction <add>, %37, %cst_14 [1] : vector<32x256xf32> to vector<32xf32>
    %40 = vector.shape_cast %39 : vector<32xf32> to vector<32x1xf32>
    %cst_15 = arith.constant 3.906250e-03 : f32
    %41 = vector.broadcast %cst_15 : f32 to vector<32x1xf32>
    %42 = arith.mulf %40, %41 : vector<32x1xf32>
    %43 = vector.broadcast %42 : vector<32x1xf32> to vector<32x256xf32>
    %44 = arith.subf %37, %43 : vector<32x256xf32>
    %45 = arith.mulf %44, %44 : vector<32x256xf32>
    %cst_16 = arith.constant dense<0.000000e+00> : vector<32xf32>
    %46 = vector.multi_reduction <add>, %45, %cst_16 [1] : vector<32x256xf32> to vector<32xf32>
    %47 = vector.shape_cast %46 : vector<32xf32> to vector<32x1xf32>
    %48 = tpu.concatenate %40, %47 in 1 : vector<32x1xf32>, vector<32x1xf32> -> vector<32x2xf32>
    %c0_17 = arith.constant 0 : index
    %c0_18 = arith.constant 0 : index
    %c0_19 = arith.constant 0 : index
    %49 = vector.load %arg6[%c0_17, %c0_18, %c0_19] : memref<1x32x2xf32, #tpu.memory_space<vmem>>, vector<1x32x2xf32>
    %50 = vector.shape_cast %49 : vector<1x32x2xf32> to vector<32x2xf32>
    %51 = vector.shape_cast %48 : vector<32x2xf32> to vector<1x32x2xf32>
    tpu.vector_store %arg6[%c0_17, %c0_18, %c0_19], %51 {strides = array<i32>} : memref<1x32x2xf32, #tpu.memory_space<vmem>>, vector<1x32x2xf32>,
    return
  }
  func.func @transform_0(%arg0: i32) -> (i32, i32) {
    %c0_i32 = arith.constant 0 : i32
    %c0_i32_0 = arith.constant 0 : i32
    return %c0_i32, %arg0 : i32, i32
  }
  func.func @transform_1(%arg0: i32) -> (i32, i32) {
    %c0_i32 = arith.constant 0 : i32
    %c0_i32_0 = arith.constant 0 : i32
    %c0_i32_1 = arith.constant 0 : i32
    return %c0_i32, %c0_i32_0 : i32, i32
  }
  func.func @transform_2(%arg0: i32) -> (i32, i32) {
    %c0_i32 = arith.constant 0 : i32
    %c0_i32_0 = arith.constant 0 : i32
    return %c0_i32, %arg0 : i32, i32
  }
  func.func @transform_3(%arg0: i32) -> (i32, i32) {
    %c0_i32 = arith.constant 0 : i32
    %c0_i32_0 = arith.constant 0 : i32
    %c0_i32_1 = arith.constant 0 : i32
    return %c0_i32, %c0_i32_0 : i32, i32
  }
  func.func @transform_4(%arg0: i32) -> (i32, i32) {
    %c0_i32 = arith.constant 0 : i32
    %c0_i32_0 = arith.constant 0 : i32
    return %c0_i32, %arg0 : i32, i32
  }
  func.func @transform_5(%arg0: i32) -> (i32, i32, i32) {
    %c0_i32 = arith.constant 0 : i32
    %c0_i32_0 = arith.constant 0 : i32
    %c0_i32_1 = arith.constant 0 : i32
    return %arg0, %c0_i32, %c0_i32_0 : i32, i32, i32
  }
}

module attributes {stable_mosaic.version = 11 : i64} {
  func.func @_unmasked_block_kernel(%arg0: i32, %arg1: memref<32x256xf32, #tpu.memory_space<vmem>>, %arg2: memref<3x96xbf16, #tpu.memory_space<vmem>>, %arg3: memref<3x105xbf16, #tpu.memory_space<vmem>>, %arg4: memref<3x4xf32, #tpu.memory_space<vmem>>, %arg5: memref<3x256xf32, #tpu.memory_space<vmem>>) attributes {dimension_semantics = [#tpu.dimension_semantics<parallel>], iteration_bounds = array<i64: 2>, scalar_prefetch = 0 : i64, scratch_operands = 0 : i64, tpu.core_type = #tpu.core_type<tc>, window_params = [{transform_indices = @transform_0, window_bounds = array<i64: 32, 256>}, {pipeline_mode = #tpu.pipeline_mode<synchronous>, transform_indices = @transform_1, window_bounds = array<i64: 3, 96>}, {pipeline_mode = #tpu.pipeline_mode<synchronous>, transform_indices = @transform_2, window_bounds = array<i64: 3, 105>}, {pipeline_mode = #tpu.pipeline_mode<synchronous>, transform_indices = @transform_3, window_bounds = array<i64: 3, 4>}, {transform_indices = @transform_4, window_bounds = array<i64: 3, 256>}]} {
    %c0 = arith.constant 0 : index
    %c0_0 = arith.constant 0 : index
    %0 = vector.load %arg1[%c0, %c0_0] : memref<32x256xf32, #tpu.memory_space<vmem>>, vector<32x256xf32>
    %1 = tpu.iota {dimensions = array<i32: 1>} : vector<1x256xi32>
    %c127_i32 = arith.constant 127 : i32
    %2 = vector.broadcast %c127_i32 : i32 to vector<1x256xi32>
    %3 = arith.andi %1, %2 : vector<1x256xi32>
    %c0_i32 = arith.constant 0 : i32
    %4 = vector.broadcast %c0_i32 : i32 to vector<1x256xi32>
    %5 = arith.cmpi ne, %3, %4 : vector<1x256xi32>
    %c127_i32_1 = arith.constant 127 : i32
    %6 = vector.broadcast %c127_i32_1 : i32 to vector<1x256xi32>
    %7 = arith.cmpi ne, %3, %6 : vector<1x256xi32>
    %c0_2 = arith.constant 0 : index
    %c0_3 = arith.constant 0 : index
    %8 = vector.load %arg4[%c0_2, %c0_3] : memref<3x4xf32, #tpu.memory_space<vmem>>, vector<3x4xf32>
    %9 = vector.extract_strided_slice %8 {offsets = [0, 0], sizes = [3, 1], strides = [1, 1]} : vector<3x4xf32> to vector<3x1xf32>
    %10 = vector.extract_strided_slice %8 {offsets = [0, 1], sizes = [3, 1], strides = [1, 1]} : vector<3x4xf32> to vector<3x1xf32>
    %11 = vector.extract_strided_slice %8 {offsets = [0, 2], sizes = [3, 1], strides = [1, 1]} : vector<3x4xf32> to vector<3x1xf32>
    %12 = vector.extract_strided_slice %8 {offsets = [0, 3], sizes = [3, 1], strides = [1, 1]} : vector<3x4xf32> to vector<3x1xf32>
    %cst = arith.constant 0.000000e+00 : f32
    %13 = vector.broadcast %cst : f32 to vector<32x1xf32>
    %14 = vector.extract_strided_slice %0 {offsets = [0, 0], sizes = [32, 255], strides = [1, 1]} : vector<32x256xf32> to vector<32x255xf32>
    %15 = tpu.concatenate %13, %14 in 1 : vector<32x1xf32>, vector<32x255xf32> -> vector<32x256xf32>
    %cst_4 = arith.constant 0.000000e+00 : f32
    %16 = vector.shape_cast %5 : vector<1x256xi1> to vector<1x256xi1>
    %17 = vector.broadcast %16 : vector<1x256xi1> to vector<32x256xi1>
    %18 = vector.broadcast %cst_4 : f32 to vector<32x256xf32>
    %19 = arith.select %17, %15, %18 : vector<32x256xi1>, vector<32x256xf32>
    %20 = vector.extract_strided_slice %0 {offsets = [0, 1], sizes = [32, 255], strides = [1, 1]} : vector<32x256xf32> to vector<32x255xf32>
    %21 = tpu.concatenate %20, %13 in 1 : vector<32x255xf32>, vector<32x1xf32> -> vector<32x256xf32>
    %cst_5 = arith.constant 0.000000e+00 : f32
    %22 = vector.shape_cast %7 : vector<1x256xi1> to vector<1x256xi1>
    %23 = vector.broadcast %22 : vector<1x256xi1> to vector<32x256xi1>
    %24 = vector.broadcast %cst_5 : f32 to vector<32x256xf32>
    %25 = arith.select %23, %21, %24 : vector<32x256xi1>, vector<32x256xf32>
    %26 = tpu.concatenate %19, %0, %25 in 0 : vector<32x256xf32>, vector<32x256xf32>, vector<32x256xf32> -> vector<96x256xf32>
    %c0_6 = arith.constant 0 : index
    %c0_7 = arith.constant 0 : index
    %27 = vector.load %arg2[%c0_6, %c0_7] : memref<3x96xbf16, #tpu.memory_space<vmem>>, vector<3x96xbf16>
    %28 = arith.truncf %26 : vector<96x256xf32> to vector<96x256xbf16>
    %cst_8 = arith.constant dense<0.000000e+00> : vector<3x256xf32>
    %29 = tpu.matmul %27, %28, %cst_8 {dimension_numbers = #tpu.dot_dimension_numbers<[1], [0], [0], [1], [0, 0, 1, 1], [], []>} : vector<3x96xbf16>, vector<96x256xbf16>, vector<3x256xf32> -> vector<3x256xf32>
    %30 = vector.broadcast %9 : vector<3x1xf32> to vector<3x256xf32>
    %31 = arith.addf %29, %30 : vector<3x256xf32>
    %cst_9 = arith.constant 0.000000e+00 : f32
    %32 = vector.broadcast %cst_9 : f32 to vector<3x256xf32>
    %33 = arith.cmpf oge, %31, %32 : vector<3x256xf32>
    %34 = vector.broadcast %10 : vector<3x1xf32> to vector<3x256xf32>
    %35 = arith.mulf %34, %31 : vector<3x256xf32>
    %36 = arith.select %33, %31, %35 : vector<3x256xi1>, vector<3x256xf32>
    %cst_10 = arith.constant 0.000000e+00 : f32
    %37 = vector.broadcast %cst_10 : f32 to vector<3x1xf32>
    %38 = vector.extract_strided_slice %36 {offsets = [0, 0], sizes = [3, 255], strides = [1, 1]} : vector<3x256xf32> to vector<3x255xf32>
    %39 = tpu.concatenate %37, %38 in 1 : vector<3x1xf32>, vector<3x255xf32> -> vector<3x256xf32>
    %cst_11 = arith.constant 0.000000e+00 : f32
    %40 = vector.shape_cast %5 : vector<1x256xi1> to vector<1x256xi1>
    %41 = vector.broadcast %40 : vector<1x256xi1> to vector<3x256xi1>
    %42 = vector.broadcast %cst_11 : f32 to vector<3x256xf32>
    %43 = arith.select %41, %39, %42 : vector<3x256xi1>, vector<3x256xf32>
    %44 = vector.extract_strided_slice %36 {offsets = [0, 1], sizes = [3, 255], strides = [1, 1]} : vector<3x256xf32> to vector<3x255xf32>
    %45 = tpu.concatenate %44, %37 in 1 : vector<3x255xf32>, vector<3x1xf32> -> vector<3x256xf32>
    %cst_12 = arith.constant 0.000000e+00 : f32
    %46 = vector.shape_cast %7 : vector<1x256xi1> to vector<1x256xi1>
    %47 = vector.broadcast %46 : vector<1x256xi1> to vector<3x256xi1>
    %48 = vector.broadcast %cst_12 : f32 to vector<3x256xf32>
    %49 = arith.select %47, %45, %48 : vector<3x256xi1>, vector<3x256xf32>
    %50 = tpu.concatenate %43, %36, %49, %26 in 0 : vector<3x256xf32>, vector<3x256xf32>, vector<3x256xf32>, vector<96x256xf32> -> vector<105x256xf32>
    %c0_13 = arith.constant 0 : index
    %c0_14 = arith.constant 0 : index
    %51 = vector.load %arg3[%c0_13, %c0_14] : memref<3x105xbf16, #tpu.memory_space<vmem>>, vector<3x105xbf16>
    %52 = arith.truncf %50 : vector<105x256xf32> to vector<105x256xbf16>
    %cst_15 = arith.constant dense<0.000000e+00> : vector<3x256xf32>
    %53 = tpu.matmul %51, %52, %cst_15 {dimension_numbers = #tpu.dot_dimension_numbers<[1], [0], [0], [1], [0, 0, 1, 1], [], []>} : vector<3x105xbf16>, vector<105x256xbf16>, vector<3x256xf32> -> vector<3x256xf32>
    %54 = vector.broadcast %11 : vector<3x1xf32> to vector<3x256xf32>
    %55 = arith.addf %53, %54 : vector<3x256xf32>
    %cst_16 = arith.constant 0.000000e+00 : f32
    %56 = vector.broadcast %cst_16 : f32 to vector<3x256xf32>
    %57 = arith.cmpf oge, %55, %56 : vector<3x256xf32>
    %58 = vector.broadcast %12 : vector<3x1xf32> to vector<3x256xf32>
    %59 = arith.mulf %58, %55 : vector<3x256xf32>
    %60 = arith.select %57, %55, %59 : vector<3x256xi1>, vector<3x256xf32>
    %c0_17 = arith.constant 0 : index
    %c0_18 = arith.constant 0 : index
    %61 = vector.load %arg5[%c0_17, %c0_18] : memref<3x256xf32, #tpu.memory_space<vmem>>, vector<3x256xf32>
    tpu.vector_store %arg5[%c0_17, %c0_18], %60 {strides = array<i32>} : memref<3x256xf32, #tpu.memory_space<vmem>>, vector<3x256xf32>,
    return
  }
  func.func @transform_0(%arg0: i32) -> (i32, i32) {
    %c0_i32 = arith.constant 0 : i32
    %c0_i32_0 = arith.constant 0 : i32
    return %c0_i32, %arg0 : i32, i32
  }
  func.func @transform_1(%arg0: i32) -> (i32, i32) {
    %c0_i32 = arith.constant 0 : i32
    %c0_i32_0 = arith.constant 0 : i32
    %c0_i32_1 = arith.constant 0 : i32
    return %c0_i32, %c0_i32_0 : i32, i32
  }
  func.func @transform_2(%arg0: i32) -> (i32, i32) {
    %c0_i32 = arith.constant 0 : i32
    %c0_i32_0 = arith.constant 0 : i32
    %c0_i32_1 = arith.constant 0 : i32
    return %c0_i32, %c0_i32_0 : i32, i32
  }
  func.func @transform_3(%arg0: i32) -> (i32, i32) {
    %c0_i32 = arith.constant 0 : i32
    %c0_i32_0 = arith.constant 0 : i32
    %c0_i32_1 = arith.constant 0 : i32
    return %c0_i32, %c0_i32_0 : i32, i32
  }
  func.func @transform_4(%arg0: i32) -> (i32, i32) {
    %c0_i32 = arith.constant 0 : i32
    %c0_i32_0 = arith.constant 0 : i32
    return %c0_i32, %arg0 : i32, i32
  }
}

module attributes {stable_mosaic.version = 11 : i64} {
  func.func @_conv_kernel(%arg0: i32, %arg1: memref<32x256xf32, #tpu.memory_space<vmem>>, %arg2: memref<32x3xf32, #tpu.memory_space<vmem>>, %arg3: memref<2x64xbf16, #tpu.memory_space<vmem>>, %arg4: memref<1x256xf32, #tpu.memory_space<vmem>>, %arg5: memref<1x256xf32, #tpu.memory_space<vmem>>, %arg6: memref<1x256xf32, #tpu.memory_space<vmem>>) attributes {dimension_semantics = [#tpu.dimension_semantics<parallel>], iteration_bounds = array<i64: 2>, scalar_prefetch = 0 : i64, scratch_operands = 0 : i64, tpu.core_type = #tpu.core_type<tc>, window_params = [{transform_indices = @transform_0, window_bounds = array<i64: 32, 256>}, {pipeline_mode = #tpu.pipeline_mode<synchronous>, transform_indices = @transform_1, window_bounds = array<i64: 32, 3>}, {pipeline_mode = #tpu.pipeline_mode<synchronous>, transform_indices = @transform_2, window_bounds = array<i64: 2, 64>}, {transform_indices = @transform_3, window_bounds = array<i64: 1, 256>}, {transform_indices = @transform_4, window_bounds = array<i64: 1, 256>}, {transform_indices = @transform_5, window_bounds = array<i64: 1, 256>}]} {
    %0 = tpu.iota {dimensions = array<i32: 1>} : vector<1x256xi32>
    %c127_i32 = arith.constant 127 : i32
    %1 = vector.broadcast %c127_i32 : i32 to vector<1x256xi32>
    %2 = arith.andi %0, %1 : vector<1x256xi32>
    %c0_i32 = arith.constant 0 : i32
    %3 = vector.broadcast %c0_i32 : i32 to vector<1x256xi32>
    %4 = arith.cmpi ne, %2, %3 : vector<1x256xi32>
    %c0 = arith.constant 0 : index
    %c0_0 = arith.constant 0 : index
    %5 = vector.load %arg1[%c0, %c0_0] : memref<32x256xf32, #tpu.memory_space<vmem>>, vector<32x256xf32>
    %c0_1 = arith.constant 0 : index
    %c0_2 = arith.constant 0 : index
    %6 = vector.load %arg2[%c0_1, %c0_2] : memref<32x3xf32, #tpu.memory_space<vmem>>, vector<32x3xf32>
    %7 = vector.extract_strided_slice %6 {offsets = [0, 0], sizes = [32, 1], strides = [1, 1]} : vector<32x3xf32> to vector<32x1xf32>
    %8 = vector.broadcast %7 : vector<32x1xf32> to vector<32x256xf32>
    %9 = arith.mulf %5, %8 : vector<32x256xf32>
    %10 = vector.extract_strided_slice %6 {offsets = [0, 1], sizes = [32, 1], strides = [1, 1]} : vector<32x3xf32> to vector<32x1xf32>
    %11 = vector.broadcast %10 : vector<32x1xf32> to vector<32x256xf32>
    %12 = arith.addf %9, %11 : vector<32x256xf32>
    %cst = arith.constant 0.000000e+00 : f32
    %13 = vector.broadcast %cst : f32 to vector<32x256xf32>
    %14 = arith.cmpf oge, %12, %13 : vector<32x256xf32>
    %15 = vector.extract_strided_slice %6 {offsets = [0, 2], sizes = [32, 1], strides = [1, 1]} : vector<32x3xf32> to vector<32x1xf32>
    %16 = vector.broadcast %15 : vector<32x1xf32> to vector<32x256xf32>
    %17 = arith.mulf %16, %12 : vector<32x256xf32>
    %18 = arith.select %14, %12, %17 : vector<32x256xi1>, vector<32x256xf32>
    %cst_3 = arith.constant 0.000000e+00 : f32
    %19 = vector.broadcast %cst_3 : f32 to vector<32x1xf32>
    %20 = vector.extract_strided_slice %18 {offsets = [0, 0], sizes = [32, 255], strides = [1, 1]} : vector<32x256xf32> to vector<32x255xf32>
    %21 = tpu.concatenate %19, %20 in 1 : vector<32x1xf32>, vector<32x255xf32> -> vector<32x256xf32>
    %cst_4 = arith.constant 0.000000e+00 : f32
    %22 = vector.shape_cast %4 : vector<1x256xi1> to vector<1x256xi1>
    %23 = vector.broadcast %22 : vector<1x256xi1> to vector<32x256xi1>
    %24 = vector.broadcast %cst_4 : f32 to vector<32x256xf32>
    %25 = arith.select %23, %21, %24 : vector<32x256xi1>, vector<32x256xf32>
    %26 = tpu.concatenate %25, %18 in 0 : vector<32x256xf32>, vector<32x256xf32> -> vector<64x256xf32>
    %c0_5 = arith.constant 0 : index
    %c0_6 = arith.constant 0 : index
    %27 = vector.load %arg3[%c0_5, %c0_6] : memref<2x64xbf16, #tpu.memory_space<vmem>>, vector<2x64xbf16>
    %28 = arith.truncf %26 : vector<64x256xf32> to vector<64x256xbf16>
    %cst_7 = arith.constant dense<0.000000e+00> : vector<2x256xf32>
    %29 = tpu.matmul %27, %28, %cst_7 {dimension_numbers = #tpu.dot_dimension_numbers<[1], [0], [0], [1], [0, 0, 1, 1], [], []>} : vector<2x64xbf16>, vector<64x256xbf16>, vector<2x256xf32> -> vector<2x256xf32>
    %30 = vector.extract_strided_slice %29 {offsets = [1, 0], sizes = [1, 256], strides = [1, 1]} : vector<2x256xf32> to vector<1x256xf32>
    %cst_8 = arith.constant 9.99999993E-9 : f32
    %31 = vector.broadcast %cst_8 : f32 to vector<1x256xf32>
    %32 = arith.maximumf %30, %31 : vector<1x256xf32>
    %33 = vector.extract_strided_slice %29 {offsets = [0, 0], sizes = [1, 256], strides = [1, 1]} : vector<2x256xf32> to vector<1x256xf32>
    %c0_9 = arith.constant 0 : index
    %c0_10 = arith.constant 0 : index
    %34 = vector.load %arg4[%c0_9, %c0_10] : memref<1x256xf32, #tpu.memory_space<vmem>>, vector<1x256xf32>
    %35 = arith.mulf %32, %34 : vector<1x256xf32>
    %36 = arith.addf %33, %35 : vector<1x256xf32>
    %c0_11 = arith.constant 0 : index
    %c0_12 = arith.constant 0 : index
    %37 = vector.load %arg5[%c0_11, %c0_12] : memref<1x256xf32, #tpu.memory_space<vmem>>, vector<1x256xf32>
    tpu.vector_store %arg5[%c0_11, %c0_12], %36 {strides = array<i32>} : memref<1x256xf32, #tpu.memory_space<vmem>>, vector<1x256xf32>,
    %38 = math.log %32 : vector<1x256xf32>
    %cst_13 = arith.constant 0.000000e+00 : f32
    %39 = vector.broadcast %cst_13 : f32 to vector<1x256xf32>
    %40 = arith.subf %39, %38 : vector<1x256xf32>
    %c0_14 = arith.constant 0 : index
    %c0_15 = arith.constant 0 : index
    %41 = vector.load %arg6[%c0_14, %c0_15] : memref<1x256xf32, #tpu.memory_space<vmem>>, vector<1x256xf32>
    tpu.vector_store %arg6[%c0_14, %c0_15], %40 {strides = array<i32>} : memref<1x256xf32, #tpu.memory_space<vmem>>, vector<1x256xf32>,
    return
  }
  func.func @transform_0(%arg0: i32) -> (i32, i32) {
    %c0_i32 = arith.constant 0 : i32
    %c0_i32_0 = arith.constant 0 : i32
    return %c0_i32, %arg0 : i32, i32
  }
  func.func @transform_1(%arg0: i32) -> (i32, i32) {
    %c0_i32 = arith.constant 0 : i32
    %c0_i32_0 = arith.constant 0 : i32
    %c0_i32_1 = arith.constant 0 : i32
    return %c0_i32, %c0_i32_0 : i32, i32
  }
  func.func @transform_2(%arg0: i32) -> (i32, i32) {
    %c0_i32 = arith.constant 0 : i32
    %c0_i32_0 = arith.constant 0 : i32
    %c0_i32_1 = arith.constant 0 : i32
    return %c0_i32, %c0_i32_0 : i32, i32
  }
  func.func @transform_3(%arg0: i32) -> (i32, i32) {
    %c0_i32 = arith.constant 0 : i32
    %c0_i32_0 = arith.constant 0 : i32
    return %c0_i32, %arg0 : i32, i32
  }
  func.func @transform_4(%arg0: i32) -> (i32, i32) {
    %c0_i32 = arith.constant 0 : i32
    %c0_i32_0 = arith.constant 0 : i32
    return %c0_i32, %arg0 : i32, i32
  }
  func.func @transform_5(%arg0: i32) -> (i32, i32) {
    %c0_i32 = arith.constant 0 : i32
    %c0_i32_0 = arith.constant 0 : i32
    return %c0_i32, %arg0 : i32, i32
  }
}

module attributes {stable_mosaic.version = 11 : i64} {
  func.func @_conv_kernel(%arg0: i32, %arg1: memref<32x256xf32, #tpu.memory_space<vmem>>, %arg2: memref<32x3xf32, #tpu.memory_space<vmem>>, %arg3: memref<32x256xf32, #tpu.memory_space<vmem>>, %arg4: memref<32x3xf32, #tpu.memory_space<vmem>>, %arg5: memref<3x256xf32, #tpu.memory_space<vmem>>, %arg6: memref<32x134xbf16, #tpu.memory_space<vmem>>, %arg7: memref<32x256xf32, #tpu.memory_space<vmem>>, %arg8: memref<1x32x2xf32, #tpu.memory_space<vmem>>) attributes {dimension_semantics = [#tpu.dimension_semantics<parallel>], iteration_bounds = array<i64: 2>, scalar_prefetch = 0 : i64, scratch_operands = 0 : i64, tpu.core_type = #tpu.core_type<tc>, window_params = [{transform_indices = @transform_0, window_bounds = array<i64: 32, 256>}, {pipeline_mode = #tpu.pipeline_mode<synchronous>, transform_indices = @transform_1, window_bounds = array<i64: 32, 3>}, {transform_indices = @transform_2, window_bounds = array<i64: 32, 256>}, {pipeline_mode = #tpu.pipeline_mode<synchronous>, transform_indices = @transform_3, window_bounds = array<i64: 32, 3>}, {transform_indices = @transform_4, window_bounds = array<i64: 3, 256>}, {pipeline_mode = #tpu.pipeline_mode<synchronous>, transform_indices = @transform_5, window_bounds = array<i64: 32, 134>}, {transform_indices = @transform_6, window_bounds = array<i64: 32, 256>}, {transform_indices = @transform_7, window_bounds = array<i64: 1, 32, 2>}]} {
    %0 = tpu.iota {dimensions = array<i32: 1>} : vector<1x256xi32>
    %c127_i32 = arith.constant 127 : i32
    %1 = vector.broadcast %c127_i32 : i32 to vector<1x256xi32>
    %2 = arith.andi %0, %1 : vector<1x256xi32>
    %c0_i32 = arith.constant 0 : i32
    %3 = vector.broadcast %c0_i32 : i32 to vector<1x256xi32>
    %4 = arith.cmpi ne, %2, %3 : vector<1x256xi32>
    %c0 = arith.constant 0 : index
    %c0_0 = arith.constant 0 : index
    %5 = vector.load %arg1[%c0, %c0_0] : memref<32x256xf32, #tpu.memory_space<vmem>>, vector<32x256xf32>
    %c0_1 = arith.constant 0 : index
    %c0_2 = arith.constant 0 : index
    %6 = vector.load %arg2[%c0_1, %c0_2] : memref<32x3xf32, #tpu.memory_space<vmem>>, vector<32x3xf32>
    %7 = vector.extract_strided_slice %6 {offsets = [0, 0], sizes = [32, 1], strides = [1, 1]} : vector<32x3xf32> to vector<32x1xf32>
    %8 = vector.broadcast %7 : vector<32x1xf32> to vector<32x256xf32>
    %9 = arith.mulf %5, %8 : vector<32x256xf32>
    %10 = vector.extract_strided_slice %6 {offsets = [0, 1], sizes = [32, 1], strides = [1, 1]} : vector<32x3xf32> to vector<32x1xf32>
    %11 = vector.broadcast %10 : vector<32x1xf32> to vector<32x256xf32>
    %12 = arith.addf %9, %11 : vector<32x256xf32>
    %cst = arith.constant 0.000000e+00 : f32
    %13 = vector.broadcast %cst : f32 to vector<32x256xf32>
    %14 = arith.cmpf oge, %12, %13 : vector<32x256xf32>
    %15 = vector.extract_strided_slice %6 {offsets = [0, 2], sizes = [32, 1], strides = [1, 1]} : vector<32x3xf32> to vector<32x1xf32>
    %16 = vector.broadcast %15 : vector<32x1xf32> to vector<32x256xf32>
    %17 = arith.mulf %16, %12 : vector<32x256xf32>
    %18 = arith.select %14, %12, %17 : vector<32x256xi1>, vector<32x256xf32>
    %cst_3 = arith.constant 0.000000e+00 : f32
    %19 = vector.broadcast %cst_3 : f32 to vector<32x1xf32>
    %20 = vector.extract_strided_slice %18 {offsets = [0, 0], sizes = [32, 255], strides = [1, 1]} : vector<32x256xf32> to vector<32x255xf32>
    %21 = tpu.concatenate %19, %20 in 1 : vector<32x1xf32>, vector<32x255xf32> -> vector<32x256xf32>
    %cst_4 = arith.constant 0.000000e+00 : f32
    %22 = vector.shape_cast %4 : vector<1x256xi1> to vector<1x256xi1>
    %23 = vector.broadcast %22 : vector<1x256xi1> to vector<32x256xi1>
    %24 = vector.broadcast %cst_4 : f32 to vector<32x256xf32>
    %25 = arith.select %23, %21, %24 : vector<32x256xi1>, vector<32x256xf32>
    %c0_5 = arith.constant 0 : index
    %c0_6 = arith.constant 0 : index
    %26 = vector.load %arg3[%c0_5, %c0_6] : memref<32x256xf32, #tpu.memory_space<vmem>>, vector<32x256xf32>
    %c0_7 = arith.constant 0 : index
    %c0_8 = arith.constant 0 : index
    %27 = vector.load %arg4[%c0_7, %c0_8] : memref<32x3xf32, #tpu.memory_space<vmem>>, vector<32x3xf32>
    %28 = vector.extract_strided_slice %27 {offsets = [0, 0], sizes = [32, 1], strides = [1, 1]} : vector<32x3xf32> to vector<32x1xf32>
    %29 = vector.broadcast %28 : vector<32x1xf32> to vector<32x256xf32>
    %30 = arith.mulf %26, %29 : vector<32x256xf32>
    %31 = vector.extract_strided_slice %27 {offsets = [0, 1], sizes = [32, 1], strides = [1, 1]} : vector<32x3xf32> to vector<32x1xf32>
    %32 = vector.broadcast %31 : vector<32x1xf32> to vector<32x256xf32>
    %33 = arith.addf %30, %32 : vector<32x256xf32>
    %cst_9 = arith.constant 0.000000e+00 : f32
    %34 = vector.broadcast %cst_9 : f32 to vector<32x256xf32>
    %35 = arith.cmpf oge, %33, %34 : vector<32x256xf32>
    %36 = vector.extract_strided_slice %27 {offsets = [0, 2], sizes = [32, 1], strides = [1, 1]} : vector<32x3xf32> to vector<32x1xf32>
    %37 = vector.broadcast %36 : vector<32x1xf32> to vector<32x256xf32>
    %38 = arith.mulf %37, %33 : vector<32x256xf32>
    %39 = arith.select %35, %33, %38 : vector<32x256xi1>, vector<32x256xf32>
    %cst_10 = arith.constant 0.000000e+00 : f32
    %40 = vector.broadcast %cst_10 : f32 to vector<32x1xf32>
    %41 = vector.extract_strided_slice %39 {offsets = [0, 0], sizes = [32, 255], strides = [1, 1]} : vector<32x256xf32> to vector<32x255xf32>
    %42 = tpu.concatenate %40, %41 in 1 : vector<32x1xf32>, vector<32x255xf32> -> vector<32x256xf32>
    %cst_11 = arith.constant 0.000000e+00 : f32
    %43 = vector.shape_cast %4 : vector<1x256xi1> to vector<1x256xi1>
    %44 = vector.broadcast %43 : vector<1x256xi1> to vector<32x256xi1>
    %45 = vector.broadcast %cst_11 : f32 to vector<32x256xf32>
    %46 = arith.select %44, %42, %45 : vector<32x256xi1>, vector<32x256xf32>
    %c0_12 = arith.constant 0 : index
    %c0_13 = arith.constant 0 : index
    %47 = vector.load %arg5[%c0_12, %c0_13] : memref<3x256xf32, #tpu.memory_space<vmem>>, vector<3x256xf32>
    %cst_14 = arith.constant 0.000000e+00 : f32
    %48 = vector.broadcast %cst_14 : f32 to vector<3x1xf32>
    %49 = vector.extract_strided_slice %47 {offsets = [0, 0], sizes = [3, 255], strides = [1, 1]} : vector<3x256xf32> to vector<3x255xf32>
    %50 = tpu.concatenate %48, %49 in 1 : vector<3x1xf32>, vector<3x255xf32> -> vector<3x256xf32>
    %cst_15 = arith.constant 0.000000e+00 : f32
    %51 = vector.shape_cast %4 : vector<1x256xi1> to vector<1x256xi1>
    %52 = vector.broadcast %51 : vector<1x256xi1> to vector<3x256xi1>
    %53 = vector.broadcast %cst_15 : f32 to vector<3x256xf32>
    %54 = arith.select %52, %50, %53 : vector<3x256xi1>, vector<3x256xf32>
    %55 = tpu.concatenate %25, %18, %46, %39, %54, %47 in 0 : vector<32x256xf32>, vector<32x256xf32>, vector<32x256xf32>, vector<32x256xf32>, vector<3x256xf32>, vector<3x256xf32> -> vector<134x256xf32>
    %c0_16 = arith.constant 0 : index
    %c0_17 = arith.constant 0 : index
    %56 = vector.load %arg6[%c0_16, %c0_17] : memref<32x134xbf16, #tpu.memory_space<vmem>>, vector<32x134xbf16>
    %57 = arith.truncf %55 : vector<134x256xf32> to vector<134x256xbf16>
    %cst_18 = arith.constant dense<0.000000e+00> : vector<32x256xf32>
    %58 = tpu.matmul %56, %57, %cst_18 {dimension_numbers = #tpu.dot_dimension_numbers<[1], [0], [0], [1], [0, 0, 1, 1], [], []>} : vector<32x134xbf16>, vector<134x256xbf16>, vector<32x256xf32> -> vector<32x256xf32>
    %c0_19 = arith.constant 0 : index
    %c0_20 = arith.constant 0 : index
    %59 = vector.load %arg7[%c0_19, %c0_20] : memref<32x256xf32, #tpu.memory_space<vmem>>, vector<32x256xf32>
    tpu.vector_store %arg7[%c0_19, %c0_20], %58 {strides = array<i32>} : memref<32x256xf32, #tpu.memory_space<vmem>>, vector<32x256xf32>,
    %cst_21 = arith.constant dense<0.000000e+00> : vector<32xf32>
    %60 = vector.multi_reduction <add>, %58, %cst_21 [1] : vector<32x256xf32> to vector<32xf32>
    %61 = vector.shape_cast %60 : vector<32xf32> to vector<32x1xf32>
    %cst_22 = arith.constant 3.906250e-03 : f32
    %62 = vector.broadcast %cst_22 : f32 to vector<32x1xf32>
    %63 = arith.mulf %61, %62 : vector<32x1xf32>
    %64 = vector.broadcast %63 : vector<32x1xf32> to vector<32x256xf32>
    %65 = arith.subf %58, %64 : vector<32x256xf32>
    %66 = arith.mulf %65, %65 : vector<32x256xf32>
    %cst_23 = arith.constant dense<0.000000e+00> : vector<32xf32>
    %67 = vector.multi_reduction <add>, %66, %cst_23 [1] : vector<32x256xf32> to vector<32xf32>
    %68 = vector.shape_cast %67 : vector<32xf32> to vector<32x1xf32>
    %69 = tpu.concatenate %61, %68 in 1 : vector<32x1xf32>, vector<32x1xf32> -> vector<32x2xf32>
    %c0_24 = arith.constant 0 : index
    %c0_25 = arith.constant 0 : index
    %c0_26 = arith.constant 0 : index
    %70 = vector.load %arg8[%c0_24, %c0_25, %c0_26] : memref<1x32x2xf32, #tpu.memory_space<vmem>>, vector<1x32x2xf32>
    %71 = vector.shape_cast %70 : vector<1x32x2xf32> to vector<32x2xf32>
    %72 = vector.shape_cast %69 : vector<32x2xf32> to vector<1x32x2xf32>
    tpu.vector_store %arg8[%c0_24, %c0_25, %c0_26], %72 {strides = array<i32>} : memref<1x32x2xf32, #tpu.memory_space<vmem>>, vector<1x32x2xf32>,
    return
  }
  func.func @transform_0(%arg0: i32) -> (i32, i32) {
    %c0_i32 = arith.constant 0 : i32
    %c0_i32_0 = arith.constant 0 : i32
    return %c0_i32, %arg0 : i32, i32
  }
  func.func @transform_1(%arg0: i32) -> (i32, i32) {
    %c0_i32 = arith.constant 0 : i32
    %c0_i32_0 = arith.constant 0 : i32
    %c0_i32_1 = arith.constant 0 : i32
    return %c0_i32, %c0_i32_0 : i32, i32
  }
  func.func @transform_2(%arg0: i32) -> (i32, i32) {
    %c0_i32 = arith.constant 0 : i32
    %c0_i32_0 = arith.constant 0 : i32
    return %c0_i32, %arg0 : i32, i32
  }
  func.func @transform_3(%arg0: i32) -> (i32, i32) {
    %c0_i32 = arith.constant 0 : i32
    %c0_i32_0 = arith.constant 0 : i32
    %c0_i32_1 = arith.constant 0 : i32
    return %c0_i32, %c0_i32_0 : i32, i32
  }
  func.func @transform_4(%arg0: i32) -> (i32, i32) {
    %c0_i32 = arith.constant 0 : i32
    %c0_i32_0 = arith.constant 0 : i32
    return %c0_i32, %arg0 : i32, i32
  }
  func.func @transform_5(%arg0: i32) -> (i32, i32) {
    %c0_i32 = arith.constant 0 : i32
    %c0_i32_0 = arith.constant 0 : i32
    %c0_i32_1 = arith.constant 0 : i32
    return %c0_i32, %c0_i32_0 : i32, i32
  }
  func.func @transform_6(%arg0: i32) -> (i32, i32) {
    %c0_i32 = arith.constant 0 : i32
    %c0_i32_0 = arith.constant 0 : i32
    return %c0_i32, %arg0 : i32, i32
  }
  func.func @transform_7(%arg0: i32) -> (i32, i32, i32) {
    %c0_i32 = arith.constant 0 : i32
    %c0_i32_0 = arith.constant 0 : i32
    %c0_i32_1 = arith.constant 0 : i32
    return %arg0, %c0_i32, %c0_i32_0 : i32, i32, i32
  }
}

</mosaic_0001>

<bundles_post_ra>
// kernel: affine_layer_apply.9
= control target key start
LH: loop header
LB: loop body
LE: loop exit
PB: predicated region body
PF: predicated region fallthrough
CT: control target
= control target key end

     0   :  { %s518_s12 = smov 0   ;;  %s520_s13 = smov 0   ;;  %s609_s0 = inlined_call_operand.vmem [shape: f32[1,512], index: 0, kind: input, shape index: {}]   ;;  %s610_s1 = inlined_call_operand.vmem [shape: f32[32,1], index: 1, kind: input, shape index: {}]   ;;  %s611_s2 = inlined_call_operand.vmem [shape: f32[32,512], index: 2, kind: output, shape index: {0}]   ;;  %s612_s3 = inlined_call_operand.vmem [shape: f32[2,32,2], index: 3, kind: output, shape index: {1}]  }
   0x1   :  { %s522_s14 = smov 0  }
   0x2 LB: > { %s531_s15 = sadd.s32 4294967295, %s494_s14   ;;  %s533_s16 = sadd.s32 1, %s494_s14   ;;  %s494_s14 = sphi %s522_s14, %s616_s14   ;;  %s490_s13 = sphi %s520_s13, %s615_s13   ;;  %s486_s12 = sphi %s518_s12, %s614_s12  }
   0x3   : > { %s65_s17 = ssub.s32 %s494_s14, %s533_s16  ;;  %s68_s18 = sadd.s32 1, %s490_s13 }
   0x4   : > { %p66_p0 = scmp.eq.s32.totalorder %s65_s17, 0  ;;  %p78_p1 = scmp.ne.s32.totalorder %s490_s13, %s486_s12 }
   0x5   : > { %p79_p2 = scmp.eq.s32.totalorder %s531_s15, 1  ;;  %p432_p3 = scmp.ge.s32.totalorder %s494_s14, 1 }
   0x6   : > { %s541_s19 = scalar_select %p66_p0, %s490_s13, %s68_s18  }
   0x7   : > { %p543_p4 = por %p79_p2, %p78_p1  ;;  %p140_p5 = scmp.lt.s32.totalorder %s494_s14, 3 }
   0x9   : > { %p141_p6 = pnand %p432_p3, %p140_p5 }
   0xa   : > { %v208_v0 = vld [vmem:[%s610_s1 + $0x10] sm:$0xff] (!%p141_p6)  ;;  %v206_v1 = vld [vmem:[%s610_s1] sm:$0xff] (!%p141_p6)  ;;  %s434_s25 = sshll.u32 (!%p141_p6), %s531_s15, 1  ;;  %v178_v2 = vlaneseq (!%p141_p6)  ;;  %v496_v3 = vmov (!%p141_p6), 0   ;;  %v209_v5 = vld [vmem:[%s610_s1 + $0x18] sm:$0xff] (!%p141_p6)  ;;  %s497_s6 = smov (!%p141_p6), 1  }
   0xb   : > { %144 = sbr.rel (%p141_p6) target bundleno = 458 (0x1ca), region = 28  ;;  %471 = vset.pattern.permute.xlu1 (!%p141_p6), %v496_v3  ;;  %470 = vset.pattern.permute.xlu0 (!%p141_p6), %v496_v3  ;;  %p168_p7 = scmp.lt.s32.totalorder (!%p141_p6), %s434_s25, 3  ;;  %v207_v6 = vld [vmem:[%s610_s1 + $0x8] sm:$0xff] (!%p141_p6)  ;;  %vm199_vm0 = vcmask (!%p141_p6), 7168   ;;  %vm302_vm3 = vcmask (!%p141_p6), 15360  }
   0xc   : > { %222 = vperm.xlu1 (!%p141_p6), %471, %v208_v0   ;;  %212 = vperm.xlu0 (!%p141_p6), %470, %v206_v1   ;;  %v188_v4 = vshrl.u32 (!%p141_p6), %v178_v2, 7  ;;  %v179_v12 = vand.u32 (!%p141_p6), 127, %v178_v2  ;;  %s157_s7 = sand.u32 (!%p141_p6), 1, %s486_s12   ;;  %p173_p8 = scmp.lt.s32.totalorder (!%p141_p6), %s531_s15, 1 }
   0xd   : > { %s433_s8 = sshll.u32 (!%p141_p6), %s157_s7, 6 }
   0xe   : > { %v193_v7 = vsub.s32 (!%p141_p6), 1, %v188_v4  ;;  %v189_v8 = vsub.s32 (!%p141_p6), 0, %v188_v4  ;;  %v180_v13 = vadd.s32 (!%p141_p6), 128, %v179_v12  ;;  %vm183_vm1 = vcmp.ne.s32.totalorder (!%p141_p6), %v179_v12, 0  ;;  %s566_s9 = scalar_lea.vmem (!%p141_p6), [#allocation2], %s433_s8 }
  0x10   : > { %227 = vperm.xlu1 (!%p141_p6), %471, %v209_v5   ;;  %217 = vperm.xlu0 (!%p141_p6), %470, %v207_v6   ;;  %v182_v16 = vand.u32 (!%p141_p6), 127, %v180_v13 }
  0x12   : > { %s618_s25 = smov (!%p168_p7, %s434_s25), 3  ;;  %vm184_vm2 = vcmp.ne.s32.totalorder %v182_v16, 0  ;;  %s443_s18 = sshll.u32 (%p543_p4), %s531_s15, 4 }
  0x13   : > { %s170_s5 = scalar_lea.vmem %s609_s0, %s618_s25  ;;  %s321_s23 = scalar_lea.vmem (%p543_p4), %s611_s2, %s443_s18 }
  0x14   : > { %v185_v9 = vld [vmem:[%s170_s5] sm:$0x3]  ;;  %s174_s10 = scalar_select %p173_p8, %s531_s15, 1 }
  0x15   : > { %v194_v10 = vrot.slane %v185_v9, %v193_v7  ;;  %v190_v11 = vrot.slane %v185_v9, %v189_v8 }
  0x16   : > { %s442_s11 = sshll.u32 %s174_s10, 5 }
  0x17   : > { %197 = vrot.lane.b32.xlu1 %v194_v10, %s497_s6  ;;  %195 = vrot.lane.b32.xlu0 %v190_v11, %s497_s6  ;;  %s177_s17 = scalar_lea.vmem %s612_s3, %s442_s11 }
  0x8b   : > { %v223_v14 = vpop.permute.xlu1 %222  ;;  %v213_v15 = vpop.permute.xlu0 %212 }
  0x8f   : > { %v228_v17 = vpop.permute.xlu1 %227  ;;  %v218_v18 = vpop.permute.xlu0 %217 }
  0x93   : > { %v198_v19 = vpop.permute.xlu1 %197  ;;  %v196_v20 = vpop.permute.xlu0 %195 }
  0x94   : > { %v200_v21 = vsel %vm199_vm0, %v196_v20, %v198_v19  ;;  %v203_v22 = vsel %vm199_vm0, 0.0, %v196_v20 }
  0x95   : > { %v204_v23 = vsel %vm183_vm1, %v203_v22, 0.0  ;;  %v205_v24 = vsel %vm184_vm2, %v200_v21, 0.0 }
  0x96   : > { %v233_v25 = vrot.slane %v204_v23, %v189_v8  ;;  %v237_v26 = vrot.slane %v205_v24, %v189_v8 }
  0x98   : > { %v240_v27 = vmul.f32 %v233_v25, %v218_v18  ;;  %v241_v28 = vmul.f32 %v237_v26, %v218_v18  ;;  %v238_v29 = vmul.f32 %v233_v25, %v213_v15  ;;  %v239_v30 = vmul.f32 %v237_v26, %v213_v15 }
  0x99   : > { %v242_v31 = vmul.f32 %v233_v25, %v223_v14  ;;  %v243_v32 = vmul.f32 %v237_v26, %v223_v14  ;;  %v244_v33 = vmul.f32 %v233_v25, %v228_v17  ;;  %v245_v34 = vmul.f32 %v237_v26, %v228_v17 }
  0x9a   : > { %v257_v35 = vadd.f32 %v241_v28, %v240_v27  ;;  %248 = vst [vmem:[%s566_s9 + $0x10] sm:$0xff] %v240_v27  ;;  %249 = vst [vmem:[%s566_s9 + $0x18] sm:$0xff] %v241_v28  ;;  %v254_v36 = vadd.f32 %v239_v30, %v238_v29 }
  0x9b   : > { %246 = vst [vmem:[%s566_s9] sm:$0xff] %v238_v29  ;;  %247 = vst [vmem:[%s566_s9 + $0x8] sm:$0xff] %v239_v30  ;;  %v260_v37 = vadd.f32 %v243_v32, %v242_v31  ;;  %v263_v38 = vadd.f32 %v245_v34, %v244_v33 }
  0x9c   : > { %250 = vst [vmem:[%s566_s9 + $0x20] sm:$0xff] %v242_v31  ;;  %251 = vst [vmem:[%s566_s9 + $0x28] sm:$0xff] %v243_v32  ;;  %258 = vadd.xlane.f32.xlu1 %v257_v35  ;;  %255 = vadd.xlane.f32.xlu0 %v254_v36 }
  0x9d   : > { %252 = vst [vmem:[%s566_s9 + $0x30] sm:$0xff] %v244_v33  ;;  %253 = vst [vmem:[%s566_s9 + $0x38] sm:$0xff] %v245_v34 }
  0xa0   : > { %261 = vadd.xlane.f32.xlu0 %v260_v37 }
  0xa1   : > { %v338_v13 = vld [vmem:[%s566_s9 + $0x10] sm:$0xff] (%p543_p4)  ;;  %v340_v14 = vld [vmem:[%s566_s9 + $0x18] sm:$0xff] (%p543_p4) }
  0xa2   : > { %v334_v11 = vld [vmem:[%s566_s9] sm:$0xff] (%p543_p4)  ;;  %v336_v12 = vld [vmem:[%s566_s9 + $0x8] sm:$0xff] (%p543_p4)  ;;  %339 = vst [vmem:[%s321_s23 + $0x20] sm:$0xff] (%p543_p4), %v338_v13  ;;  %341 = vst [vmem:[%s321_s23 + $0x28] sm:$0xff] (%p543_p4), %v340_v14 }
  0xa3   : > { %v342_v15 = vld [vmem:[%s566_s9 + $0x20] sm:$0xff] (%p543_p4)  ;;  %v344_v16 = vld [vmem:[%s566_s9 + $0x28] sm:$0xff] (%p543_p4)  ;;  %335 = vst [vmem:[%s321_s23] sm:$0xff] (%p543_p4), %v334_v11  ;;  %337 = vst [vmem:[%s321_s23 + $0x8] sm:$0xff] (%p543_p4), %v336_v12 }
  0xa4   : > { %264 = vadd.xlane.f32.xlu0 %v263_v38  ;;  %343 = vst [vmem:[%s321_s23 + $0x40] sm:$0xff] (%p543_p4), %v342_v15  ;;  %345 = vst [vmem:[%s321_s23 + $0x48] sm:$0xff] (%p543_p4), %v344_v16  ;;  %v346_v17 = vld [vmem:[%s566_s9 + $0x30] sm:$0xff] (%p543_p4)  ;;  %v348_v18 = vld [vmem:[%s566_s9 + $0x38] sm:$0xff] (%p543_p4) }
  0xa5   : > { %347 = vst [vmem:[%s321_s23 + $0x60] sm:$0xff] (%p543_p4), %v346_v17  ;;  %349 = vst [vmem:[%s321_s23 + $0x68] sm:$0xff] (%p543_p4), %v348_v18 }
 0x129   : > { %v259_v39 = vpop.xlane.xlu1 %258  ;;  %v256_v40 = vpop.xlane.xlu0 %255 }
 0x12a   : > { %v267_v41 = vmul.f32 0.00390625, %v259_v39  ;;  %v266_v42 = vmul.f32 0.00390625, %v256_v40 }
 0x12c   : > { %v272_v43 = vsub.f32 %v240_v27, %v267_v41  ;;  %v273_v44 = vsub.f32 %v241_v28, %v267_v41  ;;  %v270_v45 = vsub.f32 %v238_v29, %v266_v42  ;;  %v271_v46 = vsub.f32 %v239_v30, %v266_v42 }
 0x12d   : > { %v262_v47 = vpop.xlane.xlu0 %261 }
 0x12e   : > { %v268_v48 = vmul.f32 0.00390625, %v262_v47  ;;  %v280_v49 = vmul.f32 %v272_v43, %v272_v43  ;;  %v281_v50 = vmul.f32 %v273_v44, %v273_v44  ;;  %v278_v51 = vmul.f32 %v270_v45, %v270_v45 }
 0x12f   : > { %v279_v52 = vmul.f32 %v271_v46, %v271_v46 }
 0x130   : > { %v274_v53 = vsub.f32 %v242_v31, %v268_v48  ;;  %v275_v54 = vsub.f32 %v243_v32, %v268_v48  ;;  %v289_v55 = vadd.f32 %v281_v50, %v280_v49 }
 0x131   : > { %v265_v56 = vpop.xlane.xlu0 %264  ;;  %v286_v57 = vadd.f32 %v279_v52, %v278_v51 }
 0x132   : > { %v269_v58 = vmul.f32 0.00390625, %v265_v56  ;;  %290 = vadd.xlane.f32.xlu0 %v289_v55  ;;  %v282_v59 = vmul.f32 %v274_v53, %v274_v53  ;;  %v283_v60 = vmul.f32 %v275_v54, %v275_v54 }
 0x133   : > { %287 = vadd.xlane.f32.xlu1 %v286_v57 }
 0x134   : > { %v276_v61 = vsub.f32 %v244_v33, %v269_v58  ;;  %v277_v62 = vsub.f32 %v245_v34, %v269_v58  ;;  %v292_v63 = vadd.f32 %v283_v60, %v282_v59 }
 0x136   : > { %v284_v0 = vmul.f32 %v276_v61, %v276_v61  ;;  %v285_v1 = vmul.f32 %v277_v62, %v277_v62 }
 0x137   : > { %293 = vadd.xlane.f32.xlu1 %v292_v63 }
 0x138   : > { %v295_v2 = vadd.f32 %v285_v1, %v284_v0 }
 0x13a   : > { %296 = vadd.xlane.f32.xlu0 %v295_v2 }
 0x1bf   : > { %v291_v3 = vpop.xlane.xlu0 %290 }
 0x1c0   : > { %v288_v4 = vpop.xlane.xlu1 %287  ;;  %v299_v5 = vsel %vm199_vm0, %v259_v39, %v291_v3 }
 0x1c1   : > { %v298_v6 = vsel %vm199_vm0, %v256_v40, %v288_v4  ;;  %304 = vst.msk [vmem:[%s177_s17 + $0x8] sm:$0xff] %vm302_vm3, %v299_v5 }
 0x1c2   : > { %303 = vst.msk [vmem:[%s177_s17] sm:$0xff] %vm302_vm3, %v298_v6 }
 0x1c3   : > { %318 = sbr.rel (!%p543_p4) target bundleno = 458 (0x1ca), region = 32 }
 0x1c4   : > { %v294_v7 = vpop.xlane.xlu1 %293 }
 0x1c5   : > { %v300_v8 = vsel %vm199_vm0, %v262_v47, %v294_v7 }
 0x1c6   : > { %305 = vst.msk [vmem:[%s177_s17 + $0x10] sm:$0xff] %vm302_vm3, %v300_v8 }
 0x1c7   : > { %v297_v9 = vpop.xlane.xlu0 %296 }
 0x1c8   : > { %v301_v10 = vsel %vm199_vm0, %v265_v56, %v297_v9 }
 0x1c9   : > { %306 = vst.msk [vmem:[%s177_s17 + $0x18] sm:$0xff] %vm302_vm3, %v301_v10 }
 0x1ca PF: > { %p11_p9 = scmp.ge.s32.totalorder %s533_s16, 4   ;;  %s614_s12 = smov %s490_s13 }
 0x1cb   : > { %s615_s13 = smov %s541_s19  ;;  %s616_s14 = smov %s533_s16 }
 0x1cc   :  { %13 = sbr.rel (!%p11_p9) target bundleno = 2 (0x2), region = 93 }

// kernel: affine_layer_apply.10
= control target key start
LH: loop header
LB: loop body
LE: loop exit
PB: predicated region body
PF: predicated region fallthrough
CT: control target
= control target key end

     0   :  { %s934_s18 = smov 0   ;;  %s936_s19 = smov 0   ;;  %s1123_s0 = inlined_call_operand.vmem [shape: f32[32,512], index: 0, kind: input, shape index: {}]   ;;  %s1124_s1 = inlined_call_operand.vmem [shape: f32[32,3], index: 1, kind: input, shape index: {}]   ;;  %s1125_s2 = inlined_call_operand.vmem [shape: f32[1,512], index: 2, kind: input, shape index: {}]   ;;  %s1126_s3 = inlined_call_operand.vmem [shape: bf16[32,65], index: 3, kind: input, shape index: {}]   ;;  %s1127_s4 = inlined_call_operand.vmem [shape: f32[32,512], index: 4, kind: output, shape index: {0}]   ;;  %s1128_s5 = inlined_call_operand.vmem [shape: f32[2,32,2], index: 5, kind: output, shape index: {1}]  }
   0x1   :  { %s938_s20 = smov 0  }
   0x2 LB: > { %s950_s21 = sadd.s32 4294967295, %s898_s20   ;;  %s953_s22 = sadd.s32 1, %s898_s20   ;;  %s898_s20 = sphi %s938_s20, %s1138_s20   ;;  %s894_s19 = sphi %s936_s19, %s1137_s19   ;;  %s890_s18 = sphi %s934_s18, %s1136_s18  }
   0x3   : > { %s20_s23 = ssub.s32 %s898_s20, %s953_s22  ;;  %s23_s24 = sadd.s32 1, %s894_s19 }
   0x4   : > { %p21_p0 = scmp.eq.s32.totalorder %s20_s23, 0  ;;  %p30_p1 = scmp.ne.s32.totalorder %s894_s19, %s890_s18 }
   0x5   : > { %p31_p2 = scmp.eq.s32.totalorder %s898_s20, 0  ;;  %p128_p3 = scmp.eq.s32.totalorder %s950_s21, 1 }
   0x6   : > { %s963_s25 = scalar_select %p21_p0, %s894_s19, %s23_s24  }
   0x7   : > { %p32_p4 = por %p31_p2, %p30_p1  ;;  %p965_p5 = por %p128_p3, %p30_p1 }
   0x8   : > { %p768_p6 = scmp.ge.s32.totalorder %s898_s20, 2 }
   0xa   : > { %182 = sbr.rel (%p768_p6) target bundleno = 25 (0x19), region = 24 }
  0x11   : > { %185 = sbr.rel (!%p32_p4) target bundleno = 25 (0x19), region = 28  ;;  %s187_s27 = sand.u32 (%p32_p4), 1, %s894_s19  }
  0x12   : > { %s799_s28 = sshll.u32 (%p32_p4), %s898_s20, 4  ;;  %s769_s29 = sshll.u32 (%p32_p4), %s187_s27, 6 }
  0x13   : > { %s192_s7 = scalar_lea.vmem (%p32_p4), %s1123_s0, %s799_s28  ;;  %s189_s8 = scalar_lea.vmem (%p32_p4), [#allocation2], %s769_s29 }
  0x14   : > { %v205_v0 = vld [vmem:[%s192_s7] sm:$0xff] (%p32_p4)  ;;  %v207_v1 = vld [vmem:[%s192_s7 + $0x8] sm:$0xff] (%p32_p4) }
  0x15   : > { %v209_v2 = vld [vmem:[%s192_s7 + $0x20] sm:$0xff] (%p32_p4)  ;;  %206 = vst [vmem:[%s189_s8] sm:$0xff] (%p32_p4), %v205_v0  ;;  %208 = vst [vmem:[%s189_s8 + $0x8] sm:$0xff] (%p32_p4), %v207_v1  ;;  %v211_v3 = vld [vmem:[%s192_s7 + $0x28] sm:$0xff] (%p32_p4) }
  0x16   : > { %210 = vst [vmem:[%s189_s8 + $0x10] sm:$0xff] (%p32_p4), %v209_v2  ;;  %v213_v4 = vld [vmem:[%s192_s7 + $0x40] sm:$0xff] (%p32_p4)  ;;  %v215_v5 = vld [vmem:[%s192_s7 + $0x48] sm:$0xff] (%p32_p4)  ;;  %212 = vst [vmem:[%s189_s8 + $0x18] sm:$0xff] (%p32_p4), %v211_v3 }
  0x17   : > { %214 = vst [vmem:[%s189_s8 + $0x20] sm:$0xff] (%p32_p4), %v213_v4  ;;  %216 = vst [vmem:[%s189_s8 + $0x28] sm:$0xff] (%p32_p4), %v215_v5  ;;  %v217_v6 = vld [vmem:[%s192_s7 + $0x60] sm:$0xff] (%p32_p4)  ;;  %v219_v7 = vld [vmem:[%s192_s7 + $0x68] sm:$0xff] (%p32_p4) }
  0x18   : > { %218 = vst [vmem:[%s189_s8 + $0x30] sm:$0xff] %v217_v6  ;;  %220 = vst [vmem:[%s189_s8 + $0x38] sm:$0xff] %v219_v7 }
  0x19 PF: > { %p772_p7 = scmp.ge.s32.totalorder %s898_s20, 1  ;;  %p233_p8 = scmp.lt.s32.totalorder %s898_s20, 3 }
  0x1b   : > { %p234_p9 = pnand %p772_p7, %p233_p8 }
  0x1c   : > { %v303_v8 = vld [vmem:[%s1124_s1] sm:$0xff] (!%p234_p9)  ;;  %v900_v9 = vmov (!%p234_p9), 1   ;;  %v901_v10 = vmov (!%p234_p9), 0   ;;  %v304_v11 = vld [vmem:[%s1124_s1 + $0x8] sm:$0xff] (!%p234_p9)  ;;  %v305_v12 = vld [vmem:[%s1124_s1 + $0x10] sm:$0xff] (!%p234_p9)  ;;  %v902_v14 = vmov (!%p234_p9), 2   ;;  %v288_v34 = vlaneseq (!%p234_p9) }
  0x1d   : > { %237 = sbr.rel (%p234_p9) target bundleno = 843 (0x34b), region = 55  ;;  %841 = vset.pattern.permute.xlu1 (!%p234_p9), %v900_v9  ;;  %840 = vset.pattern.permute.xlu0 (!%p234_p9), %v901_v10  ;;  %v306_v13 = vld [vmem:[%s1124_s1 + $0x18] sm:$0xff] (!%p234_p9)  ;;  %s240_s17 = sand.u32 (!%p234_p9), 1, %s890_s18   ;;  %vm423_vm8 = vcmask (!%p234_p9), 7168   ;;  %vm503_vm13 = vcmask (!%p234_p9), 1040384   ;;  %vm496_vm14 = vcmask (!%p234_p9), 531456  }
  0x1e   : > { %336 = vperm.xlu1 (!%p234_p9), %841, %v303_v8   ;;  %309 = vperm.xlu0 (!%p234_p9), %840, %v303_v8   ;;  %s994_s20 = sshll.u32 (!%p234_p9), %s240_s17, 6  ;;  %s775_s18 = sshll.u32 (!%p234_p9), %s950_s21, 1  ;;  %v455_v47 = vshrl.u32 (!%p234_p9), %v288_v34, 7  ;;  %vm621_vm15 = vcmask (!%p234_p9), 15360  }
  0x1f   : > { %544 = vmatprep.mubr.bf16.mxu0 (!%p234_p9), %v901_v10  ;;  %554 = vmatprep.mubr.bf16.mxu1 (!%p234_p9), %v901_v10  ;;  %s997_s23 = scalar_lea.vmem (!%p234_p9), [#allocation2], %s994_s20  ;;  %p277_p10 = scmp.lt.s32.totalorder (!%p234_p9), %s775_s18, 3 }
  0x20   : > { %v295_v17 = vld [vmem:[%s997_s23] sm:$0xff] (!%p234_p9)  ;;  %v296_v18 = vld [vmem:[%s997_s23 + $0x8] sm:$0xff] (!%p234_p9)  ;;  %v297_v21 = vld [vmem:[%s997_s23 + $0x10] sm:$0xff] (!%p234_p9)  ;;  %s903_s24 = smov (!%p234_p9), 1   ;;  %v456_v56 = vsub.s32 (!%p234_p9), 0, %v455_v47  ;;  %v460_v57 = vsub.s32 (!%p234_p9), 1, %v455_v47 }
  0x21   : > { %v298_v22 = vld [vmem:[%s997_s23 + $0x18] sm:$0xff] (!%p234_p9)  ;;  %v299_v42 = vld [vmem:[%s997_s23 + $0x20] sm:$0xff] (!%p234_p9)  ;;  %v300_v43 = vld [vmem:[%s997_s23 + $0x28] sm:$0xff] (!%p234_p9)  ;;  %s1080_s9 = scalar_lea.vmem (!%p234_p9), [#allocation3], %s994_s20  ;;  %p282_p11 = scmp.lt.s32.totalorder (!%p234_p9), %s950_s21, 1 }
  0x22   : > { %340 = vperm.xlu1 (!%p234_p9), %841, %v304_v11   ;;  %314 = vperm.xlu0 (!%p234_p9), %840, %v304_v11   ;;  %v301_v54 = vld [vmem:[%s997_s23 + $0x30] sm:$0xff] (!%p234_p9)  ;;  %v302_v55 = vld [vmem:[%s997_s23 + $0x38] sm:$0xff] (!%p234_p9) }
  0x24   : > { %s1140_s18 = smov (!%p277_p10, %s775_s18), 3  ;;  %s801_s15 = sshll.u32 (%p965_p5), %s950_s21, 4 }
  0x25   : > { %s279_s29 = scalar_lea.vmem %s1125_s2, %s1140_s18  ;;  %s640_s20 = scalar_lea.vmem (%p965_p5), %s1127_s4, %s801_s15 }
  0x26   : > { %842 = vset.pattern.permute.xlu1 %v901_v10  ;;  %319 = vperm.xlu0 %840, %v305_v12   ;;  %v452_v60 = vld [vmem:[%s279_s29] sm:$0x3]  ;;  %s283_s10 = scalar_select %p282_p11, %s950_s21, 1 }
  0x27   : > { %324 = vperm.xlu1 %842, %v306_v13   ;;  %v457_v3 = vrot.slane %v452_v60, %v456_v56  ;;  %v461_v4 = vrot.slane %v452_v60, %v460_v57  ;;  %v505_v60 = vsel %vm503_vm13, 65535, %v901_v10  ;;  %v875_v10 = vld [vmem:[%s1126_s3 + $0x8] sm:$0xff]  }
  0x28   : > { %s800_s11 = sshll.u32 %s283_s10, 5 }
  0x29   : > { %s286_s14 = scalar_lea.vmem %s1128_s5, %s800_s11 }
  0x2a   : > { %843 = vset.pattern.permute.xlu0 %v902_v14 }
  0x2b   : > { %844 = vset.pattern.permute.xlu1 %v902_v14  ;;  %368 = vperm.xlu0 %843, %v303_v8  }
  0x2c   : > { %372 = vperm.xlu1 %844, %v304_v11  }
  0x2f   : > { %846 = vset.pattern.permute.xlu0 %v900_v9 }
  0x30   : > { %845 = vset.pattern.permute.xlu1 %v900_v9  ;;  %348 = vperm.xlu0 %846, %v306_v13  }
  0x31   : > { %344 = vperm.xlu1 %845, %v305_v12  }
  0x34   : > { %873 = vset.pattern.permute.xlu0 %v902_v14 }
  0x35   : > { %847 = vset.pattern.permute.xlu1 %v902_v14  ;;  %v868_v14 = vpack.i.bf16 %v461_v4, %v457_v3 }
  0x36   : > { %376 = vperm.xlu1 %847, %v305_v12  }
  0x3a   : > { %380 = vperm.xlu1 %847, %v306_v13  }
  0x9d   : > { %v337_v15 = vpop.permute.xlu1 %336  ;;  %v310_v16 = vpop.permute.xlu0 %309 }
  0x9e   : > { %v327_v23 = vmul.f32 %v310_v16, %v295_v17  ;;  %v328_v24 = vmul.f32 %v310_v16, %v296_v18 }
  0xa0   : > { %v351_v29 = vadd.f32 %v337_v15, %v327_v23  ;;  %v352_v30 = vadd.f32 %v337_v15, %v328_v24 }
  0xa1   : > { %v341_v19 = vpop.permute.xlu1 %340  ;;  %v315_v20 = vpop.permute.xlu0 %314 }
  0xa2   : > { %v329_v25 = vmul.f32 %v315_v20, %v297_v21  ;;  %v330_v26 = vmul.f32 %v315_v20, %v298_v22  ;;  %vm359_vm0 = vcmp.ge.f32.partialorder %v351_v29, 0.0  ;;  %vm360_vm1 = vcmp.ge.f32.partialorder %v352_v30, 0.0 }
  0xa3   : > { %v289_v20 = vand.u32 127, %v288_v34 }
  0xa4   : > { %v353_v31 = vadd.f32 %v341_v19, %v329_v25  ;;  %v354_v32 = vadd.f32 %v341_v19, %v330_v26 }
  0xa5   : > { %v320_v27 = vpop.permute.xlu0 %319  ;;  %v290_v21 = vadd.s32 128, %v289_v20  ;;  %vm293_vm10 = vcmp.ne.s32.totalorder %v289_v20, 0 }
  0xa6   : > { %v325_v28 = vpop.permute.xlu1 %324  ;;  %vm361_vm2 = vcmp.ge.f32.partialorder %v353_v31, 0.0  ;;  %vm362_vm3 = vcmp.ge.f32.partialorder %v354_v32, 0.0  ;;  %v331_v52 = vmul.f32 %v320_v27, %v299_v42  ;;  %v332_v53 = vmul.f32 %v320_v27, %v300_v43  ;;  %vm1039_vm12 = vmpackc.low %vm293_vm10, %vm293_vm10 }
  0xa7   : > { %v333_v62 = vmul.f32 %v325_v28, %v301_v54  ;;  %v334_v63 = vmul.f32 %v325_v28, %v302_v55  ;;  %v292_v22 = vand.u32 127, %v290_v21 }
  0xa9   : > { %vm1022_vm9 = vcmp.ne.s32.totalorder %v292_v22, 0 }
  0xaa   : > { %v369_v33 = vpop.permute.xlu0 %368  ;;  %vm1033_vm11 = vmpackc.low %vm1022_vm9, %vm1022_vm9 }
  0xab   : > { %v383_v35 = vmul.f32 %v369_v33, %v351_v29  ;;  %v384_v36 = vmul.f32 %v369_v33, %v352_v30  ;;  %v373_v37 = vpop.permute.xlu1 %372 }
  0xac   : > { %v385_v38 = vmul.f32 %v373_v37, %v353_v31  ;;  %v386_v39 = vmul.f32 %v373_v37, %v354_v32 }
  0xad   : > { %v391_v40 = vsel %vm359_vm0, %v351_v29, %v383_v35  ;;  %v392_v41 = vsel %vm360_vm1, %v352_v30, %v384_v36 }
  0xae   : > { %v848_v44 = vpack.i.bf16 %v392_v41, %v391_v40  ;;  %v393_v45 = vsel %vm361_vm2, %v353_v31, %v385_v38  ;;  %v394_v46 = vsel %vm362_vm3, %v354_v32, %v386_v39 }
  0xaf   : > { %v853_v48 = vpack.i.bf16 %v394_v46, %v393_v45  ;;  %v1007_v49 = vpack.c.bf16 %v394_v46, %v392_v41  ;;  %v1009_v50 = vpack.c.bf16 %v393_v45, %v391_v40  ;;  %v349_v61 = vpop.permute.xlu0 %348 }
  0xb0   : > { %v345_v51 = vpop.permute.xlu1 %344  ;;  %849 = vrot.lane.b32.xlu0 %v848_v44, %s903_s24  ;;  %v357_v5 = vadd.f32 %v349_v61, %v333_v62  ;;  %v358_v6 = vadd.f32 %v349_v61, %v334_v63 }
  0xb1   : > { %854 = vrot.lane.b32.xlu1 %v853_v48, %s903_s24  ;;  %v355_v58 = vadd.f32 %v345_v51, %v331_v52  ;;  %v356_v59 = vadd.f32 %v345_v51, %v332_v53 }
  0xb2   : > { %vm365_vm6 = vcmp.ge.f32.partialorder %v357_v5, 0.0  ;;  %vm366_vm7 = vcmp.ge.f32.partialorder %v358_v6, 0.0 }
  0xb3   : > { %vm363_vm4 = vcmp.ge.f32.partialorder %v355_v58, 0.0  ;;  %vm364_vm5 = vcmp.ge.f32.partialorder %v356_v59, 0.0 }
  0xb5   : > { %v377_v0 = vpop.permute.xlu1 %376 }
  0xb6   : > { %v387_v1 = vmul.f32 %v377_v0, %v355_v58  ;;  %v388_v2 = vmul.f32 %v377_v0, %v356_v59 }
  0xb8   : > { %v395_v7 = vsel %vm363_vm4, %v355_v58, %v387_v1  ;;  %v396_v8 = vsel %vm364_vm5, %v356_v59, %v388_v2 }
  0xb9   : > { %v381_v9 = vpop.permute.xlu1 %380  ;;  %v858_v11 = vpack.i.bf16 %v396_v8, %v395_v7 }
  0xba   : > { %v389_v12 = vmul.f32 %v381_v9, %v357_v5  ;;  %v390_v13 = vmul.f32 %v381_v9, %v358_v6 }
  0xbb   : > { %859 = vrot.lane.b32.xlu0 %v858_v11, %s903_s24 }
  0xbc   : > { %v397_v15 = vsel %vm365_vm6, %v357_v5, %v389_v12  ;;  %v398_v16 = vsel %vm366_vm7, %v358_v6, %v390_v13 }
  0xbd   : > { %v863_v17 = vpack.i.bf16 %v398_v16, %v397_v15  ;;  %v483_v18 = vpack.c.bf16 %v398_v16, %v396_v8  ;;  %v482_v19 = vpack.c.bf16 %v397_v15, %v395_v7 }
  0xbf   : > { %864 = vrot.lane.b32.xlu1 %v863_v17, %s903_s24  ;;  %869 = vrot.lane.b32.xlu0 %v868_v14, %s903_s24 }
 0x122   : > { %v850_v23 = vpop.permute.xlu0 %849 }
 0x123   : > { %v852_v24 = vunpack.i.h.bf16 %v850_v23  ;;  %v851_v25 = vunpack.i.l.bf16 %v850_v23  ;;  %v855_v26 = vpop.permute.xlu1 %854 }
 0x124   : > { %v857_v28 = vunpack.i.h.bf16 %v855_v26  ;;  %v856_v29 = vunpack.i.l.bf16 %v855_v26 }
 0x125   : > { %v436_v30 = vsel %vm423_vm8, 0.0, %v851_v25  ;;  %v424_v31 = vsel %vm423_vm8, %v851_v25, %v852_v24 }
 0x126   : > { %v437_v32 = vsel %vm423_vm8, 0.0, %v856_v29  ;;  %v425_v33 = vsel %vm423_vm8, %v856_v29, %v857_v28 }
 0x127   : > { %v781_v35 = vpack.c.bf16 %v425_v33, %v424_v31  ;;  %v784_v37 = vpack.c.bf16 %v437_v32, %v436_v30 }
 0x129   : > { %782 = vmatprep.subr.msk.bf16.mxu0 %vm1033_vm11, %v781_v35  ;;  %802 = vmatprep.subr.msk.bf16.mxu1 %vm1033_vm11, %v781_v35 }
 0x12a   : > { %785 = vmatpush1.bf16.msk.msra.mxu0 %vm1039_vm12, %v784_v37  ;;  %807 = vmatpush1.bf16.msk.msra.mxu1 %vm1039_vm12, %v784_v37 }
 0x12d   : > { %v860_v38 = vpop.permute.xlu0 %859 }
 0x12e   : > { %v862_v39 = vunpack.i.h.bf16 %v860_v38  ;;  %v861_v40 = vunpack.i.l.bf16 %v860_v38 }
 0x130   : > { %v426_v47 = vsel %vm423_vm8, %v861_v40, %v862_v39  ;;  %v438_v48 = vsel %vm423_vm8, 0.0, %v861_v40 }
 0x131   : > { %v865_v41 = vpop.permute.xlu1 %864  ;;  %v870_v42 = vpop.permute.xlu0 %869 }
 0x132   : > { %v867_v43 = vunpack.i.h.bf16 %v865_v41  ;;  %v866_v44 = vunpack.i.l.bf16 %v865_v41  ;;  %v872_v45 = vunpack.i.h.bf16 %v870_v42  ;;  %v871_v46 = vunpack.i.l.bf16 %v870_v42 }
 0x134   : > { %v427_v51 = vsel %vm423_vm8, %v866_v44, %v867_v43  ;;  %v439_v52 = vsel %vm423_vm8, 0.0, %v866_v44  ;;  %v466_v53 = vsel %vm423_vm8, %v871_v46, %v872_v45  ;;  %v469_v56 = vsel %vm423_vm8, 0.0, %v871_v46 }
 0x135   : > { %v787_v54 = vpack.c.bf16 %v427_v51, %v426_v47  ;;  %v790_v55 = vpack.c.bf16 %v439_v52, %v438_v48  ;;  %v471_v57 = vsel %vm1022_vm9, %v466_v53, 0.0  ;;  %v470_v58 = vsel %vm293_vm10, %v469_v56, 0.0 }
 0x136   : > { %v485_v59 = vpack.c.bf16 %v471_v57, %v471_v57  ;;  %v484_v61 = vpack.c.bf16 %v470_v58, %v470_v58 }
 0x137   : > { %788 = vmatprep.subr.msk.bf16.mxu0 %vm1033_vm11, %v787_v54  ;;  %803 = vmatprep.subr.msk.bf16.mxu1 %vm1033_vm11, %v787_v54 }
 0x138   : > { %791 = vmatpush1.bf16.msk.msra.mxu0 %vm1039_vm12, %v790_v55  ;;  %808 = vmatpush1.bf16.msk.msra.mxu1 %vm1039_vm12, %v790_v55  ;;  %v510_v62 = vand.u32 %v505_v60, %v485_v59  ;;  %v507_v63 = vand.u32 %v505_v60, %v484_v61 }
 0x139   : > { %516 = vmatprep.subr.bf16.mxu0 %v1007_v49  ;;  %804 = vmatprep.subr.bf16.mxu1 %v1007_v49  ;;  %v874_v49 = vld [vmem:[%s1126_s3] sm:$0xff]  }
 0x13c   : > { %517 = vmatpush1.bf16.msra.mxu0 %v1009_v50  ;;  %809 = vmatpush1.bf16.msra.mxu1 %v1009_v50 }
 0x13d   : > { %518 = vmatprep.subr.bf16.mxu0 %v483_v18  ;;  %805 = vmatprep.subr.bf16.mxu1 %v483_v18 }
 0x140   : > { %519 = vmatpush1.bf16.msra.mxu0 %v482_v19  ;;  %810 = vmatpush1.bf16.msra.mxu1 %v482_v19 }
 0x141   : > { %520 = vmatprep.subr.bf16.mxu0 %v510_v62  ;;  %806 = vmatprep.subr.bf16.mxu1 %v510_v62 }
 0x144   : > { %521 = vmatpush1.bf16.msra.mxu0 %v507_v63  ;;  %811 = vmatpush1.bf16.msra.mxu1 %v507_v63 }
 0x147   : > { %792 = vmatmul.mubr.msk.bf16.vlgmr.msra.gmra.mrb[0].mxu0 %vm496_vm14, %v874_v49  ;;  %793 = vmatmul.mubr.msk.bf16.vlgmr.msra.gmra.mrb[0].mxu1 %vm496_vm14, %v875_v10 }
 0x21a   : > { %v546_v50 = vpop.f32.mrb[0].mxu0  ;;  %v556_v0 = vpop.f32.mrb[0].mxu1 }
 0x21b   : > { %565 = vst [vmem:[%s1080_s9] sm:$0xff] %v546_v50  ;;  %v548_v1 = vpop.f32.mrb[1].mxu0  ;;  %569 = vst [vmem:[%s1080_s9 + $0x20] sm:$0xff] %v556_v0  ;;  %v558_v2 = vpop.f32.mrb[1].mxu1 }
 0x21c   : > { %566 = vst [vmem:[%s1080_s9 + $0x8] sm:$0xff] %v548_v1  ;;  %v550_v3 = vpop.f32.mrb[2].mxu0  ;;  %570 = vst [vmem:[%s1080_s9 + $0x28] sm:$0xff] %v558_v2  ;;  %v560_v4 = vpop.f32.mrb[2].mxu1  ;;  %v573_v5 = vadd.f32 %v548_v1, %v546_v50  ;;  %v579_v6 = vadd.f32 %v558_v2, %v556_v0 }
 0x21d   : > { %567 = vst [vmem:[%s1080_s9 + $0x10] sm:$0xff] %v550_v3  ;;  %v552_v7 = vpop.f32.mrb[3].mxu0  ;;  %571 = vst [vmem:[%s1080_s9 + $0x30] sm:$0xff] %v560_v4  ;;  %v562_v8 = vpop.f32.mrb[3].mxu1 }
 0x21e   : > { %568 = vst [vmem:[%s1080_s9 + $0x18] sm:$0xff] %v552_v7  ;;  %572 = vst [vmem:[%s1080_s9 + $0x38] sm:$0xff] %v562_v8  ;;  %574 = vadd.xlane.f32.xlu1 %v573_v5  ;;  %v576_v9 = vadd.f32 %v552_v7, %v550_v3  ;;  %v582_v11 = vadd.f32 %v562_v8, %v560_v4 }
 0x220   : > { %577 = vadd.xlane.f32.xlu0 %v576_v9 }
 0x222   : > { %583 = vadd.xlane.f32.xlu1 %v582_v11  ;;  %v653_v48 = vld [vmem:[%s1080_s9] sm:$0xff] (%p965_p5) }
 0x223   : > { %v655_v51 = vld [vmem:[%s1080_s9 + $0x8] sm:$0xff] (%p965_p5)  ;;  %v661_v54 = vld [vmem:[%s1080_s9 + $0x20] sm:$0xff] (%p965_p5)  ;;  %654 = vst [vmem:[%s640_s20] sm:$0xff] (%p965_p5), %v653_v48 }
 0x224   : > { %580 = vadd.xlane.f32.xlu0 %v579_v6  ;;  %v657_v52 = vld [vmem:[%s1080_s9 + $0x10] sm:$0xff] (%p965_p5)  ;;  %v663_v55 = vld [vmem:[%s1080_s9 + $0x28] sm:$0xff] (%p965_p5)  ;;  %656 = vst [vmem:[%s640_s20 + $0x8] sm:$0xff] (%p965_p5), %v655_v51  ;;  %662 = vst [vmem:[%s640_s20 + $0x40] sm:$0xff] (%p965_p5), %v661_v54 }
 0x225   : > { %v659_v53 = vld [vmem:[%s1080_s9 + $0x18] sm:$0xff] (%p965_p5)  ;;  %658 = vst [vmem:[%s640_s20 + $0x20] sm:$0xff] (%p965_p5), %v657_v52  ;;  %664 = vst [vmem:[%s640_s20 + $0x48] sm:$0xff] (%p965_p5), %v663_v55  ;;  %v665_v56 = vld [vmem:[%s1080_s9 + $0x30] sm:$0xff] (%p965_p5) }
 0x226   : > { %660 = vst [vmem:[%s640_s20 + $0x28] sm:$0xff] (%p965_p5), %v659_v53  ;;  %v667_v57 = vld [vmem:[%s1080_s9 + $0x38] sm:$0xff] (%p965_p5)  ;;  %666 = vst [vmem:[%s640_s20 + $0x60] sm:$0xff] (%p965_p5), %v665_v56 }
 0x227   : > { %668 = vst [vmem:[%s640_s20 + $0x68] sm:$0xff] (%p965_p5), %v667_v57 }
 0x2ab   : > { %v575_v12 = vpop.xlane.xlu1 %574 }
 0x2ac   : > { %v585_v13 = vmul.f32 0.00390625, %v575_v12 }
 0x2ad   : > { %v578_v14 = vpop.xlane.xlu0 %577 }
 0x2ae   : > { %v589_v15 = vsub.f32 %v546_v50, %v585_v13  ;;  %v590_v16 = vsub.f32 %v548_v1, %v585_v13  ;;  %v586_v17 = vmul.f32 0.00390625, %v578_v14 }
 0x2af   : > { %v584_v18 = vpop.xlane.xlu1 %583 }
 0x2b0   : > { %v591_v19 = vsub.f32 %v550_v3, %v586_v17  ;;  %v592_v20 = vsub.f32 %v552_v7, %v586_v17  ;;  %v588_v21 = vmul.f32 0.00390625, %v584_v18  ;;  %v597_v22 = vmul.f32 %v589_v15, %v589_v15 }
 0x2b1   : > { %v581_v23 = vpop.xlane.xlu0 %580  ;;  %v598_v24 = vmul.f32 %v590_v16, %v590_v16 }
 0x2b2   : > { %v595_v25 = vsub.f32 %v560_v4, %v588_v21  ;;  %v596_v26 = vsub.f32 %v562_v8, %v588_v21  ;;  %v587_v27 = vmul.f32 0.00390625, %v581_v23  ;;  %v599_v28 = vmul.f32 %v591_v19, %v591_v19 }
 0x2b3   : > { %v605_v29 = vadd.f32 %v598_v24, %v597_v22  ;;  %v600_v30 = vmul.f32 %v592_v20, %v592_v20 }
 0x2b4   : > { %v593_v31 = vsub.f32 %v556_v0, %v587_v27  ;;  %v594_v32 = vsub.f32 %v558_v2, %v587_v27  ;;  %v603_v33 = vmul.f32 %v595_v25, %v595_v25  ;;  %v604_v34 = vmul.f32 %v596_v26, %v596_v26 }
 0x2b5   : > { %606 = vadd.xlane.f32.xlu0 %v605_v29  ;;  %v608_v35 = vadd.f32 %v600_v30, %v599_v28 }
 0x2b6   : > { %v614_v36 = vadd.f32 %v604_v34, %v603_v33  ;;  %v601_v37 = vmul.f32 %v593_v31, %v593_v31  ;;  %v602_v38 = vmul.f32 %v594_v32, %v594_v32 }
 0x2b7   : > { %609 = vadd.xlane.f32.xlu1 %v608_v35 }
 0x2b8   : > { %v611_v39 = vadd.f32 %v602_v38, %v601_v37 }
 0x2ba   : > { %612 = vadd.xlane.f32.xlu0 %v611_v39 }
 0x2bb   : > { %615 = vadd.xlane.f32.xlu1 %v614_v36 }
 0x342   : > { %v607_v40 = vpop.xlane.xlu0 %606 }
 0x343   : > { %v617_v41 = vsel %vm423_vm8, %v575_v12, %v607_v40 }
 0x344   : > { %622 = vst.msk [vmem:[%s286_s14] sm:$0xff] %vm621_vm15, %v617_v41  ;;  %v610_v42 = vpop.xlane.xlu1 %609  ;;  %637 = sbr.rel (!%p965_p5) target bundleno = 843 (0x34b), region = 63 }
 0x345   : > { %v618_v43 = vsel %vm423_vm8, %v578_v14, %v610_v42 }
 0x346   : > { %623 = vst.msk [vmem:[%s286_s14 + $0x8] sm:$0xff] %vm621_vm15, %v618_v43 }
 0x347   : > { %v613_v44 = vpop.xlane.xlu0 %612 }
 0x348   : > { %v616_v45 = vpop.xlane.xlu1 %615  ;;  %v619_v46 = vsel %vm423_vm8, %v581_v23, %v613_v44 }
 0x349   : > { %v620_v47 = vsel %vm423_vm8, %v584_v18, %v616_v45  ;;  %624 = vst.msk [vmem:[%s286_s14 + $0x10] sm:$0xff] %vm621_vm15, %v619_v46 }
 0x34a   : > { %625 = vst.msk [vmem:[%s286_s14 + $0x18] sm:$0xff] %vm621_vm15, %v620_v47 }
 0x34b PF: > { %p13_p12 = scmp.ge.s32.totalorder %s953_s22, 4   ;;  %s1136_s18 = smov %s894_s19 }
 0x34c   : > { %s1137_s19 = smov %s963_s25  ;;  %s1138_s20 = smov %s953_s22 }
 0x34d   :  { %15 = sbr.rel (!%p13_p12) target bundleno = 2 (0x2), region = 132 }

// kernel: affine_layer_apply.7
= control target key start
LH: loop header
LB: loop body
LE: loop exit
PB: predicated region body
PF: predicated region fallthrough
CT: control target
= control target key end

     0   :  { %s945_s15 = smov 0   ;;  %s947_s16 = smov 0   ;;  %s1205_s0 = inlined_call_operand.vmem [shape: f32[3,512], index: 0, kind: input, shape index: {}]   ;;  %s1206_s1 = inlined_call_operand.vmem [shape: bf16[32,9], index: 1, kind: input, shape index: {}]   ;;  %s1207_s2 = inlined_call_operand.vmem [shape: bf16[32,105], index: 2, kind: input, shape index: {}]   ;;  %s1208_s3 = inlined_call_operand.vmem [shape: f32[32,4], index: 3, kind: input, shape index: {}]   ;;  %s1209_s4 = inlined_call_operand.vmem [shape: f32[32,512], index: 4, kind: output, shape index: {}]  }
   0x1   :  { %s949_s17 = smov 0  }
   0x2 LB: > { %s958_s18 = sadd.s32 4294967295, %s911_s17   ;;  %s960_s19 = sadd.s32 1, %s911_s17   ;;  %s911_s17 = sphi %s949_s17, %s1223_s17   ;;  %s907_s16 = sphi %s947_s16, %s1222_s16   ;;  %s903_s15 = sphi %s945_s15, %s1221_s15  }
   0x3   : > { %s107_s20 = ssub.s32 %s911_s17, %s960_s19  ;;  %s110_s21 = sadd.s32 1, %s907_s16 }
   0x4   : > { %p108_p0 = scmp.eq.s32.totalorder %s107_s20, 0  ;;  %p120_p1 = scmp.ne.s32.totalorder %s907_s16, %s903_s15 }
   0x5   : > { %p121_p2 = scmp.eq.s32.totalorder %s958_s18, 1  ;;  %p737_p3 = scmp.ge.s32.totalorder %s911_s17, 1 }
   0x6   : > { %s968_s22 = scalar_select %p108_p0, %s907_s16, %s110_s21  }
   0x7   : > { %p970_p4 = por %p121_p2, %p120_p1  ;;  %p163_p5 = scmp.lt.s32.totalorder %s911_s17, 3 }
   0x9   : > { %p164_p6 = pnand %p737_p3, %p163_p5 }
   0xa   : > { %s739_s24 = sshll.u32 (!%p164_p6), %s958_s18, 1  ;;  %s913_s29 = smov (!%p164_p6), 127   ;;  %v914_v4 = vmov (!%p164_p6), 0   ;;  %v996_v5 = vld [vmem:[%s1208_s3] sm:$0xff] (!%p164_p6)  ;;  %v916_v6 = vmov (!%p164_p6), 1   ;;  %v1002_v7 = vld [vmem:[%s1208_s3 + $0x8] sm:$0xff] (!%p164_p6)  ;;  %v197_v10 = vlaneseq (!%p164_p6) }
   0xb   : > { %167 = sbr.rel (%p164_p6) target bundleno = 765 (0x2fd), region = 36  ;;  %p189_p7 = scmp.lt.s32.totalorder (!%p164_p6), %s739_s24, 3  ;;  %343 = vmatprep.mubr.bf16.mxu0 (!%p164_p6), %v914_v4  ;;  %834 = vset.pattern.permute.xlu1 (!%p164_p6), %v914_v4  ;;  %v1008_v8 = vld [vmem:[%s1208_s3 + $0x18] sm:$0xff] (!%p164_p6)  ;;  %v1017_v9 = vld [vmem:[%s1208_s3 + $0x10] sm:$0xff] (!%p164_p6)  ;;  %vm231_vm0 = vcmask (!%p164_p6), 1039360   ;;  %vm216_vm3 = vcmask (!%p164_p6), 7168  }
   0xc   : > { %s915_s30 = smov (!%p164_p6), 1   ;;  %583 = vmatprep.mubr.bf16.mxu1 (!%p164_p6), %v914_v4  ;;  %266 = vperm.xlu1 (!%p164_p6), %834, %v996_v5   ;;  %v1023_v11 = vand.u32 (!%p164_p6), 127, %v197_v10  ;;  %vm301_vm6 = vcmask (!%p164_p6), 1043456   ;;  %vm252_vm7 = vcmask (!%p164_p6), 1042432   ;;  %vm255_vm8 = vcmask (!%p164_p6), 1045504   ;;  %v885_v45 = vld [vmem:[%s1206_s1] sm:$0xff] (!%p164_p6)  }
   0xd   : > { %835 = vset.pattern.permute.xlu0 (!%p164_p6), %v916_v6  ;;  %vm302_vm9 = vcmask (!%p164_p6), 1044480   ;;  %v917_v30 = vmov (!%p164_p6), 65535   ;;  %vm294_vm10 = vcmask (!%p164_p6), 72704   ;;  %v886_v46 = vld [vmem:[%s1206_s1 + $0x8] sm:$0xff] (!%p164_p6)   ;;  %s185_s27 = sand.u32 (!%p164_p6), 1, %s903_s15  }
   0xe   : > { %v199_v12 = vadd.s32 (!%p164_p6), 128, %v1023_v11  ;;  %vm204_vm1 = vcmp.ne.s32.totalorder (!%p164_p6), %v1023_v11, 127  ;;  %vm202_vm4 = vcmp.ne.s32.totalorder (!%p164_p6), %v1023_v11, 0  ;;  %v303_v31 = vsel (!%p164_p6), %vm301_vm6, 4294967295, %v917_v30  ;;  %v887_v11 = vld [vmem:[%s1207_s2] sm:$0xff] (!%p164_p6)  }
   0xf   : > { %v304_v39 = vsel (!%p164_p6), %vm302_vm9, %v303_v31, 0 }
  0x10   : > { %271 = vperm.xlu1 (!%p164_p6), %834, %v1002_v7   ;;  %v201_v13 = vand.u32 (!%p164_p6), 127, %v199_v12 }
  0x12   : > { %s1225_s24 = smov (!%p189_p7, %s739_s24), 3  ;;  %vm1027_vm2 = vcmp.ne.s32.totalorder %v201_v13, 127  ;;  %vm1036_vm5 = vcmp.ne.s32.totalorder %v201_v13, 0 }
  0x13   : > { %s740_s25 = sshll.u32 %s1225_s24, 2  ;;  %vm1095_vm9 = vmpackc.low %vm1036_vm5, %vm1036_vm5 }
  0x14   : > { %s192_s28 = scalar_lea.vmem %s1205_s0, %s740_s25  ;;  %836 = vset.pattern.permute.xlu1 %v916_v6 }
  0x15   : > { %v978_v0 = vld [vmem:[%s192_s28] sm:$0x77]  ;;  %377 = vperm.xlu1 %836, %v1002_v7   ;;  %s738_s28 = sshll.u32 %s185_s27, 6 }
  0x16   : > { %v982_v1 = vcombine.high %v978_v0, %v978_v0  ;;  %v242_v18 = vrot.slane %v978_v0, 5  ;;  %s1171_s15 = scalar_lea.vmem [#allocation2], %s738_s28 }
  0x18   : > { %v824_v2 = vpack.i.bf16 %v978_v0, %v982_v1  ;;  %v829_v3 = vpack.i.bf16 %v982_v1, %v978_v0  ;;  %v243_v21 = vrot.slane %v982_v1, 5 }
  0x19   : > { %837 = vset.pattern.permute.xlu1 %v914_v4 }
  0x1a   : > { %825 = vrot.lane.b32.xlu0 %v824_v2, %s913_s29  ;;  %276 = vperm.xlu1 %837, %v1017_v9  }
  0x1e   : > { %830 = vrot.lane.b32.xlu0 %v829_v3, %s915_s30  ;;  %839 = vset.pattern.permute.xlu1 %v916_v6 }
  0x1f   : > { %381 = vperm.xlu1 %839, %v1017_v9  }
  0x22   : > { %373 = vperm.xlu0 %835, %v996_v5  }
  0x23   : > { %385 = vperm.xlu1 %839, %v1008_v8  }
  0x26   : > { %838 = vset.pattern.permute.xlu0 %v914_v4 }
  0x27   : > { %281 = vperm.xlu0 %838, %v1008_v8  }
  0x8b   : > { %v267_v47 = vpop.permute.xlu1 %266 }
  0x8c   : > { %v826_v14 = vpop.permute.xlu0 %825 }
  0x8d   : > { %v828_v15 = vunpack.i.h.bf16 %v826_v14  ;;  %v827_v16 = vunpack.i.l.bf16 %v826_v14 }
  0x8f   : > { %v232_v19 = vsel %vm231_vm0, %v828_v15, %v827_v16  ;;  %v235_v20 = vsel %vm231_vm0, %v827_v16, 0.0  ;;  %v272_v48 = vpop.permute.xlu1 %271 }
  0x90   : > { %v831_v23 = vpop.permute.xlu0 %830  ;;  %v240_v24 = vsel %vm204_vm1, %v232_v19, 0.0  ;;  %v241_v25 = vsel %vm1027_vm2, %v235_v20, 0.0 }
  0x91   : > { %v833_v26 = vunpack.i.h.bf16 %v831_v23  ;;  %v832_v27 = vunpack.i.l.bf16 %v831_v23  ;;  %v248_v32 = vrot.slane %v240_v24, 2  ;;  %v249_v33 = vrot.slane %v241_v25, 2 }
  0x93   : > { %v217_v28 = vsel %vm216_vm3, %v832_v27, %v833_v26  ;;  %v220_v29 = vsel %vm216_vm3, 0.0, %v832_v27 }
  0x94   : > { %v225_v34 = vsel %vm202_vm4, %v220_v29, 0.0  ;;  %v226_v35 = vsel %vm1036_vm5, %v217_v28, 0.0  ;;  %v378_v49 = vpop.permute.xlu1 %377 }
  0x95   : > { %v253_v36 = vsel %vm252_vm7, %v225_v34, %v242_v18  ;;  %v254_v37 = vsel %vm252_vm7, %v226_v35, %v243_v21 }
  0x96   : > { %v257_v38 = vsel %vm255_vm8, %v254_v37, %v249_v33  ;;  %v256_v40 = vsel %vm255_vm8, %v253_v36, %v248_v32 }
  0x97   : > { %v263_v41 = vpack.c.bf16 %v249_v33, %v257_v38  ;;  %v262_v42 = vpack.c.bf16 %v248_v32, %v256_v40 }
  0x99   : > { %v1050_v43 = vand.u32 %v304_v39, %v263_v41  ;;  %v1052_v44 = vand.u32 %v304_v39, %v262_v42  ;;  %v277_v50 = vpop.permute.xlu1 %276  ;;  %v918_v42 = vmov 2  }
  0x9a   : > { %881 = vset.pattern.permute.xlu1 %v918_v42  ;;  %880 = vset.pattern.permute.xlu0 %v918_v42 }
  0x9b   : > { %311 = vmatprep.subr.bf16.mxu0 %v1050_v43 }
  0x9c   : > { %312 = vmatpush1.bf16.msra.mxu0 %v1052_v44 }
  0x9e   : > { %v382_v1 = vpop.permute.xlu1 %381 }
  0x9f   : > { %743 = vmatmul.mubr.msk.bf16.vlgmr.msra.gmra.mrb[0].mxu0 %vm294_vm10, %v885_v45  ;;  %v919_v45 = vmov 3  }
  0xa0   : > { %353 = vmatprep.mubr.bf16.mxu0 %v914_v4 }
  0xa1   : > { %v374_v52 = vpop.permute.xlu0 %373 }
  0xa2   : > { %v386_v27 = vpop.permute.xlu1 %385 }
  0xa6   : > { %v282_v12 = vpop.permute.xlu0 %281 }
  0xa7   : > { %744 = vmatmul.mubr.msk.bf16.gmra.mrb[4].mxu0 %vm294_vm10, %v886_v46  ;;  %vm1102_vm10 = vmpackc.low %vm202_vm4, %vm202_vm4 }
  0xa8   : > { %573 = vmatprep.mubr.bf16.mxu0 %v914_v4 }
 0x172   : > { %v345_v51 = vpop.f32.mrb[0].mxu0 }
 0x173   : > { %v346_v53 = vadd.f32 %v345_v51, %v267_v47  ;;  %v347_v54 = vpop.f32.mrb[1].mxu0 }
 0x174   : > { %v348_v55 = vadd.f32 %v347_v54, %v267_v47  ;;  %v349_v56 = vpop.f32.mrb[2].mxu0 }
 0x175   : > { %vm364_vm11 = vcmp.ge.f32.partialorder %v346_v53, 0.0  ;;  %v388_v57 = vmul.f32 %v374_v52, %v346_v53  ;;  %v350_v58 = vadd.f32 %v349_v56, %v272_v48  ;;  %v351_v59 = vpop.f32.mrb[3].mxu0 }
 0x176   : > { %vm365_vm12 = vcmp.ge.f32.partialorder %v348_v55, 0.0  ;;  %v389_v60 = vmul.f32 %v374_v52, %v348_v55  ;;  %v352_v61 = vadd.f32 %v351_v59, %v272_v48 }
 0x177   : > { %vm366_vm13 = vcmp.ge.f32.partialorder %v350_v58, 0.0  ;;  %v390_v62 = vmul.f32 %v378_v49, %v350_v58  ;;  %v396_v63 = vsel %vm364_vm11, %v346_v53, %v388_v57 }
 0x178   : > { %vm367_vm14 = vcmp.ge.f32.partialorder %v352_v61, 0.0  ;;  %v391_v0 = vmul.f32 %v378_v49, %v352_v61  ;;  %v397_v2 = vsel %vm365_vm12, %v348_v55, %v389_v60 }
 0x179   : > { %v398_v3 = vsel %vm366_vm13, %v350_v58, %v390_v62  ;;  %v840_v4 = vpack.i.bf16 %v397_v2, %v396_v63 }
 0x17a   : > { %v399_v6 = vsel %vm367_vm14, %v352_v61, %v391_v0  ;;  %v355_v10 = vpop.f32.mrb[4].mxu0  ;;  %v865_v13 = vpack.i.bf16 %v398_v3, %v396_v63  ;;  %v1064_v14 = vpack.c.bf16 %v398_v3, %v396_v63 }
 0x17b   : > { %v356_v15 = vadd.f32 %v355_v10, %v277_v50  ;;  %v357_v16 = vpop.f32.mrb[5].mxu0  ;;  %841 = vrot.lane.b32.xlu0 %v840_v4, %s915_s30  ;;  %v845_v18 = vpack.i.bf16 %v399_v6, %v398_v3  ;;  %v860_v19 = vpack.i.bf16 %v399_v6, %v397_v2  ;;  %v1067_v20 = vpack.c.bf16 %v399_v6, %v397_v2 }
 0x17c   : > { %v358_v21 = vadd.f32 %v357_v16, %v277_v50  ;;  %v359_v23 = vpop.f32.mrb[6].mxu0 }
 0x17d   : > { %vm368_vm15 = vcmp.ge.f32.partialorder %v356_v15, 0.0  ;;  %v392_v24 = vmul.f32 %v382_v1, %v356_v15  ;;  %v360_v25 = vadd.f32 %v359_v23, %v282_v12  ;;  %v361_v26 = vpop.f32.mrb[7].mxu0  ;;  %846 = vrot.lane.b32.xlu1 %v845_v18, %s915_s30 }
 0x17e   : > { %vm369_vm6 = vcmp.ge.f32.partialorder %v358_v21, 0.0  ;;  %v393_v28 = vmul.f32 %v382_v1, %v358_v21  ;;  %v362_v29 = vadd.f32 %v361_v26, %v282_v12 }
 0x17f   : > { %v400_v30 = vsel %vm368_vm15, %v356_v15, %v392_v24  ;;  %vm370_vm7 = vcmp.ge.f32.partialorder %v360_v25, 0.0  ;;  %v394_v31 = vmul.f32 %v386_v27, %v360_v25 }
 0x180   : > { %v401_v32 = vsel %vm369_vm6, %v358_v21, %v393_v28  ;;  %vm371_vm8 = vcmp.ge.f32.partialorder %v362_v29, 0.0  ;;  %v395_v33 = vmul.f32 %v386_v27, %v362_v29 }
 0x181   : > { %v402_v34 = vsel %vm370_vm7, %v360_v25, %v394_v31  ;;  %v850_v35 = vpack.i.bf16 %v401_v32, %v400_v30 }
 0x182   : > { %v1070_v36 = vpack.c.bf16 %v402_v34, %v400_v30  ;;  %v403_v37 = vsel %vm371_vm8, %v362_v29, %v395_v33  ;;  %v875_v38 = vpack.i.bf16 %v402_v34, %v400_v30 }
 0x183   : > { %851 = vrot.lane.b32.xlu0 %v850_v35, %s915_s30  ;;  %v855_v39 = vpack.i.bf16 %v403_v37, %v402_v34  ;;  %v870_v40 = vpack.i.bf16 %v403_v37, %v401_v32  ;;  %v1073_v41 = vpack.c.bf16 %v403_v37, %v401_v32  ;;  %v888_v34 = vld [vmem:[%s1207_s2 + $0x8] sm:$0xff]  }
 0x185   : > { %856 = vrot.lane.b32.xlu1 %v855_v39, %s915_s30 }
 0x187   : > { %861 = vrot.lane.b32.xlu0 %v860_v19, %s913_s29 }
 0x189   : > { %866 = vrot.lane.b32.xlu1 %v865_v13, %s913_s29 }
 0x18b   : > { %871 = vrot.lane.b32.xlu0 %v870_v40, %s913_s29 }
 0x18d   : > { %876 = vrot.lane.b32.xlu1 %v875_v38, %s913_s29  ;;  %s778_s29 = sshll.u32 (%p970_p4), %s958_s18, 4 }
 0x18e   : > { %s651_s6 = scalar_lea.vmem (%p970_p4), %s1209_s4, %s778_s29 }
 0x18f   : > { %509 = vperm.xlu0 %880, %v996_v5  }
 0x191   : > { %513 = vperm.xlu1 %881, %v1002_v7  }
 0x193   : > { %521 = vperm.xlu0 %880, %v1008_v8  }
 0x195   : > { %517 = vperm.xlu1 %881, %v1017_v9  }
 0x197   : > { %883 = vset.pattern.permute.xlu0 %v919_v45 }
 0x198   : > { %607 = vperm.xlu0 %883, %v1002_v7  }
 0x199   : > { %882 = vset.pattern.permute.xlu1 %v919_v45 }
 0x19a   : > { %603 = vperm.xlu1 %882, %v996_v5  }
 0x19e   : > { %611 = vperm.xlu1 %882, %v1017_v9  }
 0x1a2   : > { %615 = vperm.xlu1 %882, %v1008_v8  }
 0x1ed   : > { %v842_v46 = vpop.permute.xlu0 %841 }
 0x1ee   : > { %v844_v47 = vunpack.i.h.bf16 %v842_v46  ;;  %v843_v48 = vunpack.i.l.bf16 %v842_v46 }
 0x1ef   : > { %v847_v49 = vpop.permute.xlu1 %846 }
 0x1f0   : > { %v849_v50 = vunpack.i.h.bf16 %v847_v49  ;;  %v848_v51 = vunpack.i.l.bf16 %v847_v49  ;;  %v428_v52 = vsel %vm216_vm3, %v843_v48, %v844_v47  ;;  %v440_v53 = vsel %vm216_vm3, 0.0, %v843_v48 }
 0x1f2   : > { %v429_v54 = vsel %vm216_vm3, %v848_v51, %v849_v50  ;;  %v441_v5 = vsel %vm216_vm3, 0.0, %v848_v51 }
 0x1f3   : > { %v748_v8 = vpack.c.bf16 %v429_v54, %v428_v52  ;;  %v751_v9 = vpack.c.bf16 %v441_v5, %v440_v53 }
 0x1f5   : > { %v852_v56 = vpop.permute.xlu0 %851  ;;  %749 = vmatprep.subr.msk.bf16.mxu0 %vm1095_vm9, %v748_v8  ;;  %779 = vmatprep.subr.msk.bf16.mxu1 %vm1095_vm9, %v748_v8 }
 0x1f6   : > { %v854_v22 = vunpack.i.h.bf16 %v852_v56  ;;  %v853_v57 = vunpack.i.l.bf16 %v852_v56  ;;  %752 = vmatpush1.bf16.msk.msra.mxu0 %vm1102_vm10, %v751_v9  ;;  %786 = vmatpush1.bf16.msk.msra.mxu1 %vm1102_vm10, %v751_v9 }
 0x1f7   : > { %v857_v58 = vpop.permute.xlu1 %856 }
 0x1f8   : > { %v859_v59 = vunpack.i.h.bf16 %v857_v58  ;;  %v858_v60 = vunpack.i.l.bf16 %v857_v58  ;;  %v430_v62 = vsel %vm216_vm3, %v853_v57, %v854_v22  ;;  %v442_v63 = vsel %vm216_vm3, 0.0, %v853_v57 }
 0x1f9   : > { %v862_v61 = vpop.permute.xlu0 %861 }
 0x1fa   : > { %v431_v0 = vsel %vm216_vm3, %v858_v60, %v859_v59  ;;  %v443_v1 = vsel %vm216_vm3, 0.0, %v858_v60  ;;  %v864_v6 = vunpack.i.h.bf16 %v862_v61  ;;  %v863_v10 = vunpack.i.l.bf16 %v862_v61  ;;  %vm1137_vm3 = vmpackc.low %vm1027_vm2, %vm1027_vm2 }
 0x1fb   : > { %v754_v2 = vpack.c.bf16 %v431_v0, %v430_v62  ;;  %v757_v3 = vpack.c.bf16 %v443_v1, %v442_v63  ;;  %v867_v4 = vpop.permute.xlu1 %866  ;;  %vm762_vm2 = vmpackc.low %vm204_vm1, %vm204_vm1 }
 0x1fc   : > { %v481_v13 = vsel %vm231_vm0, %v864_v6, 0.0  ;;  %v480_v15 = vsel %vm231_vm0, %v863_v10, 0.0  ;;  %v869_v16 = vunpack.i.h.bf16 %v867_v4  ;;  %v868_v18 = vunpack.i.l.bf16 %v867_v4 }
 0x1fd   : > { %755 = vmatprep.subr.msk.bf16.mxu0 %vm1095_vm9, %v754_v2  ;;  %780 = vmatprep.subr.msk.bf16.mxu1 %vm1095_vm9, %v754_v2  ;;  %v872_v12 = vpop.permute.xlu0 %871  ;;  %v760_v24 = vpack.c.bf16 %v481_v13, %v480_v15 }
 0x1fe   : > { %758 = vmatpush1.bf16.msk.msra.mxu0 %vm1102_vm10, %v757_v3  ;;  %787 = vmatpush1.bf16.msk.msra.mxu1 %vm1102_vm10, %v757_v3  ;;  %v874_v19 = vunpack.i.h.bf16 %v872_v12  ;;  %v873_v21 = vunpack.i.l.bf16 %v872_v12  ;;  %v468_v25 = vsel %vm231_vm0, %v868_v18, %v863_v10  ;;  %v469_v26 = vsel %vm231_vm0, %v869_v16, %v864_v6 }
 0x1ff   : > { %545 = vmatprep.subr.bf16.mxu0 %v1067_v20  ;;  %781 = vmatprep.subr.bf16.mxu1 %v1067_v20  ;;  %v877_v23 = vpop.permute.xlu1 %876  ;;  %v763_v17 = vpack.c.bf16 %v469_v26, %v468_v25 }
 0x200   : > { %v879_v27 = vunpack.i.h.bf16 %v877_v23  ;;  %v878_v28 = vunpack.i.l.bf16 %v877_v23  ;;  %v482_v29 = vsel %vm231_vm0, %v873_v21, 0.0 }
 0x202   : > { %546 = vmatpush1.bf16.msra.mxu0 %v1064_v14  ;;  %788 = vmatpush1.bf16.msra.mxu1 %v1064_v14  ;;  %v483_v14 = vsel %vm231_vm0, %v874_v19, 0.0  ;;  %v470_v31 = vsel %vm231_vm0, %v878_v28, %v873_v21  ;;  %v471_v32 = vsel %vm231_vm0, %v879_v27, %v874_v19  ;;  %vm534_vm0 = vcmask 859136  }
 0x203   : > { %547 = vmatprep.subr.bf16.mxu0 %v1073_v41  ;;  %782 = vmatprep.subr.bf16.mxu1 %v1073_v41  ;;  %v766_v30 = vpack.c.bf16 %v483_v14, %v482_v29  ;;  %v769_v33 = vpack.c.bf16 %v471_v32, %v470_v31 }
 0x206   : > { %548 = vmatpush1.bf16.msra.mxu0 %v1070_v36  ;;  %789 = vmatpush1.bf16.msra.mxu1 %v1070_v36 }
 0x207   : > { %761 = vmatprep.subr.msk.bf16.mxu0 %vm1137_vm3, %v760_v24  ;;  %783 = vmatprep.subr.msk.bf16.mxu1 %vm1137_vm3, %v760_v24 }
 0x20a   : > { %764 = vmatpush1.bf16.msk.msra.mxu0 %vm762_vm2, %v763_v17  ;;  %790 = vmatpush1.bf16.msk.msra.mxu1 %vm762_vm2, %v763_v17 }
 0x20b   : > { %767 = vmatprep.subr.msk.bf16.mxu0 %vm1137_vm3, %v766_v30  ;;  %784 = vmatprep.subr.msk.bf16.mxu1 %vm1137_vm3, %v766_v30 }
 0x20e   : > { %770 = vmatpush1.bf16.msk.msra.mxu0 %vm762_vm2, %v769_v33  ;;  %791 = vmatpush1.bf16.msk.msra.mxu1 %vm762_vm2, %v769_v33  ;;  %v510_v38 = vpop.permute.xlu0 %509 }
 0x20f   : > { %553 = vmatprep.subr.bf16.mxu0 %v1050_v43  ;;  %785 = vmatprep.subr.bf16.mxu1 %v1050_v43 }
 0x210   : > { %v514_v35 = vpop.permute.xlu1 %513 }
 0x212   : > { %554 = vmatpush1.bf16.msra.mxu0 %v1052_v44  ;;  %792 = vmatpush1.bf16.msra.mxu1 %v1052_v44  ;;  %v522_v39 = vpop.permute.xlu0 %521 }
 0x214   : > { %v518_v36 = vpop.permute.xlu1 %517 }
 0x215   : > { %771 = vmatmul.mubr.msk.bf16.vlgmr.msra.gmra.mrb[8].mxu0 %vm534_vm0, %v887_v11  ;;  %772 = vmatmul.mubr.msk.bf16.vlgmr.msra.gmra.mrb[0].mxu1 %vm534_vm0, %v888_v34 }
 0x217   : > { %v608_v8 = vpop.permute.xlu0 %607 }
 0x219   : > { %v604_v37 = vpop.permute.xlu1 %603 }
 0x21d   : > { %v612_v43 = vpop.permute.xlu1 %611 }
 0x221   : > { %v616_v57 = vpop.permute.xlu1 %615 }
 0x2e8   : > { %v575_v40 = vpop.f32.mrb[8].mxu0  ;;  %v585_v41 = vpop.f32.mrb[0].mxu1 }
 0x2e9   : > { %v576_v42 = vadd.f32 %v575_v40, %v510_v38  ;;  %v586_v45 = vadd.f32 %v585_v41, %v518_v36  ;;  %v577_v46 = vpop.f32.mrb[9].mxu0  ;;  %v587_v47 = vpop.f32.mrb[1].mxu1 }
 0x2ea   : > { %v578_v48 = vadd.f32 %v577_v46, %v510_v38  ;;  %v588_v49 = vadd.f32 %v587_v47, %v518_v36  ;;  %v579_v44 = vpop.f32.mrb[10].mxu0  ;;  %v589_v50 = vpop.f32.mrb[2].mxu1 }
 0x2eb   : > { %vm594_vm1 = vcmp.ge.f32.partialorder %v576_v42, 0.0  ;;  %v618_v51 = vmul.f32 %v604_v37, %v576_v42  ;;  %vm598_vm4 = vcmp.ge.f32.partialorder %v586_v45, 0.0  ;;  %v622_v52 = vmul.f32 %v612_v43, %v586_v45  ;;  %v581_v53 = vpop.f32.mrb[11].mxu0  ;;  %v591_v54 = vpop.f32.mrb[3].mxu1 }
 0x2ec   : > { %vm595_vm5 = vcmp.ge.f32.partialorder %v578_v48, 0.0  ;;  %v619_v5 = vmul.f32 %v604_v37, %v578_v48  ;;  %vm599_vm11 = vcmp.ge.f32.partialorder %v588_v49, 0.0  ;;  %v623_v7 = vmul.f32 %v612_v43, %v588_v49 }
 0x2ed   : > { %v626_v9 = vsel %vm594_vm1, %v576_v42, %v618_v51  ;;  %v630_v55 = vsel %vm598_vm4, %v586_v45, %v622_v52  ;;  %v580_v56 = vadd.f32 %v579_v44, %v514_v35  ;;  %v590_v22 = vadd.f32 %v589_v50, %v522_v39 }
 0x2ee   : > { %634 = vst [vmem:[%s1171_s15] sm:$0xff] %v626_v9  ;;  %638 = vst [vmem:[%s1171_s15 + $0x20] sm:$0xff] %v630_v55  ;;  %v627_v58 = vsel %vm595_vm5, %v578_v48, %v619_v5  ;;  %v631_v59 = vsel %vm599_vm11, %v588_v49, %v623_v7  ;;  %v582_v60 = vadd.f32 %v581_v53, %v514_v35  ;;  %648 = sbr.rel (!%p970_p4) target bundleno = 765 (0x2fd), region = 40 }
 0x2ef   : > { %v592_v61 = vadd.f32 %v591_v54, %v522_v39  ;;  %635 = vst [vmem:[%s1171_s15 + $0x8] sm:$0xff] %v627_v58  ;;  %639 = vst [vmem:[%s1171_s15 + $0x28] sm:$0xff] %v631_v59  ;;  %vm596_vm12 = vcmp.ge.f32.partialorder %v580_v56, 0.0  ;;  %vm600_vm13 = vcmp.ge.f32.partialorder %v590_v22, 0.0  ;;  %v624_v62 = vmul.f32 %v616_v57, %v590_v22 }
 0x2f0   : > { %v620_v63 = vmul.f32 %v608_v8, %v580_v56  ;;  %vm597_vm14 = vcmp.ge.f32.partialorder %v582_v60, 0.0  ;;  %v621_v1 = vmul.f32 %v608_v8, %v582_v60 }
 0x2f1   : > { %vm601_vm15 = vcmp.ge.f32.partialorder %v592_v61, 0.0  ;;  %v625_v0 = vmul.f32 %v616_v57, %v592_v61  ;;  %v632_v2 = vsel %vm600_vm13, %v590_v22, %v624_v62 }
 0x2f2   : > { %v628_v3 = vsel %vm596_vm12, %v580_v56, %v620_v63  ;;  %640 = vst [vmem:[%s1171_s15 + $0x30] sm:$0xff] %v632_v2  ;;  %v629_v6 = vsel %vm597_vm14, %v582_v60, %v621_v1 }
 0x2f3   : > { %v633_v4 = vsel %vm601_vm15, %v592_v61, %v625_v0  ;;  %636 = vst [vmem:[%s1171_s15 + $0x10] sm:$0xff] %v628_v3  ;;  %637 = vst [vmem:[%s1171_s15 + $0x18] sm:$0xff] %v629_v6 }
 0x2f4   : > { %641 = vst [vmem:[%s1171_s15 + $0x38] sm:$0xff] %v633_v4 }
 0x2f5   : > { %v664_v10 = vld [vmem:[%s1171_s15] sm:$0xff] }
 0x2f6   : > { %v666_v12 = vld [vmem:[%s1171_s15 + $0x8] sm:$0xff]  ;;  %v672_v16 = vld [vmem:[%s1171_s15 + $0x20] sm:$0xff]  ;;  %665 = vst [vmem:[%s651_s6] sm:$0xff] %v664_v10 }
 0x2f7   : > { %v674_v18 = vld [vmem:[%s1171_s15 + $0x28] sm:$0xff]  ;;  %667 = vst [vmem:[%s651_s6 + $0x8] sm:$0xff] %v666_v12  ;;  %673 = vst [vmem:[%s651_s6 + $0x40] sm:$0xff] %v672_v16 }
 0x2f8   : > { %675 = vst [vmem:[%s651_s6 + $0x48] sm:$0xff] %v674_v18 }
 0x2f9   : > { %v676_v19 = vld [vmem:[%s1171_s15 + $0x30] sm:$0xff] }
 0x2fa   : > { %v668_v13 = vld [vmem:[%s1171_s15 + $0x10] sm:$0xff]  ;;  %v670_v15 = vld [vmem:[%s1171_s15 + $0x18] sm:$0xff]  ;;  %677 = vst [vmem:[%s651_s6 + $0x60] sm:$0xff] %v676_v19 }
 0x2fb   : > { %669 = vst [vmem:[%s651_s6 + $0x20] sm:$0xff] %v668_v13  ;;  %671 = vst [vmem:[%s651_s6 + $0x28] sm:$0xff] %v670_v15  ;;  %v678_v21 = vld [vmem:[%s1171_s15 + $0x38] sm:$0xff] }
 0x2fc   : > { %679 = vst [vmem:[%s651_s6 + $0x68] sm:$0xff] %v678_v21 }
 0x2fd PF: > { %p11_p8 = scmp.ge.s32.totalorder %s960_s19, 4   ;;  %s1221_s15 = smov %s907_s16 }
 0x2fe   : > { %s1222_s16 = smov %s968_s22  ;;  %s1223_s17 = smov %s960_s19 }
 0x2ff   :  { %13 = sbr.rel (!%p11_p8) target bundleno = 2 (0x2), region = 89 }

// kernel: affine_layer_apply.11
= control target key start
LH: loop header
LB: loop body
LE: loop exit
PB: predicated region body
PF: predicated region fallthrough
CT: control target
= control target key end

     0   :  { %s940_s18 = smov 0   ;;  %s942_s19 = smov 0   ;;  %s1141_s0 = inlined_call_operand.vmem [shape: f32[32,512], index: 0, kind: input, shape index: {}]   ;;  %s1142_s1 = inlined_call_operand.vmem [shape: f32[32,3], index: 1, kind: input, shape index: {}]   ;;  %s1143_s2 = inlined_call_operand.vmem [shape: f32[3,512], index: 2, kind: input, shape index: {}]   ;;  %s1144_s3 = inlined_call_operand.vmem [shape: bf16[32,70], index: 3, kind: input, shape index: {}]   ;;  %s1145_s4 = inlined_call_operand.vmem [shape: f32[32,512], index: 4, kind: output, shape index: {0}]   ;;  %s1146_s5 = inlined_call_operand.vmem [shape: f32[2,32,2], index: 5, kind: output, shape index: {1}]  }
   0x1   :  { %s944_s20 = smov 0  }
   0x2 LB: > { %s956_s21 = sadd.s32 4294967295, %s904_s20   ;;  %s959_s22 = sadd.s32 1, %s904_s20   ;;  %s904_s20 = sphi %s944_s20, %s1156_s20   ;;  %s900_s19 = sphi %s942_s19, %s1155_s19   ;;  %s896_s18 = sphi %s940_s18, %s1154_s18  }
   0x3   : > { %s20_s23 = ssub.s32 %s904_s20, %s959_s22  ;;  %s23_s24 = sadd.s32 1, %s900_s19 }
   0x4   : > { %p21_p0 = scmp.eq.s32.totalorder %s20_s23, 0  ;;  %p30_p1 = scmp.ne.s32.totalorder %s900_s19, %s896_s18 }
   0x5   : > { %p31_p2 = scmp.eq.s32.totalorder %s904_s20, 0  ;;  %p128_p3 = scmp.eq.s32.totalorder %s956_s21, 1 }
   0x6   : > { %s969_s25 = scalar_select %p21_p0, %s900_s19, %s23_s24  }
   0x7   : > { %p32_p4 = por %p31_p2, %p30_p1  ;;  %p971_p5 = por %p128_p3, %p30_p1 }
   0x8   : > { %p771_p6 = scmp.ge.s32.totalorder %s904_s20, 2 }
   0xa   : > { %182 = sbr.rel (%p771_p6) target bundleno = 25 (0x19), region = 24 }
  0x11   : > { %185 = sbr.rel (!%p32_p4) target bundleno = 25 (0x19), region = 28  ;;  %s187_s27 = sand.u32 (%p32_p4), 1, %s900_s19  }
  0x12   : > { %s804_s28 = sshll.u32 (%p32_p4), %s904_s20, 4  ;;  %s772_s29 = sshll.u32 (%p32_p4), %s187_s27, 6 }
  0x13   : > { %s192_s7 = scalar_lea.vmem (%p32_p4), %s1141_s0, %s804_s28  ;;  %s189_s8 = scalar_lea.vmem (%p32_p4), [#allocation2], %s772_s29 }
  0x14   : > { %v205_v0 = vld [vmem:[%s192_s7] sm:$0xff] (%p32_p4)  ;;  %v207_v1 = vld [vmem:[%s192_s7 + $0x8] sm:$0xff] (%p32_p4) }
  0x15   : > { %v209_v2 = vld [vmem:[%s192_s7 + $0x20] sm:$0xff] (%p32_p4)  ;;  %206 = vst [vmem:[%s189_s8] sm:$0xff] (%p32_p4), %v205_v0  ;;  %208 = vst [vmem:[%s189_s8 + $0x8] sm:$0xff] (%p32_p4), %v207_v1  ;;  %v211_v3 = vld [vmem:[%s192_s7 + $0x28] sm:$0xff] (%p32_p4) }
  0x16   : > { %210 = vst [vmem:[%s189_s8 + $0x10] sm:$0xff] (%p32_p4), %v209_v2  ;;  %v213_v4 = vld [vmem:[%s192_s7 + $0x40] sm:$0xff] (%p32_p4)  ;;  %v215_v5 = vld [vmem:[%s192_s7 + $0x48] sm:$0xff] (%p32_p4)  ;;  %212 = vst [vmem:[%s189_s8 + $0x18] sm:$0xff] (%p32_p4), %v211_v3 }
  0x17   : > { %214 = vst [vmem:[%s189_s8 + $0x20] sm:$0xff] (%p32_p4), %v213_v4  ;;  %216 = vst [vmem:[%s189_s8 + $0x28] sm:$0xff] (%p32_p4), %v215_v5  ;;  %v217_v6 = vld [vmem:[%s192_s7 + $0x60] sm:$0xff] (%p32_p4)  ;;  %v219_v7 = vld [vmem:[%s192_s7 + $0x68] sm:$0xff] (%p32_p4) }
  0x18   : > { %218 = vst [vmem:[%s189_s8 + $0x30] sm:$0xff] %v217_v6  ;;  %220 = vst [vmem:[%s189_s8 + $0x38] sm:$0xff] %v219_v7 }
  0x19 PF: > { %p775_p7 = scmp.ge.s32.totalorder %s904_s20, 1  ;;  %p234_p8 = scmp.lt.s32.totalorder %s904_s20, 3 }
  0x1b   : > { %p235_p9 = pnand %p775_p7, %p234_p8 }
  0x1c   : > { %v306_v8 = vld [vmem:[%s1142_s1] sm:$0xff] (!%p235_p9)  ;;  %v906_v9 = vmov (!%p235_p9), 1   ;;  %v907_v10 = vmov (!%p235_p9), 0   ;;  %v307_v11 = vld [vmem:[%s1142_s1 + $0x8] sm:$0xff] (!%p235_p9)  ;;  %v308_v12 = vld [vmem:[%s1142_s1 + $0x10] sm:$0xff] (!%p235_p9)  ;;  %v908_v14 = vmov (!%p235_p9), 2  }
  0x1d   : > { %238 = sbr.rel (%p235_p9) target bundleno = 843 (0x34b), region = 55  ;;  %846 = vset.pattern.permute.xlu1 (!%p235_p9), %v906_v9  ;;  %845 = vset.pattern.permute.xlu0 (!%p235_p9), %v907_v10  ;;  %v309_v13 = vld [vmem:[%s1142_s1 + $0x18] sm:$0xff] (!%p235_p9)  ;;  %s241_s17 = sand.u32 (!%p235_p9), 1, %s896_s18   ;;  %vm426_vm8 = vcmask (!%p235_p9), 7168   ;;  %vm472_vm13 = vcmask (!%p235_p9), 1042432   ;;  %vm499_vm14 = vcmask (!%p235_p9), 572416  }
  0x1e   : > { %339 = vperm.xlu1 (!%p235_p9), %846, %v306_v8   ;;  %312 = vperm.xlu0 (!%p235_p9), %845, %v306_v8   ;;  %s996_s20 = sshll.u32 (!%p235_p9), %s241_s17, 6  ;;  %s778_s24 = sshll.u32 (!%p235_p9), %s956_s21, 1  ;;  %vm621_vm15 = vcmask (!%p235_p9), 15360  }
  0x1f   : > { %544 = vmatprep.mubr.bf16.mxu0 (!%p235_p9), %v907_v10  ;;  %554 = vmatprep.mubr.bf16.mxu1 (!%p235_p9), %v907_v10  ;;  %s999_s23 = scalar_lea.vmem (!%p235_p9), [#allocation2], %s996_s20  ;;  %p279_p10 = scmp.lt.s32.totalorder (!%p235_p9), %s778_s24, 3 }
  0x20   : > { %v298_v17 = vld [vmem:[%s999_s23] sm:$0xff] (!%p235_p9)  ;;  %v299_v18 = vld [vmem:[%s999_s23 + $0x8] sm:$0xff] (!%p235_p9)  ;;  %v300_v21 = vld [vmem:[%s999_s23 + $0x10] sm:$0xff] (!%p235_p9)  ;;  %s909_s27 = smov (!%p235_p9), 1   ;;  %s1098_s10 = scalar_lea.vmem (!%p235_p9), [#allocation3], %s996_s20 }
  0x21   : > { %v301_v22 = vld [vmem:[%s999_s23 + $0x18] sm:$0xff] (!%p235_p9)  ;;  %v302_v41 = vld [vmem:[%s999_s23 + $0x20] sm:$0xff] (!%p235_p9)  ;;  %v303_v42 = vld [vmem:[%s999_s23 + $0x28] sm:$0xff] (!%p235_p9)  ;;  %p285_p11 = scmp.lt.s32.totalorder (!%p235_p9), %s956_s21, 1 }
  0x22   : > { %343 = vperm.xlu1 (!%p235_p9), %846, %v307_v11   ;;  %317 = vperm.xlu0 (!%p235_p9), %845, %v307_v11   ;;  %v304_v52 = vld [vmem:[%s999_s23 + $0x30] sm:$0xff] (!%p235_p9)  ;;  %v305_v53 = vld [vmem:[%s999_s23 + $0x38] sm:$0xff] (!%p235_p9) }
  0x24   : > { %s1158_s24 = smov (!%p279_p10, %s778_s24), 3  ;;  %s806_s16 = sshll.u32 (%p971_p5), %s956_s21, 4 }
  0x25   : > { %s779_s18 = sshll.u32 %s1158_s24, 2  ;;  %s640_s23 = scalar_lea.vmem (%p971_p5), %s1145_s4, %s806_s16 }
  0x26   : > { %847 = vset.pattern.permute.xlu1 %v907_v10  ;;  %322 = vperm.xlu0 %845, %v308_v12   ;;  %s282_s30 = scalar_lea.vmem %s1143_s2, %s779_s18 }
  0x27   : > { %327 = vperm.xlu1 %847, %v309_v13   ;;  %v1019_v56 = vld [vmem:[%s282_s30] sm:$0x77]  ;;  %s286_s11 = scalar_select %p285_p11, %s956_s21, 1 }
  0x28   : > { %v1023_v63 = vcombine.high %v1019_v56, %v1019_v56 }
  0x29   : > { %s805_s12 = sshll.u32 %s286_s11, 5 }
  0x2a   : > { %848 = vset.pattern.permute.xlu0 %v908_v14  ;;  %s289_s15 = scalar_lea.vmem %s1146_s5, %s805_s12 }
  0x2b   : > { %849 = vset.pattern.permute.xlu1 %v908_v14  ;;  %371 = vperm.xlu0 %848, %v306_v8   ;;  %v873_v8 = vpack.i.bf16 %v1023_v63, %v1019_v56 }
  0x2c   : > { %375 = vperm.xlu1 %849, %v307_v11  }
  0x2f   : > { %851 = vset.pattern.permute.xlu0 %v906_v9 }
  0x30   : > { %850 = vset.pattern.permute.xlu1 %v906_v9  ;;  %351 = vperm.xlu0 %851, %v309_v13  }
  0x31   : > { %347 = vperm.xlu1 %850, %v308_v12  }
  0x34   : > { %878 = vset.pattern.permute.xlu0 %v908_v14 }
  0x35   : > { %852 = vset.pattern.permute.xlu1 %v908_v14  ;;  %v291_v14 = vlaneseq }
  0x36   : > { %379 = vperm.xlu1 %852, %v308_v12  }
  0x3a   : > { %383 = vperm.xlu1 %852, %v309_v13  }
  0x9d   : > { %v340_v15 = vpop.permute.xlu1 %339  ;;  %v313_v16 = vpop.permute.xlu0 %312 }
  0x9e   : > { %v330_v23 = vmul.f32 %v313_v16, %v298_v17  ;;  %v331_v24 = vmul.f32 %v313_v16, %v299_v18 }
  0xa0   : > { %v354_v29 = vadd.f32 %v340_v15, %v330_v23  ;;  %v355_v30 = vadd.f32 %v340_v15, %v331_v24  ;;  %v292_v15 = vand.u32 127, %v291_v14 }
  0xa1   : > { %v344_v19 = vpop.permute.xlu1 %343  ;;  %v318_v20 = vpop.permute.xlu0 %317 }
  0xa2   : > { %v332_v25 = vmul.f32 %v318_v20, %v300_v21  ;;  %v333_v26 = vmul.f32 %v318_v20, %v301_v22  ;;  %vm362_vm0 = vcmp.ge.f32.partialorder %v354_v29, 0.0  ;;  %vm363_vm1 = vcmp.ge.f32.partialorder %v355_v30, 0.0 }
  0xa3   : > { %v293_v16 = vadd.s32 128, %v292_v15  ;;  %vm296_vm10 = vcmp.ne.s32.totalorder %v292_v15, 0 }
  0xa4   : > { %v356_v31 = vadd.f32 %v344_v19, %v332_v25  ;;  %v357_v32 = vadd.f32 %v344_v19, %v333_v26  ;;  %vm1049_vm12 = vmpackc.low %vm296_vm10, %vm296_vm10 }
  0xa5   : > { %v323_v27 = vpop.permute.xlu0 %322  ;;  %v295_v17 = vand.u32 127, %v293_v16 }
  0xa6   : > { %v328_v28 = vpop.permute.xlu1 %327  ;;  %vm364_vm2 = vcmp.ge.f32.partialorder %v356_v31, 0.0  ;;  %vm365_vm3 = vcmp.ge.f32.partialorder %v357_v32, 0.0  ;;  %v334_v50 = vmul.f32 %v323_v27, %v302_v41  ;;  %v335_v51 = vmul.f32 %v323_v27, %v303_v42 }
  0xa7   : > { %v336_v58 = vmul.f32 %v328_v28, %v304_v52  ;;  %v337_v59 = vmul.f32 %v328_v28, %v305_v53  ;;  %vm1032_vm9 = vcmp.ne.s32.totalorder %v295_v17, 0  ;;  %v469_v52 = vrot.slane %v1023_v63, 5 }
  0xa8   : > { %vm1043_vm11 = vmpackc.low %vm1032_vm9, %vm1032_vm9  ;;  %v468_v53 = vrot.slane %v1019_v56, 5 }
  0xaa   : > { %v372_v33 = vpop.permute.xlu0 %371 }
  0xab   : > { %v386_v34 = vmul.f32 %v372_v33, %v354_v29  ;;  %v387_v35 = vmul.f32 %v372_v33, %v355_v30  ;;  %v376_v36 = vpop.permute.xlu1 %375 }
  0xac   : > { %v388_v37 = vmul.f32 %v376_v36, %v356_v31  ;;  %v389_v38 = vmul.f32 %v376_v36, %v357_v32 }
  0xad   : > { %v394_v39 = vsel %vm362_vm0, %v354_v29, %v386_v34  ;;  %v395_v40 = vsel %vm363_vm1, %v355_v30, %v387_v35 }
  0xae   : > { %v853_v43 = vpack.i.bf16 %v395_v40, %v394_v39  ;;  %v396_v44 = vsel %vm364_vm2, %v356_v31, %v388_v37  ;;  %v397_v45 = vsel %vm365_vm3, %v357_v32, %v389_v38 }
  0xaf   : > { %v858_v46 = vpack.i.bf16 %v397_v45, %v396_v44  ;;  %v1008_v47 = vpack.c.bf16 %v397_v45, %v395_v40  ;;  %v1010_v48 = vpack.c.bf16 %v396_v44, %v394_v39  ;;  %v352_v57 = vpop.permute.xlu0 %351 }
  0xb0   : > { %v348_v49 = vpop.permute.xlu1 %347  ;;  %854 = vrot.lane.b32.xlu0 %v853_v43, %s909_s27  ;;  %v360_v0 = vadd.f32 %v352_v57, %v336_v58  ;;  %v361_v1 = vadd.f32 %v352_v57, %v337_v59 }
  0xb1   : > { %859 = vrot.lane.b32.xlu1 %v858_v46, %s909_s27  ;;  %v358_v54 = vadd.f32 %v348_v49, %v334_v50  ;;  %v359_v55 = vadd.f32 %v348_v49, %v335_v51 }
  0xb2   : > { %vm368_vm6 = vcmp.ge.f32.partialorder %v360_v0, 0.0  ;;  %vm369_vm7 = vcmp.ge.f32.partialorder %v361_v1, 0.0 }
  0xb3   : > { %vm366_vm4 = vcmp.ge.f32.partialorder %v358_v54, 0.0  ;;  %vm367_vm5 = vcmp.ge.f32.partialorder %v359_v55, 0.0 }
  0xb5   : > { %v380_v60 = vpop.permute.xlu1 %379 }
  0xb6   : > { %v390_v61 = vmul.f32 %v380_v60, %v358_v54  ;;  %v391_v62 = vmul.f32 %v380_v60, %v359_v55  ;;  %v880_v60 = vld [vmem:[%s1144_s3] sm:$0xff]  }
  0xb8   : > { %v398_v2 = vsel %vm366_vm4, %v358_v54, %v390_v61  ;;  %v399_v3 = vsel %vm367_vm5, %v359_v55, %v391_v62 }
  0xb9   : > { %v384_v4 = vpop.permute.xlu1 %383  ;;  %v863_v5 = vpack.i.bf16 %v399_v3, %v398_v2 }
  0xba   : > { %v392_v6 = vmul.f32 %v384_v4, %v360_v0  ;;  %v393_v7 = vmul.f32 %v384_v4, %v361_v1 }
  0xbb   : > { %864 = vrot.lane.b32.xlu0 %v863_v5, %s909_s27 }
  0xbc   : > { %v400_v9 = vsel %vm368_vm6, %v360_v0, %v392_v6  ;;  %v401_v10 = vsel %vm369_vm7, %v361_v1, %v393_v7 }
  0xbd   : > { %v868_v11 = vpack.i.bf16 %v401_v10, %v400_v9  ;;  %v486_v12 = vpack.c.bf16 %v401_v10, %v399_v3  ;;  %v1028_v13 = vpack.c.bf16 %v400_v9, %v398_v2 }
  0xbf   : > { %869 = vrot.lane.b32.xlu1 %v868_v11, %s909_s27  ;;  %874 = vrot.lane.b32.xlu0 %v873_v8, %s909_s27 }
 0x122   : > { %v855_v18 = vpop.permute.xlu0 %854 }
 0x123   : > { %v857_v19 = vunpack.i.h.bf16 %v855_v18  ;;  %v856_v20 = vunpack.i.l.bf16 %v855_v18  ;;  %v860_v21 = vpop.permute.xlu1 %859 }
 0x124   : > { %v862_v23 = vunpack.i.h.bf16 %v860_v21  ;;  %v861_v24 = vunpack.i.l.bf16 %v860_v21 }
 0x125   : > { %v439_v25 = vsel %vm426_vm8, 0.0, %v856_v20  ;;  %v427_v26 = vsel %vm426_vm8, %v856_v20, %v857_v19 }
 0x126   : > { %v440_v27 = vsel %vm426_vm8, 0.0, %v861_v24  ;;  %v428_v28 = vsel %vm426_vm8, %v861_v24, %v862_v23 }
 0x127   : > { %v785_v30 = vpack.c.bf16 %v428_v28, %v427_v26  ;;  %v788_v32 = vpack.c.bf16 %v440_v27, %v439_v25 }
 0x129   : > { %786 = vmatprep.subr.msk.bf16.mxu0 %vm1043_vm11, %v785_v30  ;;  %807 = vmatprep.subr.msk.bf16.mxu1 %vm1043_vm11, %v785_v30 }
 0x12a   : > { %789 = vmatpush1.bf16.msk.msra.mxu0 %vm1049_vm12, %v788_v32  ;;  %812 = vmatpush1.bf16.msk.msra.mxu1 %vm1049_vm12, %v788_v32 }
 0x12d   : > { %v865_v33 = vpop.permute.xlu0 %864 }
 0x12e   : > { %v867_v34 = vunpack.i.h.bf16 %v865_v33  ;;  %v866_v35 = vunpack.i.l.bf16 %v865_v33 }
 0x130   : > { %v429_v42 = vsel %vm426_vm8, %v866_v35, %v867_v34  ;;  %v441_v43 = vsel %vm426_vm8, 0.0, %v866_v35 }
 0x131   : > { %v870_v36 = vpop.permute.xlu1 %869  ;;  %v875_v37 = vpop.permute.xlu0 %874 }
 0x132   : > { %v872_v38 = vunpack.i.h.bf16 %v870_v36  ;;  %v871_v39 = vunpack.i.l.bf16 %v870_v36  ;;  %v877_v40 = vunpack.i.h.bf16 %v875_v37  ;;  %v876_v41 = vunpack.i.l.bf16 %v875_v37 }
 0x134   : > { %v430_v44 = vsel %vm426_vm8, %v871_v39, %v872_v38  ;;  %v442_v45 = vsel %vm426_vm8, 0.0, %v871_v39  ;;  %v462_v46 = vsel %vm426_vm8, %v876_v41, %v877_v40  ;;  %v465_v49 = vsel %vm426_vm8, 0.0, %v876_v41 }
 0x135   : > { %v791_v50 = vpack.c.bf16 %v430_v44, %v429_v42  ;;  %v794_v51 = vpack.c.bf16 %v442_v45, %v441_v43  ;;  %v466_v54 = vsel %vm296_vm10, %v465_v49, 0.0  ;;  %v467_v55 = vsel %vm1032_vm9, %v462_v46, 0.0 }
 0x136   : > { %v474_v56 = vsel %vm472_vm13, %v467_v55, %v469_v52  ;;  %v473_v57 = vsel %vm472_vm13, %v466_v54, %v468_v53 }
 0x137   : > { %792 = vmatprep.subr.msk.bf16.mxu0 %vm1043_vm11, %v791_v50  ;;  %808 = vmatprep.subr.msk.bf16.mxu1 %vm1043_vm11, %v791_v50  ;;  %v488_v58 = vpack.c.bf16 %v474_v56, %v474_v56  ;;  %v487_v59 = vpack.c.bf16 %v473_v57, %v473_v57 }
 0x138   : > { %795 = vmatpush1.bf16.msk.msra.mxu0 %vm1049_vm12, %v794_v51  ;;  %813 = vmatpush1.bf16.msk.msra.mxu1 %vm1049_vm12, %v794_v51 }
 0x139   : > { %516 = vmatprep.subr.bf16.mxu0 %v1008_v47  ;;  %809 = vmatprep.subr.bf16.mxu1 %v1008_v47  ;;  %v507_v47 = vsel %vm472_vm13, %v487_v59, 0 }
 0x13c   : > { %517 = vmatpush1.bf16.msra.mxu0 %v1010_v48  ;;  %814 = vmatpush1.bf16.msra.mxu1 %v1010_v48  ;;  %v881_v48 = vld [vmem:[%s1144_s3 + $0x8] sm:$0xff]  }
 0x13d   : > { %518 = vmatprep.subr.bf16.mxu0 %v486_v12  ;;  %810 = vmatprep.subr.bf16.mxu1 %v486_v12 }
 0x140   : > { %519 = vmatpush1.bf16.msra.mxu0 %v1028_v13  ;;  %815 = vmatpush1.bf16.msra.mxu1 %v1028_v13 }
 0x141   : > { %796 = vmatprep.subr.msk.bf16.mxu0 %vm472_vm13, %v488_v58  ;;  %811 = vmatprep.subr.msk.bf16.mxu1 %vm472_vm13, %v488_v58 }
 0x144   : > { %521 = vmatpush1.bf16.msra.mxu0 %v507_v47  ;;  %816 = vmatpush1.bf16.msra.mxu1 %v507_v47 }
 0x147   : > { %797 = vmatmul.mubr.msk.bf16.vlgmr.msra.gmra.mrb[0].mxu0 %vm499_vm14, %v880_v60  ;;  %798 = vmatmul.mubr.msk.bf16.vlgmr.msra.gmra.mrb[0].mxu1 %vm499_vm14, %v881_v48 }
 0x21a   : > { %v546_v61 = vpop.f32.mrb[0].mxu0  ;;  %v556_v62 = vpop.f32.mrb[0].mxu1 }
 0x21b   : > { %565 = vst [vmem:[%s1098_s10] sm:$0xff] %v546_v61  ;;  %v548_v63 = vpop.f32.mrb[1].mxu0  ;;  %569 = vst [vmem:[%s1098_s10 + $0x20] sm:$0xff] %v556_v62  ;;  %v558_v0 = vpop.f32.mrb[1].mxu1 }
 0x21c   : > { %566 = vst [vmem:[%s1098_s10 + $0x8] sm:$0xff] %v548_v63  ;;  %v550_v1 = vpop.f32.mrb[2].mxu0  ;;  %570 = vst [vmem:[%s1098_s10 + $0x28] sm:$0xff] %v558_v0  ;;  %v560_v2 = vpop.f32.mrb[2].mxu1  ;;  %v573_v3 = vadd.f32 %v548_v63, %v546_v61  ;;  %v579_v4 = vadd.f32 %v558_v0, %v556_v62 }
 0x21d   : > { %567 = vst [vmem:[%s1098_s10 + $0x10] sm:$0xff] %v550_v1  ;;  %v552_v5 = vpop.f32.mrb[3].mxu0  ;;  %571 = vst [vmem:[%s1098_s10 + $0x30] sm:$0xff] %v560_v2  ;;  %v562_v6 = vpop.f32.mrb[3].mxu1 }
 0x21e   : > { %568 = vst [vmem:[%s1098_s10 + $0x18] sm:$0xff] %v552_v5  ;;  %572 = vst [vmem:[%s1098_s10 + $0x38] sm:$0xff] %v562_v6  ;;  %574 = vadd.xlane.f32.xlu1 %v573_v3  ;;  %v576_v7 = vadd.f32 %v552_v5, %v550_v1  ;;  %v582_v8 = vadd.f32 %v562_v6, %v560_v2 }
 0x220   : > { %577 = vadd.xlane.f32.xlu0 %v576_v7 }
 0x222   : > { %583 = vadd.xlane.f32.xlu1 %v582_v8  ;;  %v653_v45 = vld [vmem:[%s1098_s10] sm:$0xff] (%p971_p5) }
 0x223   : > { %v655_v46 = vld [vmem:[%s1098_s10 + $0x8] sm:$0xff] (%p971_p5)  ;;  %v661_v51 = vld [vmem:[%s1098_s10 + $0x20] sm:$0xff] (%p971_p5)  ;;  %654 = vst [vmem:[%s640_s23] sm:$0xff] (%p971_p5), %v653_v45 }
 0x224   : > { %580 = vadd.xlane.f32.xlu0 %v579_v4  ;;  %v657_v49 = vld [vmem:[%s1098_s10 + $0x10] sm:$0xff] (%p971_p5)  ;;  %v663_v52 = vld [vmem:[%s1098_s10 + $0x28] sm:$0xff] (%p971_p5)  ;;  %656 = vst [vmem:[%s640_s23 + $0x8] sm:$0xff] (%p971_p5), %v655_v46  ;;  %662 = vst [vmem:[%s640_s23 + $0x40] sm:$0xff] (%p971_p5), %v661_v51 }
 0x225   : > { %v659_v50 = vld [vmem:[%s1098_s10 + $0x18] sm:$0xff] (%p971_p5)  ;;  %658 = vst [vmem:[%s640_s23 + $0x20] sm:$0xff] (%p971_p5), %v657_v49  ;;  %664 = vst [vmem:[%s640_s23 + $0x48] sm:$0xff] (%p971_p5), %v663_v52  ;;  %v665_v53 = vld [vmem:[%s1098_s10 + $0x30] sm:$0xff] (%p971_p5) }
 0x226   : > { %660 = vst [vmem:[%s640_s23 + $0x28] sm:$0xff] (%p971_p5), %v659_v50  ;;  %v667_v54 = vld [vmem:[%s1098_s10 + $0x38] sm:$0xff] (%p971_p5)  ;;  %666 = vst [vmem:[%s640_s23 + $0x60] sm:$0xff] (%p971_p5), %v665_v53 }
 0x227   : > { %668 = vst [vmem:[%s640_s23 + $0x68] sm:$0xff] (%p971_p5), %v667_v54 }
 0x2ab   : > { %v575_v9 = vpop.xlane.xlu1 %574 }
 0x2ac   : > { %v585_v10 = vmul.f32 0.00390625, %v575_v9 }
 0x2ad   : > { %v578_v11 = vpop.xlane.xlu0 %577 }
 0x2ae   : > { %v589_v12 = vsub.f32 %v546_v61, %v585_v10  ;;  %v590_v13 = vsub.f32 %v548_v63, %v585_v10  ;;  %v586_v14 = vmul.f32 0.00390625, %v578_v11 }
 0x2af   : > { %v584_v15 = vpop.xlane.xlu1 %583 }
 0x2b0   : > { %v591_v16 = vsub.f32 %v550_v1, %v586_v14  ;;  %v592_v17 = vsub.f32 %v552_v5, %v586_v14  ;;  %v588_v18 = vmul.f32 0.00390625, %v584_v15  ;;  %v597_v19 = vmul.f32 %v589_v12, %v589_v12 }
 0x2b1   : > { %v581_v20 = vpop.xlane.xlu0 %580  ;;  %v598_v21 = vmul.f32 %v590_v13, %v590_v13 }
 0x2b2   : > { %v595_v22 = vsub.f32 %v560_v2, %v588_v18  ;;  %v596_v23 = vsub.f32 %v562_v6, %v588_v18  ;;  %v587_v24 = vmul.f32 0.00390625, %v581_v20  ;;  %v599_v25 = vmul.f32 %v591_v16, %v591_v16 }
 0x2b3   : > { %v605_v26 = vadd.f32 %v598_v21, %v597_v19  ;;  %v600_v27 = vmul.f32 %v592_v17, %v592_v17 }
 0x2b4   : > { %v593_v28 = vsub.f32 %v556_v62, %v587_v24  ;;  %v594_v29 = vsub.f32 %v558_v0, %v587_v24  ;;  %v603_v30 = vmul.f32 %v595_v22, %v595_v22  ;;  %v604_v31 = vmul.f32 %v596_v23, %v596_v23 }
 0x2b5   : > { %606 = vadd.xlane.f32.xlu0 %v605_v26  ;;  %v608_v32 = vadd.f32 %v600_v27, %v599_v25 }
 0x2b6   : > { %v614_v33 = vadd.f32 %v604_v31, %v603_v30  ;;  %v601_v34 = vmul.f32 %v593_v28, %v593_v28  ;;  %v602_v35 = vmul.f32 %v594_v29, %v594_v29 }
 0x2b7   : > { %609 = vadd.xlane.f32.xlu1 %v608_v32 }
 0x2b8   : > { %v611_v36 = vadd.f32 %v602_v35, %v601_v34 }
 0x2ba   : > { %612 = vadd.xlane.f32.xlu0 %v611_v36 }
 0x2bb   : > { %615 = vadd.xlane.f32.xlu1 %v614_v33 }
 0x342   : > { %v607_v37 = vpop.xlane.xlu0 %606 }
 0x343   : > { %v617_v38 = vsel %vm426_vm8, %v575_v9, %v607_v37 }
 0x344   : > { %622 = vst.msk [vmem:[%s289_s15] sm:$0xff] %vm621_vm15, %v617_v38  ;;  %v610_v39 = vpop.xlane.xlu1 %609  ;;  %637 = sbr.rel (!%p971_p5) target bundleno = 843 (0x34b), region = 63 }
 0x345   : > { %v618_v40 = vsel %vm426_vm8, %v578_v11, %v610_v39 }
 0x346   : > { %623 = vst.msk [vmem:[%s289_s15 + $0x8] sm:$0xff] %vm621_vm15, %v618_v40 }
 0x347   : > { %v613_v41 = vpop.xlane.xlu0 %612 }
 0x348   : > { %v616_v42 = vpop.xlane.xlu1 %615  ;;  %v619_v43 = vsel %vm426_vm8, %v581_v20, %v613_v41 }
 0x349   : > { %v620_v44 = vsel %vm426_vm8, %v584_v15, %v616_v42  ;;  %624 = vst.msk [vmem:[%s289_s15 + $0x10] sm:$0xff] %vm621_vm15, %v619_v43 }
 0x34a   : > { %625 = vst.msk [vmem:[%s289_s15 + $0x18] sm:$0xff] %vm621_vm15, %v620_v44 }
 0x34b PF: > { %p13_p12 = scmp.ge.s32.totalorder %s959_s22, 4   ;;  %s1154_s18 = smov %s900_s19 }
 0x34c   : > { %s1155_s19 = smov %s969_s25  ;;  %s1156_s20 = smov %s959_s22 }
 0x34d   :  { %15 = sbr.rel (!%p13_p12) target bundleno = 2 (0x2), region = 132 }

// kernel: affine_layer_apply.8
= control target key start
LH: loop header
LB: loop body
LE: loop exit
PB: predicated region body
PF: predicated region fallthrough
CT: control target
= control target key end

     0   :  { %s885_s15 = smov 0   ;;  %s887_s16 = smov 0   ;;  %s1305_s0 = inlined_call_operand.vmem [shape: f32[32,512], index: 0, kind: input, shape index: {}]   ;;  %s1306_s1 = inlined_call_operand.vmem [shape: bf16[3,96], index: 1, kind: input, shape index: {}]   ;;  %s1307_s2 = inlined_call_operand.vmem [shape: bf16[3,105], index: 2, kind: input, shape index: {}]   ;;  %s1308_s3 = inlined_call_operand.vmem [shape: f32[3,4], index: 3, kind: input, shape index: {}]   ;;  %s1309_s4 = inlined_call_operand.vmem [shape: f32[3,512], index: 4, kind: output, shape index: {}]  }
   0x1   :  { %s889_s17 = smov 0  }
   0x2 LB: > { %s704_s18 = sadd.s32 4294967295, %s851_s17   ;;  %s902_s19 = sadd.s32 1, %s851_s17   ;;  %s851_s17 = sphi %s889_s17, %s1318_s17   ;;  %s847_s16 = sphi %s887_s16, %s1317_s16   ;;  %s843_s15 = sphi %s885_s15, %s1316_s15  }
   0x3   : > { %s18_s20 = ssub.s32 %s851_s17, %s902_s19  ;;  %s21_s21 = sadd.s32 1, %s847_s16 }
   0x4   : > { %p19_p0 = scmp.eq.s32.totalorder %s18_s20, 0  ;;  %p28_p1 = scmp.ne.s32.totalorder %s847_s16, %s843_s15 }
   0x5   : > { %p29_p2 = scmp.eq.s32.totalorder %s851_s17, 0  ;;  %p707_p4 = scmp.ge.s32.totalorder %s851_s17, 2 }
   0x6   : > { %s911_s22 = scalar_select %p19_p0, %s847_s16, %s21_s21  }
   0x7   : > { %p30_p3 = por %p29_p2, %p28_p1  ;;  %152 = sbr.rel (%p707_p4) target bundleno = 22 (0x16), region = 28 }
   0xe   : > { %155 = sbr.rel (!%p30_p3) target bundleno = 22 (0x16), region = 32  ;;  %s157_s23 = sand.u32 (%p30_p3), 1, %s847_s16  }
   0xf   : > { %s743_s24 = sshll.u32 (%p30_p3), %s851_s17, 4  ;;  %s708_s25 = sshll.u32 (%p30_p3), %s157_s23, 6 }
  0x10   : > { %s162_s28 = scalar_lea.vmem (%p30_p3), %s1305_s0, %s743_s24  ;;  %s159_s29 = scalar_lea.vmem (%p30_p3), [#allocation2], %s708_s25 }
  0x11   : > { %v175_v0 = vld [vmem:[%s162_s28] sm:$0xff] (%p30_p3)  ;;  %v177_v1 = vld [vmem:[%s162_s28 + $0x8] sm:$0xff] (%p30_p3) }
  0x12   : > { %v179_v2 = vld [vmem:[%s162_s28 + $0x20] sm:$0xff] (%p30_p3)  ;;  %176 = vst [vmem:[%s159_s29] sm:$0xff] (%p30_p3), %v175_v0  ;;  %178 = vst [vmem:[%s159_s29 + $0x8] sm:$0xff] (%p30_p3), %v177_v1  ;;  %v181_v3 = vld [vmem:[%s162_s28 + $0x28] sm:$0xff] (%p30_p3) }
  0x13   : > { %180 = vst [vmem:[%s159_s29 + $0x10] sm:$0xff] (%p30_p3), %v179_v2  ;;  %v183_v4 = vld [vmem:[%s162_s28 + $0x40] sm:$0xff] (%p30_p3)  ;;  %v185_v5 = vld [vmem:[%s162_s28 + $0x48] sm:$0xff] (%p30_p3)  ;;  %182 = vst [vmem:[%s159_s29 + $0x18] sm:$0xff] (%p30_p3), %v181_v3 }
  0x14   : > { %184 = vst [vmem:[%s159_s29 + $0x20] sm:$0xff] (%p30_p3), %v183_v4  ;;  %186 = vst [vmem:[%s159_s29 + $0x28] sm:$0xff] (%p30_p3), %v185_v5  ;;  %v187_v6 = vld [vmem:[%s162_s28 + $0x60] sm:$0xff] (%p30_p3)  ;;  %v189_v7 = vld [vmem:[%s162_s28 + $0x68] sm:$0xff] (%p30_p3) }
  0x15   : > { %188 = vst [vmem:[%s159_s29 + $0x30] sm:$0xff] %v187_v6  ;;  %190 = vst [vmem:[%s159_s29 + $0x38] sm:$0xff] %v189_v7 }
  0x16 PF: > { %p711_p5 = scmp.ge.s32.totalorder %s851_s17, 1  ;;  %p195_p6 = scmp.lt.s32.totalorder %s851_s17, 3 }
  0x18   : > { %p196_p7 = pnand %p711_p5, %p195_p6 }
  0x19   : > { %s202_s30 = sand.u32 (!%p196_p7), 1, %s843_s15   ;;  %s853_s7 = smov (!%p196_p7), 1   ;;  %v855_v26 = vmov (!%p196_p7), 0   ;;  %v969_v27 = vld [vmem:[%s1308_s3] sm:$0x7] (!%p196_p7)  ;;  %v856_v31 = vmov (!%p196_p7), 1   ;;  %v243_v35 = vlaneseq (!%p196_p7) }
  0x1a   : > { %199 = sbr.rel (%p196_p7) target bundleno = 774 (0x306), region = 55  ;;  %s712_s5 = sshll.u32 (!%p196_p7), %s202_s30, 6  ;;  %405 = vmatprep.mubr.bf16.mxu0 (!%p196_p7), %v855_v26  ;;  %815 = vset.pattern.permute.xlu0 (!%p196_p7), %v855_v26  ;;  %vm472_vm0 = vcmask (!%p196_p7), 1040384   ;;  %vm277_vm1 = vcmask (!%p196_p7), 7168   ;;  %vm322_vm6 = vcmask (!%p196_p7), 1039360   ;;  %vm369_vm11 = vcmask (!%p196_p7), 785408  }
  0x1b   : > { %s204_s6 = scalar_lea.vmem (!%p196_p7), [#allocation2], %s712_s5  ;;  %s854_s8 = smov (!%p196_p7), 127   ;;  %618 = vmatprep.mubr.bf16.mxu1 (!%p196_p7), %v855_v26  ;;  %816 = vset.pattern.permute.xlu1 (!%p196_p7), %v856_v31  ;;  %v991_v36 = vand.u32 (!%p196_p7), 127, %v243_v35  ;;  %vm545_vm14 = vcmask (!%p196_p7), 1042432   ;;  %vm548_vm15 = vcmask (!%p196_p7), 1045504  }
  0x1c   : > { %v922_v8 = vld [vmem:[%s204_s6 + $0x20] sm:$0xff] (!%p196_p7)  ;;  %v924_v9 = vld [vmem:[%s204_s6 + $0x28] sm:$0xff] (!%p196_p7)  ;;  %v932_v13 = vld [vmem:[%s204_s6 + $0x30] sm:$0xff] (!%p196_p7)  ;;  %s713_s15 = sshll.u32 (!%p196_p7), %s704_s18, 1 }
  0x1d   : > { %v926_v10 = vld [vmem:[%s204_s6] sm:$0xff] (!%p196_p7)  ;;  %v785_v11 = vpack.i.bf16 (!%p196_p7), %v924_v9, %v922_v8  ;;  %v930_v12 = vld [vmem:[%s204_s6 + $0x8] sm:$0xff] (!%p196_p7)  ;;  %v934_v14 = vld [vmem:[%s204_s6 + $0x38] sm:$0xff] (!%p196_p7)  ;;  %v810_v22 = vpack.i.bf16 (!%p196_p7), %v932_v13, %v922_v8  ;;  %v358_v25 = vpack.c.bf16 (!%p196_p7), %v932_v13, %v922_v8  ;;  %v497_v28 = vrot.slane (!%p196_p7), %v924_v9, 7  ;;  %p229_p8 = scmp.lt.s32.totalorder (!%p196_p7), %s713_s15, 3 }
  0x1e   : > { %v775_v15 = vpack.i.bf16 (!%p196_p7), %v930_v12, %v926_v10  ;;  %v938_v16 = vld [vmem:[%s204_s6 + $0x10] sm:$0xff] (!%p196_p7)  ;;  %v940_v17 = vld [vmem:[%s204_s6 + $0x18] sm:$0xff] (!%p196_p7)  ;;  %v790_v18 = vpack.i.bf16 (!%p196_p7), %v934_v14, %v932_v13  ;;  %v359_v23 = vpack.c.bf16 (!%p196_p7), %v934_v14, %v924_v9  ;;  %v805_v24 = vpack.i.bf16 (!%p196_p7), %v934_v14, %v924_v9 }
  0x1f   : > { %786 = vrot.lane.b32.xlu1 (!%p196_p7), %v785_v11, %s853_s7  ;;  %v780_v19 = vpack.i.bf16 (!%p196_p7), %v940_v17, %v938_v16  ;;  %v800_v20 = vpack.i.bf16 (!%p196_p7), %v938_v16, %v926_v10  ;;  %v795_v21 = vpack.i.bf16 (!%p196_p7), %v940_v17, %v930_v12  ;;  %v495_v29 = vrot.slane (!%p196_p7), %v922_v8, 7 }
  0x20   : > { %776 = vrot.lane.b32.xlu0 (!%p196_p7), %v775_v15, %s853_s7  ;;  %v501_v30 = vrot.slane (!%p196_p7), %v934_v14, 7  ;;  %v499_v32 = vrot.slane (!%p196_p7), %v932_v13, 7  ;;  %v245_v37 = vadd.s32 (!%p196_p7), 128, %v991_v36  ;;  %vm248_vm2 = vcmp.ne.s32.totalorder (!%p196_p7), %v991_v36, 0 }
  0x21   : > { %vm250_vm4 = vcmp.ne.s32.totalorder %v991_v36, 127  ;;  %v357_v56 = vpack.c.bf16 %v940_v17, %v930_v12  ;;  %v356_v57 = vpack.c.bf16 %v938_v16, %v926_v10  ;;  %v489_v0 = vrot.slane %v930_v12, 7  ;;  %vm1057_vm8 = vmpackc.low %vm248_vm2, %vm248_vm2  ;;  %s1320_s15 = smov (!%p229_p8, %s713_s15), 3 }
  0x22   : > { %v982_v33 = vsel %vm472_vm0, %v497_v28, %v501_v30  ;;  %v989_v34 = vsel %vm472_vm0, %v495_v29, %v499_v32  ;;  %v247_v38 = vand.u32 127, %v245_v37  ;;  %v487_v1 = vrot.slane %v926_v10, 7  ;;  %vm730_vm10 = vmpackc.low %vm250_vm4, %vm250_vm4  ;;  %s714_s20 = sshll.u32 %s1320_s15, 2 }
  0x23   : > { %791 = vrot.lane.b32.xlu1 %v790_v18, %s853_s7  ;;  %v859_v36 = vmov 65535   ;;  %s232_s17 = scalar_lea.vmem %s1309_s4, %s714_s20 }
  0x24   : > { %781 = vrot.lane.b32.xlu0 %v780_v19, %s853_s7  ;;  %vm995_vm3 = vcmp.ne.s32.totalorder %v247_v38, 0  ;;  %vm1011_vm5 = vcmp.ne.s32.totalorder %v247_v38, 127 }
  0x25   : > { %vm715_vm7 = vmpackc.low %vm995_vm3, %vm995_vm3 }
  0x26   : > { %vm727_vm9 = vmpackc.low %vm1011_vm5, %vm1011_vm5 }
  0x27   : > { %801 = vrot.lane.b32.xlu1 %v800_v20, %s854_s8 }
  0x28   : > { %796 = vrot.lane.b32.xlu0 %v795_v21, %s854_s8 }
  0x2b   : > { %811 = vrot.lane.b32.xlu1 %v810_v22, %s854_s8 }
  0x2c   : > { %806 = vrot.lane.b32.xlu0 %v805_v24, %s854_s8 }
  0x2f   : > { %417 = vperm.xlu1 %816, %v969_v27  }
  0x30   : > { %366 = vperm.xlu0 %815, %v969_v27  }
  0x91   : > { %v787_v39 = vpop.permute.xlu1 %786 }
  0x92   : > { %v789_v40 = vunpack.i.h.bf16 %v787_v39  ;;  %v788_v41 = vunpack.i.l.bf16 %v787_v39  ;;  %v777_v42 = vpop.permute.xlu0 %776 }
  0x93   : > { %v779_v43 = vunpack.i.h.bf16 %v777_v42  ;;  %v778_v44 = vunpack.i.l.bf16 %v777_v42 }
  0x94   : > { %v280_v46 = vsel %vm277_vm1, %v788_v41, %v789_v40  ;;  %v1001_v47 = vsel %vm277_vm1, 0.0, %v788_v41 }
  0x95   : > { %v1006_v48 = vsel %vm248_vm2, %v1001_v47, 0.0  ;;  %v290_v49 = vsel %vm277_vm1, 0.0, %v778_v44  ;;  %v792_v50 = vpop.permute.xlu1 %791  ;;  %v278_v51 = vsel %vm277_vm1, %v778_v44, %v779_v43  ;;  %v303_v53 = vsel %vm995_vm3, %v280_v46, 0.0 }
  0x96   : > { %v794_v54 = vunpack.i.h.bf16 %v792_v50  ;;  %v782_v55 = vpop.permute.xlu0 %781  ;;  %v1023_v58 = vsel %vm248_vm2, %v290_v49, 0.0  ;;  %v793_v59 = vunpack.i.l.bf16 %v792_v50  ;;  %v479_v62 = vrot.slane %v1006_v48, 7 }
  0x97   : > { %v784_v60 = vunpack.i.h.bf16 %v782_v55  ;;  %v783_v61 = vunpack.i.l.bf16 %v782_v55  ;;  %v299_v63 = vsel %vm995_vm3, %v278_v51, 0.0  ;;  %v1034_v7 = vrot.slane %v303_v53, 7 }
  0x98   : > { %v281_v2 = vsel %vm277_vm1, %v793_v59, %v794_v54  ;;  %v293_v3 = vsel %vm277_vm1, 0.0, %v793_v59  ;;  %v473_v11 = vrot.slane %v1023_v58, 7  ;;  %v1052_v35 = vrot.slane %v299_v63, 7 }
  0x99   : > { %v291_v4 = vsel %vm277_vm1, 0.0, %v783_v61  ;;  %v279_v5 = vsel %vm277_vm1, %v783_v61, %v784_v60  ;;  %v802_v6 = vpop.permute.xlu1 %801  ;;  %v1039_v15 = vsel %vm248_vm2, %v293_v3, 0.0  ;;  %v305_v18 = vsel %vm995_vm3, %v281_v2, 0.0 }
  0x9a   : > { %v797_v19 = vpop.permute.xlu0 %796  ;;  %v722_v20 = vpack.c.bf16 %v281_v2, %v280_v46  ;;  %v725_v21 = vpack.c.bf16 %v293_v3, %v1001_v47  ;;  %v483_v22 = vrot.slane %v1039_v15, 7  ;;  %v301_v24 = vsel %vm995_vm3, %v279_v5, 0.0 }
  0x9b   : > { %v300_v26 = vsel %vm248_vm2, %v291_v4, 0.0  ;;  %v716_v31 = vpack.c.bf16 %v279_v5, %v278_v51  ;;  %v477_v37 = vrot.slane %v301_v24, 7  ;;  %v719_v39 = vpack.c.bf16 %v291_v4, %v290_v49 }
  0x9c   : > { %v804_v40 = vunpack.i.h.bf16 %v802_v6  ;;  %v803_v41 = vunpack.i.l.bf16 %v802_v6  ;;  %v799_v42 = vunpack.i.h.bf16 %v797_v19  ;;  %v798_v44 = vunpack.i.l.bf16 %v797_v19 }
  0x9d   : > { %v812_v43 = vpop.permute.xlu1 %811  ;;  %717 = vmatprep.subr.msk.bf16.mxu0 %vm715_vm7, %v716_v31  ;;  %v1068_v51 = vsel %vm472_vm0, %v1052_v35, %v477_v37  ;;  %v485_v2 = vrot.slane %v305_v18, 7  ;;  %v475_v3 = vrot.slane %v300_v26, 7 }
  0x9e   : > { %v814_v46 = vunpack.i.h.bf16 %v812_v43  ;;  %v813_v47 = vunpack.i.l.bf16 %v812_v43  ;;  %v807_v50 = vpop.permute.xlu0 %806  ;;  %720 = vmatpush1.bf16.msk.msra.mxu0 %vm1057_vm8, %v719_v39  ;;  %v1073_v49 = vsel %vm322_vm6, %v804_v40, %v799_v42  ;;  %v336_v53 = vsel %vm322_vm6, %v799_v42, 0.0 }
  0x9f   : > { %v809_v54 = vunpack.i.h.bf16 %v807_v50  ;;  %v808_v55 = vunpack.i.l.bf16 %v807_v50  ;;  %723 = vmatprep.subr.msk.bf16.mxu0 %vm715_vm7, %v722_v20  ;;  %v345_v59 = vsel %vm250_vm4, %v1073_v49, 0.0  ;;  %v346_v60 = vsel %vm1011_vm5, %v336_v53, 0.0 }
  0xa0   : > { %v323_v61 = vsel %vm322_vm6, %v803_v41, %v798_v44  ;;  %v335_v63 = vsel %vm322_vm6, %v798_v44, 0.0  ;;  %v507_v4 = vrot.slane %v345_v59, 7  ;;  %v509_v5 = vrot.slane %v346_v60, 7 }
  0xa1   : > { %v343_v6 = vsel %vm250_vm4, %v323_v61, 0.0  ;;  %v344_v19 = vsel %vm1011_vm5, %v335_v63, 0.0  ;;  %v728_v20 = vpack.c.bf16 %v336_v53, %v335_v63  ;;  %v731_v24 = vpack.c.bf16 %v1073_v49, %v323_v61 }
  0xa2   : > { %726 = vmatpush1.bf16.msk.msra.mxu0 %vm1057_vm8, %v725_v21  ;;  %v326_v31 = vsel %vm322_vm6, %v814_v46, %v809_v54  ;;  %v338_v39 = vsel %vm322_vm6, %v809_v54, 0.0  ;;  %v325_v18 = vsel %vm322_vm6, %v813_v47, %v808_v55  ;;  %v337_v26 = vsel %vm322_vm6, %v808_v55, 0.0 }
  0xa3   : > { %377 = vmatprep.subr.bf16.mxu0 %v357_v56  ;;  %v349_v40 = vsel %vm250_vm4, %v326_v31, 0.0  ;;  %v350_v41 = vsel %vm1011_vm5, %v338_v39, 0.0  ;;  %v347_v21 = vsel %vm250_vm4, %v325_v18, 0.0  ;;  %v348_v38 = vsel %vm1011_vm5, %v337_v26, 0.0 }
  0xa4   : > { %v503_v42 = vrot.slane %v343_v6, 7  ;;  %v505_v43 = vrot.slane %v344_v19, 7  ;;  %v515_v44 = vrot.slane %v349_v40, 7  ;;  %v1110_v46 = vrot.slane %v350_v41, 7  ;;  %v351_v19 = vld [vmem:[%s1306_s1] sm:$0x3] }
  0xa5   : > { %v511_v47 = vrot.slane %v347_v21, 7  ;;  %v513_v50 = vrot.slane %v348_v38, 7  ;;  %v1114_v56 = vsel %vm472_vm0, %v477_v37, %v1034_v7  ;;  %v1119_v49 = vsel %vm472_vm0, %v473_v11, %v475_v3 }
  0xa6   : > { %378 = vmatpush1.bf16.msra.mxu0 %v356_v57  ;;  %v557_v53 = vpack.c.bf16 %v1114_v56, %v1068_v51  ;;  %v1129_v54 = vsel %vm472_vm0, %v475_v3, %v479_v62  ;;  %v1133_v37 = vsel %vm472_vm0, %v1034_v7, %v485_v2  ;;  %v1138_v55 = vsel %vm472_vm0, %v485_v2, %v489_v0 }
  0xa7   : > { %379 = vmatprep.subr.bf16.mxu0 %v359_v23  ;;  %v556_v57 = vpack.c.bf16 %v1129_v54, %v1119_v49  ;;  %v559_v59 = vpack.c.bf16 %v1138_v55, %v1133_v37  ;;  %v1152_v7 = vsel %vm472_vm0, %v479_v62, %v483_v22  ;;  %v1159_v60 = vsel %vm472_vm0, %v483_v22, %v487_v1 }
  0xa8   : > { %v558_v23 = vpack.c.bf16 %v1159_v60, %v1152_v7  ;;  %v1169_v48 = vsel %vm472_vm0, %v501_v30, %v505_v43  ;;  %v1174_v62 = vsel %vm472_vm0, %v499_v32, %v503_v42  ;;  %v1177_v15 = vsel %vm472_vm0, %v505_v43, %v509_v5 }
  0xa9   : > { %v563_v22 = vpack.c.bf16 %v1169_v48, %v982_v33  ;;  %v562_v61 = vpack.c.bf16 %v1174_v62, %v989_v34  ;;  %v1184_v63 = vsel %vm472_vm0, %v509_v5, %v513_v50  ;;  %v1187_v14 = vsel %vm472_vm0, %v503_v42, %v507_v4  ;;  %v553_v34 = vld [vmem:[%s1307_s2] sm:$0x3] }
  0xaa   : > { %380 = vmatpush1.bf16.msra.mxu0 %v358_v25  ;;  %v565_v30 = vpack.c.bf16 %v1184_v63, %v1177_v15  ;;  %v1195_v32 = vsel %vm472_vm0, %v507_v4, %v511_v47  ;;  %v1199_v2 = vsel %vm472_vm0, %v513_v50, %v1110_v46  ;;  %v516_v3 = vsel %vm472_vm0, %v511_v47, %v515_v44 }
  0xab   : > { %v734_v5 = vpack.c.bf16 %v338_v39, %v337_v26  ;;  %729 = vmatprep.subr.msk.bf16.mxu0 %vm727_vm9, %v728_v20  ;;  %v564_v13 = vpack.c.bf16 %v1195_v32, %v1187_v14  ;;  %v567_v25 = vpack.c.bf16 %v1110_v46, %v1199_v2  ;;  %v1214_v4 = vpack.c.bf16 %v515_v44, %v516_v3 }
  0xac   : > { %v737_v6 = vpack.c.bf16 %v326_v31, %v325_v18  ;;  %v493_v50 = vrot.slane %v940_v17, 7  ;;  %v491_v3 = vrot.slane %v938_v16, 7  ;;  %v858_v16 = vmov 3  }
  0xad   : > { %828 = vset.pattern.permute.xlu0 %v858_v16 }
  0xae   : > { %732 = vmatpush1.bf16.msk.msra.mxu0 %vm730_vm10, %v731_v24  ;;  %v418_v26 = vpop.permute.xlu1 %417 }
  0xaf   : > { %735 = vmatprep.subr.msk.bf16.mxu0 %vm727_vm9, %v734_v5  ;;  %v367_v20 = vpop.permute.xlu0 %366  ;;  %v494_v5 = vsel %vm472_vm0, %v489_v0, %v493_v50 }
  0xb2   : > { %738 = vmatpush1.bf16.msk.msra.mxu0 %vm730_vm10, %v737_v6  ;;  %v498_v6 = vsel %vm472_vm0, %v493_v50, %v497_v28 }
  0xb5   : > { %739 = vmatmul.mubr.msk.bf16.vlgmr.msra.gmra.mrb[0].mxu0 %vm369_vm11, %v351_v19  ;;  %v561_v19 = vpack.c.bf16 %v498_v6, %v494_v5 }
 0x188   : > { %v407_v39 = vpop.f32.mrb[0].mxu0 }
 0x189   : > { %v408_v40 = vadd.f32 %v407_v39, %v367_v20  ;;  %v409_v41 = vpop.f32.mrb[1].mxu0  ;;  %v496_v39 = vsel %vm472_vm0, %v491_v3, %v495_v29 }
 0x18a   : > { %v410_v31 = vadd.f32 %v409_v41, %v367_v20  ;;  %v411_v24 = vpop.f32.mrb[2].mxu0  ;;  %v492_v20 = vsel %vm472_vm0, %v487_v1, %v491_v3 }
 0x18b   : > { %vm414_vm12 = vcmp.ge.f32.partialorder %v408_v40, 0.0  ;;  %v420_v18 = vmul.f32 %v418_v26, %v408_v40  ;;  %v412_v21 = vpop.f32.mrb[3].mxu0  ;;  %v560_v17 = vpack.c.bf16 %v496_v39, %v492_v20 }
 0x18c   : > { %vm415_vm13 = vcmp.ge.f32.partialorder %v410_v31, 0.0  ;;  %v421_v38 = vmul.f32 %v418_v26, %v410_v31  ;;  %v857_v26 = vmov 2  }
 0x18d   : > { %v422_v42 = vsel %vm414_vm12, %v408_v40, %v420_v18  ;;  %827 = vset.pattern.permute.xlu1 %v857_v26 }
 0x18e   : > { %v423_v43 = vsel %vm415_vm13, %v410_v31, %v421_v38  ;;  %v446_v1 = vrot.slane %v422_v42, 5 }
 0x18f   : > { %v822_v44 = vpack.i.bf16 %v423_v43, %v422_v42  ;;  %v817_v47 = vpack.i.bf16 %v422_v42, %v423_v43  ;;  %v447_v41 = vrot.slane %v423_v43, 5 }
 0x191   : > { %823 = vrot.lane.b32.xlu0 %v822_v44, %s853_s7  ;;  %818 = vrot.lane.b32.xlu1 %v817_v47, %s854_s8 }
 0x195   : > { %569 = vperm.xlu1 %827, %v969_v27   ;;  %630 = vperm.xlu0 %828, %v969_v27  }
 0x203   : > { %v824_v9 = vpop.permute.xlu0 %823  ;;  %v819_v12 = vpop.permute.xlu1 %818 }
 0x204   : > { %v826_v28 = vunpack.i.h.bf16 %v824_v9  ;;  %v825_v0 = vunpack.i.l.bf16 %v824_v9  ;;  %v821_v10 = vunpack.i.h.bf16 %v819_v12  ;;  %v820_v40 = vunpack.i.l.bf16 %v819_v12 }
 0x206   : > { %v430_v8 = vsel %vm277_vm1, %v825_v0, %v826_v28  ;;  %v433_v29 = vsel %vm277_vm1, 0.0, %v825_v0  ;;  %v440_v31 = vsel %vm322_vm6, %v821_v10, %v820_v40  ;;  %v443_v24 = vsel %vm322_vm6, %v820_v40, 0.0 }
 0x207   : > { %v434_v27 = vsel %vm248_vm2, %v433_v29, 0.0  ;;  %v445_v18 = vsel %vm1011_vm5, %v443_v24, 0.0  ;;  %v435_v21 = vsel %vm995_vm3, %v430_v8, 0.0  ;;  %v444_v38 = vsel %vm250_vm4, %v440_v31, 0.0 }
 0x208   : > { %v453_v42 = vrot.slane %v445_v18, 2  ;;  %v547_v43 = vsel %vm545_vm14, %v435_v21, %v447_v41  ;;  %v452_v44 = vrot.slane %v444_v38, 2  ;;  %v546_v47 = vsel %vm545_vm14, %v434_v27, %v446_v1 }
 0x209   : > { %vm577_vm1 = vcmask 1044480   ;;  %vm572_vm2 = vcmask 859136  }
 0x20a   : > { %v550_v50 = vsel %vm548_vm15, %v547_v43, %v453_v42  ;;  %v552_v3 = vsel %vm472_vm0, %v453_v42, %v1052_v35  ;;  %v549_v5 = vsel %vm548_vm15, %v546_v47, %v452_v44  ;;  %v551_v52 = vsel %vm472_vm0, %v452_v44, %v473_v11 }
 0x20b   : > { %v555_v6 = vpack.c.bf16 %v552_v3, %v550_v50  ;;  %v554_v20 = vpack.c.bf16 %v551_v52, %v549_v5  ;;  %vm576_vm0 = vcmask 1043456  }
 0x20c   : > { %v578_v45 = vsel %vm576_vm0, 4294967295, %v859_v36 }
 0x20d   : > { %586 = vmatprep.subr.bf16.mxu1 %v555_v6  ;;  %v579_v58 = vsel %vm577_vm1, %v578_v45, 0 }
 0x20e   : > { %587 = vmatpush1.bf16.msra.mxu1 %v554_v20  ;;  %v584_v11 = vand.u32 %v579_v58, %v567_v25  ;;  %v581_v33 = vand.u32 %v579_v58, %v1214_v4 }
 0x20f   : > { %588 = vmatprep.subr.bf16.mxu1 %v557_v53 }
 0x212   : > { %589 = vmatpush1.bf16.msra.mxu1 %v556_v57 }
 0x213   : > { %590 = vmatprep.subr.bf16.mxu1 %v559_v59 }
 0x214   : > { %v570_v35 = vpop.permute.xlu1 %569  ;;  %v631_v46 = vpop.permute.xlu0 %630 }
 0x216   : > { %591 = vmatpush1.bf16.msra.mxu1 %v558_v23 }
 0x217   : > { %592 = vmatprep.subr.bf16.mxu1 %v561_v19 }
 0x21a   : > { %593 = vmatpush1.bf16.msra.mxu1 %v560_v17 }
 0x21b   : > { %594 = vmatprep.subr.bf16.mxu1 %v563_v22 }
 0x21e   : > { %595 = vmatpush1.bf16.msra.mxu1 %v562_v61 }
 0x21f   : > { %596 = vmatprep.subr.bf16.mxu1 %v565_v30 }
 0x222   : > { %597 = vmatpush1.bf16.msra.mxu1 %v564_v13 }
 0x223   : > { %598 = vmatprep.subr.bf16.mxu1 %v584_v11 }
 0x226   : > { %599 = vmatpush1.bf16.msra.mxu1 %v581_v33 }
 0x229   : > { %740 = vmatmul.mubr.msk.bf16.vlgmr.msra.gmra.mrb[0].mxu1 %vm572_vm2, %v553_v34 }
 0x2fc   : > { %v620_v51 = vpop.f32.mrb[0].mxu1 }
 0x2fd   : > { %v621_v56 = vadd.f32 %v620_v51, %v570_v35  ;;  %v622_v49 = vpop.f32.mrb[1].mxu1 }
 0x2fe   : > { %v623_v53 = vadd.f32 %v622_v49, %v570_v35  ;;  %v624_v54 = vpop.f32.mrb[2].mxu1 }
 0x2ff   : > { %vm627_vm3 = vcmp.ge.f32.partialorder %v621_v56, 0.0  ;;  %v633_v37 = vmul.f32 %v631_v46, %v621_v56  ;;  %v625_v55 = vpop.f32.mrb[3].mxu1 }
 0x300   : > { %vm628_vm4 = vcmp.ge.f32.partialorder %v623_v53, 0.0  ;;  %v634_v57 = vmul.f32 %v631_v46, %v623_v53 }
 0x301   : > { %v635_v59 = vsel %vm627_vm3, %v621_v56, %v633_v37 }
 0x302   : > { %v636_v7 = vsel %vm628_vm4, %v623_v53, %v634_v57 }
 0x303   : > { %v639_v60 = vcombine.low %v635_v59, %v636_v7 }
 0x305   : > { %641 = vst [vmem:[%s232_s17] sm:$0x77] %v639_v60 }
 0x306 PF: > { %p11_p9 = scmp.ge.s32.totalorder %s902_s19, 4   ;;  %s1316_s15 = smov %s847_s16 }
 0x307   : > { %s1317_s16 = smov %s911_s22  ;;  %s1318_s17 = smov %s902_s19 }
 0x308   :  { %13 = sbr.rel (!%p11_p9) target bundleno = 2 (0x2), region = 94 }

// kernel: affine_layer_apply.12
= control target key start
LH: loop header
LB: loop body
LE: loop exit
PB: predicated region body
PF: predicated region fallthrough
CT: control target
= control target key end

     0   :  { %s1304_s24 = smov 0   ;;  %s1306_s25 = smov 0   ;;  %s1591_s0 = inlined_call_operand.vmem [shape: f32[32,512], index: 0, kind: input, shape index: {}]   ;;  %s1592_s1 = inlined_call_operand.vmem [shape: f32[32,3], index: 1, kind: input, shape index: {}]   ;;  %s1593_s2 = inlined_call_operand.vmem [shape: f32[32,512], index: 2, kind: input, shape index: {}]   ;;  %s1594_s3 = inlined_call_operand.vmem [shape: f32[32,3], index: 3, kind: input, shape index: {}]   ;;  %s1595_s4 = inlined_call_operand.vmem [shape: f32[3,512], index: 4, kind: input, shape index: {}]   ;;  %s1596_s5 = inlined_call_operand.vmem [shape: bf16[32,134], index: 5, kind: input, shape index: {}]   ;;  %s1597_s6 = inlined_call_operand.vmem [shape: f32[32,512], index: 6, kind: output, shape index: {0}]   ;;  %s1598_s7 = inlined_call_operand.vmem [shape: f32[2,32,2], index: 7, kind: output, shape index: {1}]  }
   0x1   :  { %s1308_s26 = smov 0  }
   0x2 LB: > { %s1320_s27 = sadd.s32 4294967295, %s1258_s26   ;;  %s1323_s28 = sadd.s32 1, %s1258_s26   ;;  %s1258_s26 = sphi %s1308_s26, %s1609_s26   ;;  %s1254_s25 = sphi %s1306_s25, %s1608_s25   ;;  %s1250_s24 = sphi %s1304_s24, %s1607_s24  }
   0x3   : > { %s22_s29 = ssub.s32 %s1258_s26, %s1323_s28  ;;  %s25_s30 = sadd.s32 1, %s1254_s25 }
   0x4   : > { %p23_p0 = scmp.eq.s32.totalorder %s22_s29, 0  ;;  %p32_p1 = scmp.ne.s32.totalorder %s1254_s25, %s1250_s24 }
   0x5   : > { %p33_p2 = scmp.eq.s32.totalorder %s1258_s26, 0  ;;  %p177_p3 = scmp.eq.s32.totalorder %s1320_s27, 1 }
   0x6   : > { %s1333_s8 = scalar_select %p23_p0, %s1254_s25, %s25_s30  }
   0x7   : > { %p1335_p4 = por %p33_p2, %p32_p1  ;;  %p1339_p5 = por %p177_p3, %p32_p1 }
   0x8   : > { %p1066_p6 = scmp.ge.s32.totalorder %s1258_s26, 2 }
   0xa   : > { %234 = sbr.rel (%p1066_p6) target bundleno = 33 (0x21), region = 28 }
  0x11   : > { %237 = sbr.rel (!%p1335_p4) target bundleno = 25 (0x19), region = 32  ;;  %s239_s11 = sand.u32 (%p1335_p4), 1, %s1254_s25  }
  0x12   : > { %s1117_s12 = sshll.u32 (%p1335_p4), %s1258_s26, 4  ;;  %s1067_s13 = sshll.u32 (%p1335_p4), %s239_s11, 6 }
  0x13   : > { %s244_s16 = scalar_lea.vmem (%p1335_p4), %s1591_s0, %s1117_s12  ;;  %s241_s17 = scalar_lea.vmem (%p1335_p4), [#allocation2], %s1067_s13 }
  0x14   : > { %v257_v0 = vld [vmem:[%s244_s16] sm:$0xff] (%p1335_p4)  ;;  %v259_v1 = vld [vmem:[%s244_s16 + $0x8] sm:$0xff] (%p1335_p4) }
  0x15   : > { %v261_v2 = vld [vmem:[%s244_s16 + $0x20] sm:$0xff] (%p1335_p4)  ;;  %258 = vst [vmem:[%s241_s17] sm:$0xff] (%p1335_p4), %v257_v0  ;;  %260 = vst [vmem:[%s241_s17 + $0x8] sm:$0xff] (%p1335_p4), %v259_v1  ;;  %v263_v3 = vld [vmem:[%s244_s16 + $0x28] sm:$0xff] (%p1335_p4) }
  0x16   : > { %262 = vst [vmem:[%s241_s17 + $0x10] sm:$0xff] (%p1335_p4), %v261_v2  ;;  %v265_v4 = vld [vmem:[%s244_s16 + $0x40] sm:$0xff] (%p1335_p4)  ;;  %v267_v5 = vld [vmem:[%s244_s16 + $0x48] sm:$0xff] (%p1335_p4)  ;;  %264 = vst [vmem:[%s241_s17 + $0x18] sm:$0xff] (%p1335_p4), %v263_v3 }
  0x17   : > { %266 = vst [vmem:[%s241_s17 + $0x20] sm:$0xff] (%p1335_p4), %v265_v4  ;;  %268 = vst [vmem:[%s241_s17 + $0x28] sm:$0xff] (%p1335_p4), %v267_v5  ;;  %v269_v6 = vld [vmem:[%s244_s16 + $0x60] sm:$0xff] (%p1335_p4)  ;;  %v271_v7 = vld [vmem:[%s244_s16 + $0x68] sm:$0xff] (%p1335_p4) }
  0x18   : > { %270 = vst [vmem:[%s241_s17 + $0x30] sm:$0xff] %v269_v6  ;;  %272 = vst [vmem:[%s241_s17 + $0x38] sm:$0xff] %v271_v7 }
  0x19 PF: > { %278 = sbr.rel (!%p1335_p4) target bundleno = 33 (0x21), region = 55  ;;  %s280_s18 = sand.u32 (%p1335_p4), 1, %s1254_s25  }
  0x1a   : > { %s1118_s19 = sshll.u32 (%p1335_p4), %s1258_s26, 4  ;;  %s1070_s20 = sshll.u32 (%p1335_p4), %s280_s18, 6 }
  0x1b   : > { %s285_s23 = scalar_lea.vmem (%p1335_p4), %s1593_s2, %s1118_s19  ;;  %s282_s29 = scalar_lea.vmem (%p1335_p4), [#allocation3], %s1070_s20 }
  0x1c   : > { %v298_v8 = vld [vmem:[%s285_s23] sm:$0xff] (%p1335_p4)  ;;  %v300_v9 = vld [vmem:[%s285_s23 + $0x8] sm:$0xff] (%p1335_p4) }
  0x1d   : > { %v302_v10 = vld [vmem:[%s285_s23 + $0x20] sm:$0xff] (%p1335_p4)  ;;  %299 = vst [vmem:[%s282_s29] sm:$0xff] (%p1335_p4), %v298_v8  ;;  %301 = vst [vmem:[%s282_s29 + $0x8] sm:$0xff] (%p1335_p4), %v300_v9  ;;  %v304_v11 = vld [vmem:[%s285_s23 + $0x28] sm:$0xff] (%p1335_p4) }
  0x1e   : > { %303 = vst [vmem:[%s282_s29 + $0x10] sm:$0xff] (%p1335_p4), %v302_v10  ;;  %v306_v12 = vld [vmem:[%s285_s23 + $0x40] sm:$0xff] (%p1335_p4)  ;;  %v308_v13 = vld [vmem:[%s285_s23 + $0x48] sm:$0xff] (%p1335_p4)  ;;  %305 = vst [vmem:[%s282_s29 + $0x18] sm:$0xff] (%p1335_p4), %v304_v11 }
  0x1f   : > { %307 = vst [vmem:[%s282_s29 + $0x20] sm:$0xff] (%p1335_p4), %v306_v12  ;;  %309 = vst [vmem:[%s282_s29 + $0x28] sm:$0xff] (%p1335_p4), %v308_v13  ;;  %v310_v14 = vld [vmem:[%s285_s23 + $0x60] sm:$0xff] (%p1335_p4)  ;;  %v312_v15 = vld [vmem:[%s285_s23 + $0x68] sm:$0xff] (%p1335_p4) }
  0x20   : > { %311 = vst [vmem:[%s282_s29 + $0x30] sm:$0xff] %v310_v14  ;;  %313 = vst [vmem:[%s282_s29 + $0x38] sm:$0xff] %v312_v15 }
  0x21 PF: > { %p1073_p7 = scmp.ge.s32.totalorder %s1258_s26, 1  ;;  %p327_p8 = scmp.lt.s32.totalorder %s1258_s26, 3 }
  0x23   : > { %p328_p9 = pnand %p1073_p7, %p327_p8 }
  0x24   : > { %v415_v16 = vld [vmem:[%s1592_s1] sm:$0xff] (!%p328_p9)  ;;  %v1260_v17 = vmov (!%p328_p9), 2   ;;  %v1261_v18 = vmov (!%p328_p9), 1   ;;  %v416_v19 = vld [vmem:[%s1592_s1 + $0x8] sm:$0xff] (!%p328_p9)  ;;  %v418_v20 = vld [vmem:[%s1592_s1 + $0x18] sm:$0xff] (!%p328_p9)  ;;  %v1262_v21 = vmov (!%p328_p9), 0  }
  0x25   : > { %331 = sbr.rel (%p328_p9) target bundleno = 889 (0x379), region = 82  ;;  %1169 = vset.pattern.permute.xlu0 (!%p328_p9), %v1260_v17  ;;  %1167 = vset.pattern.permute.xlu1 (!%p328_p9), %v1261_v18  ;;  %v417_v22 = vld [vmem:[%s1592_s1 + $0x10] sm:$0xff] (!%p328_p9)  ;;  %v572_v23 = vld [vmem:[%s1594_s3] sm:$0xff] (!%p328_p9)  ;;  %v573_v24 = vld [vmem:[%s1594_s3 + $0x8] sm:$0xff] (!%p328_p9)  ;;  %s334_s29 = sand.u32 (!%p328_p9), 1, %s1250_s24  }
  0x26   : > { %480 = vperm.xlu0 (!%p328_p9), %1169, %v415_v16   ;;  %448 = vperm.xlu1 (!%p328_p9), %1167, %v415_v16   ;;  %v575_v25 = vld [vmem:[%s1594_s3 + $0x18] sm:$0xff] (!%p328_p9)  ;;  %v574_v26 = vld [vmem:[%s1594_s3 + $0x10] sm:$0xff] (!%p328_p9)  ;;  %s1385_s30 = sshll.u32 (!%p328_p9), %s334_s29, 6  ;;  %s1263_s24 = smov (!%p328_p9), 1  }
  0x27   : > { %s336_s9 = scalar_lea.vmem (!%p328_p9), [#allocation2], %s1385_s30  ;;  %s1396_s11 = scalar_lea.vmem (!%p328_p9), [#allocation3], %s1385_s30 }
  0x28   : > { %v407_v31 = vld [vmem:[%s336_s9] sm:$0xff] (!%p328_p9)  ;;  %v408_v32 = vld [vmem:[%s336_s9 + $0x8] sm:$0xff] (!%p328_p9)  ;;  %v409_v37 = vld [vmem:[%s336_s9 + $0x10] sm:$0xff] (!%p328_p9)  ;;  %s1077_s12 = sshll.u32 (!%p328_p9), %s1320_s27, 1  ;;  %s1548_s29 = scalar_lea.vmem (!%p328_p9), [#allocation4], %s1385_s30 }
  0x29   : > { %v410_v38 = vld [vmem:[%s336_s9 + $0x18] sm:$0xff] (!%p328_p9)  ;;  %v411_v47 = vld [vmem:[%s336_s9 + $0x20] sm:$0xff] (!%p328_p9)  ;;  %v412_v48 = vld [vmem:[%s336_s9 + $0x28] sm:$0xff] (!%p328_p9)  ;;  %p388_p10 = scmp.lt.s32.totalorder (!%p328_p9), %s1077_s12, 3  ;;  %p394_p11 = scmp.lt.s32.totalorder (!%p328_p9), %s1320_s27, 1 }
  0x2a   : > { %1172 = vset.pattern.permute.xlu0 (!%p328_p9), %v1261_v18  ;;  %452 = vperm.xlu1 (!%p328_p9), %1167, %v416_v19   ;;  %v413_v49 = vld [vmem:[%s336_s9 + $0x30] sm:$0xff] (!%p328_p9)  ;;  %v414_v54 = vld [vmem:[%s336_s9 + $0x38] sm:$0xff] (!%p328_p9) }
  0x2b   : > { %460 = vperm.xlu0 (!%p328_p9), %1172, %v418_v20  }
  0x2c   : > { %s1611_s12 = smov (!%p388_p10, %s1077_s12), 3 }
  0x2d   : > { %s1078_s13 = sshll.u32 %s1611_s12, 2 }
  0x2e   : > { %1168 = vset.pattern.permute.xlu1 %v1262_v21  ;;  %s391_s15 = scalar_lea.vmem %s1595_s4, %s1078_s13  ;;  %s1120_s13 = sshll.u32 (%p1339_p5), %s1320_s27, 4 }
  0x2f   : > { %1173 = vset.pattern.permute.xlu0 %v1262_v21  ;;  %436 = vperm.xlu1 %1168, %v418_v20   ;;  %s395_s30 = scalar_select %p394_p11, %s1320_s27, 1 }
  0x30   : > { %421 = vperm.xlu0 %1173, %v415_v16  }
  0x31   : > { %s1119_s9 = sshll.u32 %s395_s30, 5 }
  0x32   : > { %s398_s12 = scalar_lea.vmem %s1598_s7, %s1119_s9 }
  0x33   : > { %1170 = vset.pattern.permute.xlu1 %v1260_v17 }
  0x34   : > { %426 = vperm.xlu0 %1173, %v416_v19   ;;  %484 = vperm.xlu1 %1170, %v416_v19  }
  0x38   : > { %431 = vperm.xlu0 %1173, %v417_v22   ;;  %1171 = vset.pattern.permute.xlu1 %v1261_v18 }
  0x39   : > { %456 = vperm.xlu1 %1171, %v417_v22  }
  0x3c   : > { %578 = vperm.xlu0 %1173, %v572_v23  }
  0x3d   : > { %1174 = vset.pattern.permute.xlu1 %v1260_v17 }
  0x3e   : > { %488 = vperm.xlu1 %1174, %v417_v22  }
  0x40   : > { %1178 = vset.pattern.permute.xlu0 %v1260_v17 }
  0x41   : > { %637 = vperm.xlu0 %1178, %v572_v23  }
  0x42   : > { %492 = vperm.xlu1 %1174, %v418_v20   ;;  %v564_v20 = vld [vmem:[%s1396_s11] sm:$0xff] }
  0x45   : > { %1179 = vset.pattern.permute.xlu0 %v1261_v18 }
  0x46   : > { %1175 = vset.pattern.permute.xlu1 %v1262_v21  ;;  %609 = vperm.xlu0 %1179, %v573_v24  }
  0x47   : > { %583 = vperm.xlu1 %1175, %v573_v24  }
  0x4a   : > { %617 = vperm.xlu0 %1179, %v575_v25  }
  0x4b   : > { %1176 = vset.pattern.permute.xlu1 %v1261_v18 }
  0x4c   : > { %605 = vperm.xlu1 %1176, %v572_v23  }
  0x4e   : > { %1228 = vset.pattern.permute.xlu0 %v1260_v17 }
  0x50   : > { %1177 = vset.pattern.permute.xlu1 %v1262_v21  ;;  %v565_v21 = vld [vmem:[%s1396_s11 + $0x8] sm:$0xff] }
  0x51   : > { %588 = vperm.xlu1 %1177, %v574_v26  }
  0x55   : > { %593 = vperm.xlu1 %1177, %v575_v25  }
  0x59   : > { %1180 = vset.pattern.permute.xlu1 %v1260_v17 }
  0x5a   : > { %641 = vperm.xlu1 %1180, %v573_v24  }
  0x5e   : > { %1181 = vset.pattern.permute.xlu1 %v1261_v18 }
  0x5f   : > { %613 = vperm.xlu1 %1181, %v574_v26  }
  0x63   : > { %1182 = vset.pattern.permute.xlu1 %v1260_v17 }
  0x64   : > { %645 = vperm.xlu1 %1182, %v574_v26  }
  0x68   : > { %649 = vperm.xlu1 %1182, %v575_v25  }
  0xa5   : > { %v449_v27 = vpop.permute.xlu1 %448  ;;  %v481_v28 = vpop.permute.xlu0 %480 }
  0xa9   : > { %v453_v29 = vpop.permute.xlu1 %452 }
  0xaa   : > { %v461_v30 = vpop.permute.xlu0 %460 }
  0xae   : > { %v437_v33 = vpop.permute.xlu1 %436 }
  0xaf   : > { %v422_v34 = vpop.permute.xlu0 %421  ;;  %v445_v62 = vmul.f32 %v437_v33, %v413_v49  ;;  %v446_v63 = vmul.f32 %v437_v33, %v414_v54 }
  0xb0   : > { %v439_v35 = vmul.f32 %v422_v34, %v407_v31  ;;  %v440_v36 = vmul.f32 %v422_v34, %v408_v32 }
  0xb1   : > { %v469_v10 = vadd.f32 %v461_v30, %v445_v62  ;;  %v470_v11 = vadd.f32 %v461_v30, %v446_v63 }
  0xb2   : > { %v463_v39 = vadd.f32 %v449_v27, %v439_v35  ;;  %v464_v40 = vadd.f32 %v449_v27, %v440_v36  ;;  %v566_v35 = vld [vmem:[%s1396_s11 + $0x10] sm:$0xff]  ;;  %v567_v36 = vld [vmem:[%s1396_s11 + $0x18] sm:$0xff] }
  0xb3   : > { %v427_v41 = vpop.permute.xlu0 %426  ;;  %v485_v42 = vpop.permute.xlu1 %484  ;;  %vm477_vm6 = vcmp.ge.f32.partialorder %v469_v10, 0.0  ;;  %vm478_vm7 = vcmp.ge.f32.partialorder %v470_v11, 0.0 }
  0xb4   : > { %v495_v43 = vmul.f32 %v481_v28, %v463_v39  ;;  %v496_v44 = vmul.f32 %v481_v28, %v464_v40  ;;  %v441_v45 = vmul.f32 %v427_v41, %v409_v37  ;;  %v442_v46 = vmul.f32 %v427_v41, %v410_v38 }
  0xb5   : > { %vm471_vm0 = vcmp.ge.f32.partialorder %v463_v39, 0.0  ;;  %vm472_vm1 = vcmp.ge.f32.partialorder %v464_v40, 0.0 }
  0xb6   : > { %v465_v50 = vadd.f32 %v453_v29, %v441_v45  ;;  %v466_v51 = vadd.f32 %v453_v29, %v442_v46  ;;  %v503_v52 = vsel %vm471_vm0, %v463_v39, %v495_v43  ;;  %v504_v53 = vsel %vm472_vm1, %v464_v40, %v496_v44 }
  0xb7   : > { %v432_v55 = vpop.permute.xlu0 %431  ;;  %v1183_v56 = vpack.i.bf16 %v504_v53, %v503_v52  ;;  %vm776_vm0 = vcmask 48128   ;;  %vm535_vm1 = vcmask 7168  }
  0xb8   : > { %v497_v57 = vmul.f32 %v485_v42, %v465_v50  ;;  %v498_v58 = vmul.f32 %v485_v42, %v466_v51  ;;  %v443_v59 = vmul.f32 %v432_v55, %v411_v47  ;;  %v444_v60 = vmul.f32 %v432_v55, %v412_v48  ;;  %v457_v61 = vpop.permute.xlu1 %456 }
  0xb9   : > { %1184 = vrot.lane.b32.xlu0 %v1183_v56, %s1263_s24  ;;  %vm473_vm2 = vcmp.ge.f32.partialorder %v465_v50, 0.0  ;;  %vm474_vm3 = vcmp.ge.f32.partialorder %v466_v51, 0.0 }
  0xba   : > { %v467_v0 = vadd.f32 %v457_v61, %v443_v59  ;;  %v505_v1 = vsel %vm473_vm2, %v465_v50, %v497_v57  ;;  %v506_v2 = vsel %vm474_vm3, %v466_v51, %v498_v58  ;;  %v468_v3 = vadd.f32 %v457_v61, %v444_v60  ;;  %v568_v50 = vld [vmem:[%s1396_s11 + $0x20] sm:$0xff]  ;;  %v569_v51 = vld [vmem:[%s1396_s11 + $0x28] sm:$0xff]  ;;  %v570_v57 = vld [vmem:[%s1396_s11 + $0x30] sm:$0xff] }
  0xbb   : > { %v1188_v4 = vpack.i.bf16 %v506_v2, %v505_v1  ;;  %v1389_v5 = vpack.c.bf16 %v506_v2, %v504_v53  ;;  %v1391_v6 = vpack.c.bf16 %v505_v1, %v503_v52  ;;  %v579_v26 = vpop.permute.xlu0 %578  ;;  %v571_v58 = vld [vmem:[%s1396_s11 + $0x38] sm:$0xff]  ;;  %v1421_v2 = vld [vmem:[%s391_s15] sm:$0x77]  ;;  %s917_s15 = scalar_lea.vmem (%p1339_p5), %s1597_s6, %s1120_s13 }
  0xbc   : > { %vm475_vm4 = vcmp.ge.f32.partialorder %v467_v0, 0.0  ;;  %vm476_vm5 = vcmp.ge.f32.partialorder %v468_v3, 0.0  ;;  %v596_v27 = vmul.f32 %v579_v26, %v564_v20  ;;  %v597_v28 = vmul.f32 %v579_v26, %v565_v21  ;;  %v1232_v26 = vld [vmem:[%s1596_s5 + $0x4] ss:$8 sps:$4 sm:$0xff]  }
  0xbd   : > { %v489_v7 = vpop.permute.xlu1 %488  ;;  %1189 = vrot.lane.b32.xlu1 %v1188_v4, %s1263_s24  ;;  %1110 = vmatprep.mubr.msk.bf16.mxu0 %vm776_vm0, %v1232_v26 }
  0xbe   : > { %v499_v8 = vmul.f32 %v489_v7, %v467_v0  ;;  %v500_v9 = vmul.f32 %v489_v7, %v468_v3 }
  0xc0   : > { %v507_v12 = vsel %vm475_vm4, %v467_v0, %v499_v8  ;;  %v508_v13 = vsel %vm476_vm5, %v468_v3, %v500_v9  ;;  %v638_v32 = vpop.permute.xlu0 %637  ;;  %v1425_v9 = vcombine.high %v1421_v2, %v1421_v2 }
  0xc1   : > { %v493_v14 = vpop.permute.xlu1 %492  ;;  %v1193_v15 = vpack.i.bf16 %v508_v13, %v507_v12 }
  0xc2   : > { %v501_v16 = vmul.f32 %v493_v14, %v469_v10  ;;  %v502_v17 = vmul.f32 %v493_v14, %v470_v11 }
  0xc3   : > { %1194 = vrot.lane.b32.xlu0 %v1193_v15, %s1263_s24 }
  0xc4   : > { %v509_v18 = vsel %vm477_vm6, %v469_v10, %v501_v16  ;;  %v510_v19 = vsel %vm478_vm7, %v470_v11, %v502_v17  ;;  %vm733_vm6 = vcmask 1042432   ;;  %vm898_vm7 = vcmask 15360  }
  0xc5   : > { %v1198_v22 = vpack.i.bf16 %v510_v19, %v509_v18  ;;  %v1400_v23 = vpack.c.bf16 %v510_v19, %v508_v13  ;;  %v1402_v24 = vpack.c.bf16 %v509_v18, %v507_v12  ;;  %v610_v43 = vpop.permute.xlu0 %609  ;;  %v1223_v18 = vpack.i.bf16 %v1425_v9, %v1421_v2 }
  0xc6   : > { %v584_v25 = vpop.permute.xlu1 %583 }
  0xc7   : > { %1199 = vrot.lane.b32.xlu1 %v1198_v22, %s1263_s24  ;;  %v598_v41 = vmul.f32 %v584_v25, %v566_v35  ;;  %v599_v42 = vmul.f32 %v584_v25, %v567_v36 }
  0xc9   : > { %v622_v45 = vadd.f32 %v610_v43, %v598_v41  ;;  %v623_v46 = vadd.f32 %v610_v43, %v599_v42  ;;  %v618_v3 = vpop.permute.xlu0 %617 }
  0xcb   : > { %v606_v29 = vpop.permute.xlu1 %605  ;;  %vm630_vm10 = vcmp.ge.f32.partialorder %v622_v45, 0.0  ;;  %vm631_vm11 = vcmp.ge.f32.partialorder %v623_v46, 0.0 }
  0xcc   : > { %v620_v30 = vadd.f32 %v606_v29, %v596_v27  ;;  %v621_v31 = vadd.f32 %v606_v29, %v597_v28  ;;  %v1235_v27 = vld [vmem:[%s1596_s5 + $0x14] ss:$8 sps:$4 sm:$0xff]   ;;  %v400_v28 = vlaneseq }
  0xcd   : > { %1111 = vmatprep.mubr.msk.bf16.mxu1 %vm776_vm0, %v1235_v27 }
  0xce   : > { %vm628_vm8 = vcmp.ge.f32.partialorder %v620_v30, 0.0  ;;  %vm629_vm9 = vcmp.ge.f32.partialorder %v621_v31, 0.0  ;;  %v652_v33 = vmul.f32 %v638_v32, %v620_v30  ;;  %v653_v34 = vmul.f32 %v638_v32, %v621_v31 }
  0xcf   : > { %v1442_v29 = vand.u32 127, %v400_v28 }
  0xd0   : > { %v589_v37 = vpop.permute.xlu1 %588  ;;  %v660_v38 = vsel %vm628_vm8, %v620_v30, %v652_v33  ;;  %v661_v39 = vsel %vm629_vm9, %v621_v31, %v653_v34 }
  0xd1   : > { %v1203_v40 = vpack.i.bf16 %v661_v39, %v660_v38  ;;  %v600_v60 = vmul.f32 %v589_v37, %v568_v50  ;;  %v601_v61 = vmul.f32 %v589_v37, %v569_v51  ;;  %v402_v30 = vadd.s32 128, %v1442_v29 }
  0xd2   : > { %vm405_vm3 = vcmp.ne.s32.totalorder %v1442_v29, 0 }
  0xd3   : > { %1204 = vrot.lane.b32.xlu0 %v1203_v40, %s1263_s24  ;;  %v404_v32 = vand.u32 127, %v402_v30  ;;  %vm1464_vm5 = vmpackc.low %vm405_vm3, %vm405_vm3 }
  0xd4   : > { %v594_v44 = vpop.permute.xlu1 %593 }
  0xd5   : > { %v602_v62 = vmul.f32 %v594_v44, %v570_v57  ;;  %v603_v63 = vmul.f32 %v594_v44, %v571_v58  ;;  %vm1445_vm2 = vcmp.ne.s32.totalorder %v404_v32, 0  ;;  %v729_v32 = vrot.slane %v1421_v2, 5 }
  0xd6   : > { %vm1457_vm4 = vmpackc.low %vm1445_vm2, %vm1445_vm2 }
  0xd7   : > { %v626_v10 = vadd.f32 %v618_v3, %v602_v62  ;;  %v627_v11 = vadd.f32 %v618_v3, %v603_v63 }
  0xd9   : > { %v642_v47 = vpop.permute.xlu1 %641  ;;  %vm634_vm14 = vcmp.ge.f32.partialorder %v626_v10, 0.0  ;;  %vm635_vm15 = vcmp.ge.f32.partialorder %v627_v11, 0.0 }
  0xda   : > { %v654_v48 = vmul.f32 %v642_v47, %v622_v45  ;;  %v655_v49 = vmul.f32 %v642_v47, %v623_v46 }
  0xdc   : > { %v662_v52 = vsel %vm630_vm10, %v622_v45, %v654_v48  ;;  %v663_v53 = vsel %vm631_vm11, %v623_v46, %v655_v49 }
  0xdd   : > { %v1208_v54 = vpack.i.bf16 %v663_v53, %v662_v52  ;;  %v1411_v55 = vpack.c.bf16 %v663_v53, %v661_v39  ;;  %v1413_v56 = vpack.c.bf16 %v662_v52, %v660_v38 }
  0xde   : > { %v614_v59 = vpop.permute.xlu1 %613 }
  0xdf   : > { %1209 = vrot.lane.b32.xlu1 %v1208_v54, %s1263_s24  ;;  %v624_v0 = vadd.f32 %v614_v59, %v600_v60  ;;  %v625_v1 = vadd.f32 %v614_v59, %v601_v61 }
  0xe1   : > { %vm632_vm12 = vcmp.ge.f32.partialorder %v624_v0, 0.0  ;;  %vm633_vm13 = vcmp.ge.f32.partialorder %v625_v1, 0.0 }
  0xe3   : > { %v646_v4 = vpop.permute.xlu1 %645 }
  0xe4   : > { %v656_v7 = vmul.f32 %v646_v4, %v624_v0  ;;  %v657_v8 = vmul.f32 %v646_v4, %v625_v1 }
  0xe6   : > { %v664_v12 = vsel %vm632_vm12, %v624_v0, %v656_v7  ;;  %v665_v13 = vsel %vm633_vm13, %v625_v1, %v657_v8 }
  0xe7   : > { %v650_v14 = vpop.permute.xlu1 %649  ;;  %v1213_v15 = vpack.i.bf16 %v665_v13, %v664_v12 }
  0xe8   : > { %v658_v16 = vmul.f32 %v650_v14, %v626_v10  ;;  %v659_v17 = vmul.f32 %v650_v14, %v627_v11 }
  0xe9   : > { %1214 = vrot.lane.b32.xlu0 %v1213_v15, %s1263_s24 }
  0xea   : > { %v666_v19 = vsel %vm634_vm14, %v626_v10, %v658_v16  ;;  %v667_v20 = vsel %vm635_vm15, %v627_v11, %v659_v17 }
  0xeb   : > { %v1218_v21 = vpack.i.bf16 %v667_v20, %v666_v19  ;;  %v1430_v22 = vpack.c.bf16 %v667_v20, %v665_v13  ;;  %v1432_v25 = vpack.c.bf16 %v666_v19, %v664_v12 }
  0xed   : > { %1219 = vrot.lane.b32.xlu1 %v1218_v21, %s1263_s24  ;;  %1224 = vrot.lane.b32.xlu0 %v1223_v18, %s1263_s24 }
 0x12b   : > { %v1185_v31 = vpop.permute.xlu0 %1184 }
 0x12c   : > { %v1187_v33 = vunpack.i.h.bf16 %v1185_v31  ;;  %v1186_v34 = vunpack.i.l.bf16 %v1185_v31  ;;  %v730_v31 = vrot.slane %v1425_v9, 5 }
 0x12e   : > { %v548_v39 = vsel %vm535_vm1, 0.0, %v1186_v34  ;;  %v536_v41 = vsel %vm535_vm1, %v1186_v34, %v1187_v33 }
 0x12f   : > { %v1190_v35 = vpop.permute.xlu1 %1189 }
 0x130   : > { %v1192_v37 = vunpack.i.h.bf16 %v1190_v35  ;;  %v1191_v38 = vunpack.i.l.bf16 %v1190_v35 }
 0x132   : > { %v549_v40 = vsel %vm535_vm1, 0.0, %v1191_v38  ;;  %v537_v42 = vsel %vm535_vm1, %v1191_v38, %v1192_v37 }
 0x133   : > { %v1086_v44 = vpack.c.bf16 %v537_v42, %v536_v41  ;;  %v1089_v46 = vpack.c.bf16 %v549_v40, %v548_v39 }
 0x135   : > { %v1195_v47 = vpop.permute.xlu0 %1194  ;;  %1087 = vmatprep.subr.msk.bf16.mxu0 %vm1457_vm4, %v1086_v44  ;;  %1121 = vmatprep.subr.msk.bf16.mxu1 %vm1457_vm4, %v1086_v44 }
 0x136   : > { %1090 = vmatpush1.bf16.msk.msra.mxu0 %vm1464_vm5, %v1089_v46  ;;  %1130 = vmatpush1.bf16.msk.msra.mxu1 %vm1464_vm5, %v1089_v46  ;;  %v1197_v48 = vunpack.i.h.bf16 %v1195_v47  ;;  %v1196_v49 = vunpack.i.l.bf16 %v1195_v47 }
 0x138   : > { %v538_v53 = vsel %vm535_vm1, %v1196_v49, %v1197_v48  ;;  %v550_v54 = vsel %vm535_vm1, 0.0, %v1196_v49 }
 0x139   : > { %v1200_v50 = vpop.permute.xlu1 %1199 }
 0x13a   : > { %v1202_v51 = vunpack.i.h.bf16 %v1200_v50  ;;  %v1201_v52 = vunpack.i.l.bf16 %v1200_v50 }
 0x13c   : > { %v539_v57 = vsel %vm535_vm1, %v1201_v52, %v1202_v51  ;;  %v551_v58 = vsel %vm535_vm1, 0.0, %v1201_v52 }
 0x13d   : > { %v1092_v59 = vpack.c.bf16 %v539_v57, %v538_v53  ;;  %v1095_v60 = vpack.c.bf16 %v551_v58, %v550_v54 }
 0x13f   : > { %1093 = vmatprep.subr.msk.bf16.mxu0 %vm1457_vm4, %v1092_v59  ;;  %1122 = vmatprep.subr.msk.bf16.mxu1 %vm1457_vm4, %v1092_v59 }
 0x140   : > { %1096 = vmatpush1.bf16.msk.msra.mxu0 %vm1464_vm5, %v1095_v60  ;;  %1131 = vmatpush1.bf16.msk.msra.mxu1 %vm1464_vm5, %v1095_v60 }
 0x141   : > { %793 = vmatprep.subr.bf16.mxu0 %v1389_v5  ;;  %1123 = vmatprep.subr.bf16.mxu1 %v1389_v5 }
 0x144   : > { %794 = vmatpush1.bf16.msra.mxu0 %v1391_v6  ;;  %1132 = vmatpush1.bf16.msra.mxu1 %v1391_v6 }
 0x145   : > { %795 = vmatprep.subr.bf16.mxu0 %v1400_v23  ;;  %1124 = vmatprep.subr.bf16.mxu1 %v1400_v23  ;;  %v1205_v61 = vpop.permute.xlu0 %1204 }
 0x146   : > { %v1207_v62 = vunpack.i.h.bf16 %v1205_v61  ;;  %v1206_v63 = vunpack.i.l.bf16 %v1205_v61 }
 0x148   : > { %796 = vmatpush1.bf16.msra.mxu0 %v1402_v24  ;;  %1133 = vmatpush1.bf16.msra.mxu1 %v1402_v24  ;;  %v692_v5 = vsel %vm535_vm1, %v1206_v63, %v1207_v62  ;;  %v704_v4 = vsel %vm535_vm1, 0.0, %v1206_v63 }
 0x151   : > { %v1210_v0 = vpop.permute.xlu1 %1209 }
 0x152   : > { %v1212_v1 = vunpack.i.h.bf16 %v1210_v0  ;;  %v1211_v3 = vunpack.i.l.bf16 %v1210_v0 }
 0x154   : > { %v693_v6 = vsel %vm535_vm1, %v1211_v3, %v1212_v1  ;;  %v705_v7 = vsel %vm535_vm1, 0.0, %v1211_v3 }
 0x155   : > { %v1098_v8 = vpack.c.bf16 %v693_v6, %v692_v5  ;;  %v1101_v23 = vpack.c.bf16 %v705_v7, %v704_v4 }
 0x157   : > { %1099 = vmatprep.subr.msk.bf16.mxu0 %vm1457_vm4, %v1098_v8  ;;  %1125 = vmatprep.subr.msk.bf16.mxu1 %vm1457_vm4, %v1098_v8 }
 0x158   : > { %1102 = vmatpush1.bf16.msk.msra.mxu0 %vm1464_vm5, %v1101_v23  ;;  %1134 = vmatpush1.bf16.msk.msra.mxu1 %vm1464_vm5, %v1101_v23 }
 0x15b   : > { %v1215_v24 = vpop.permute.xlu0 %1214 }
 0x15c   : > { %v1217_v10 = vunpack.i.h.bf16 %v1215_v24  ;;  %v1216_v11 = vunpack.i.l.bf16 %v1215_v24 }
 0x15e   : > { %v694_v18 = vsel %vm535_vm1, %v1216_v11, %v1217_v10  ;;  %v706_v19 = vsel %vm535_vm1, 0.0, %v1216_v11 }
 0x15f   : > { %v1220_v12 = vpop.permute.xlu1 %1219  ;;  %v1225_v13 = vpop.permute.xlu0 %1224 }
 0x160   : > { %v1222_v14 = vunpack.i.h.bf16 %v1220_v12  ;;  %v1221_v15 = vunpack.i.l.bf16 %v1220_v12  ;;  %v1227_v16 = vunpack.i.h.bf16 %v1225_v13  ;;  %v1226_v17 = vunpack.i.l.bf16 %v1225_v13 }
 0x162   : > { %v695_v20 = vsel %vm535_vm1, %v1221_v15, %v1222_v14  ;;  %v707_v21 = vsel %vm535_vm1, 0.0, %v1221_v15  ;;  %v723_v26 = vsel %vm535_vm1, %v1226_v17, %v1227_v16  ;;  %v726_v27 = vsel %vm535_vm1, 0.0, %v1226_v17 }
 0x163   : > { %v1104_v28 = vpack.c.bf16 %v695_v20, %v694_v18  ;;  %v1107_v30 = vpack.c.bf16 %v707_v21, %v706_v19  ;;  %v727_v33 = vsel %vm405_vm3, %v726_v27, 0.0  ;;  %v728_v34 = vsel %vm1445_vm2, %v723_v26, 0.0 }
 0x164   : > { %v735_v2 = vsel %vm733_vm6, %v728_v34, %v730_v31  ;;  %v734_v9 = vsel %vm733_vm6, %v727_v33, %v729_v32 }
 0x165   : > { %1105 = vmatprep.subr.msk.bf16.mxu0 %vm1457_vm4, %v1104_v28  ;;  %1126 = vmatprep.subr.msk.bf16.mxu1 %vm1457_vm4, %v1104_v28  ;;  %v757_v29 = vpack.c.bf16 %v735_v2, %v735_v2  ;;  %v756_v35 = vpack.c.bf16 %v734_v9, %v734_v9 }
 0x166   : > { %1108 = vmatpush1.bf16.msk.msra.mxu0 %vm1464_vm5, %v1107_v30  ;;  %1135 = vmatpush1.bf16.msk.msra.mxu1 %vm1464_vm5, %v1107_v30 }
 0x167   : > { %801 = vmatprep.subr.bf16.mxu0 %v1411_v55  ;;  %1127 = vmatprep.subr.bf16.mxu1 %v1411_v55  ;;  %v784_v55 = vsel %vm733_vm6, %v756_v35, 0 }
 0x16a   : > { %802 = vmatpush1.bf16.msra.mxu0 %v1413_v56  ;;  %1136 = vmatpush1.bf16.msra.mxu1 %v1413_v56  ;;  %v1230_v56 = vld [vmem:[%s1596_s5] ss:$8 sps:$4 sm:$0xff]  }
 0x16b   : > { %803 = vmatprep.subr.bf16.mxu0 %v1430_v22  ;;  %1128 = vmatprep.subr.bf16.mxu1 %v1430_v22  ;;  %v1233_v22 = vld [vmem:[%s1596_s5 + $0x10] ss:$8 sps:$4 sm:$0xff]  }
 0x16e   : > { %804 = vmatpush1.bf16.msra.mxu0 %v1432_v25  ;;  %1137 = vmatpush1.bf16.msra.mxu1 %v1432_v25 }
 0x16f   : > { %1109 = vmatprep.subr.msk.bf16.mxu0 %vm733_vm6, %v757_v29  ;;  %1129 = vmatprep.subr.msk.bf16.mxu1 %vm733_vm6, %v757_v29 }
 0x172   : > { %806 = vmatpush1.bf16.msra.mxu0 %v784_v55  ;;  %1138 = vmatpush1.bf16.msra.mxu1 %v784_v55 }
 0x175   : > { %822 = vmatmul.mubr.bf16.vlgmr.msra.gmra.mrb[0].mxu0 %v1230_v56  ;;  %832 = vmatmul.mubr.bf16.vlgmr.msra.gmra.mrb[0].mxu1 %v1233_v22 }
 0x248   : > { %v823_v36 = vpop.f32.mrb[0].mxu0  ;;  %v833_v25 = vpop.f32.mrb[0].mxu1 }
 0x249   : > { %842 = vst [vmem:[%s1548_s29] sm:$0xff] %v823_v36  ;;  %v825_v37 = vpop.f32.mrb[1].mxu0  ;;  %846 = vst [vmem:[%s1548_s29 + $0x20] sm:$0xff] %v833_v25  ;;  %v835_v38 = vpop.f32.mrb[1].mxu1 }
 0x24a   : > { %843 = vst [vmem:[%s1548_s29 + $0x8] sm:$0xff] %v825_v37  ;;  %v827_v39 = vpop.f32.mrb[2].mxu0  ;;  %847 = vst [vmem:[%s1548_s29 + $0x28] sm:$0xff] %v835_v38  ;;  %v837_v40 = vpop.f32.mrb[2].mxu1  ;;  %v850_v41 = vadd.f32 %v825_v37, %v823_v36  ;;  %v856_v42 = vadd.f32 %v835_v38, %v833_v25 }
 0x24b   : > { %844 = vst [vmem:[%s1548_s29 + $0x10] sm:$0xff] %v827_v39  ;;  %v829_v43 = vpop.f32.mrb[3].mxu0  ;;  %848 = vst [vmem:[%s1548_s29 + $0x30] sm:$0xff] %v837_v40  ;;  %v839_v44 = vpop.f32.mrb[3].mxu1 }
 0x24c   : > { %845 = vst [vmem:[%s1548_s29 + $0x18] sm:$0xff] %v829_v43  ;;  %849 = vst [vmem:[%s1548_s29 + $0x38] sm:$0xff] %v839_v44  ;;  %851 = vadd.xlane.f32.xlu1 %v850_v41  ;;  %v853_v45 = vadd.f32 %v829_v43, %v827_v39  ;;  %v859_v46 = vadd.f32 %v839_v44, %v837_v40 }
 0x24e   : > { %854 = vadd.xlane.f32.xlu0 %v853_v45 }
 0x250   : > { %860 = vadd.xlane.f32.xlu1 %v859_v46  ;;  %v930_v21 = vld [vmem:[%s1548_s29] sm:$0xff] (%p1339_p5) }
 0x251   : > { %v932_v26 = vld [vmem:[%s1548_s29 + $0x8] sm:$0xff] (%p1339_p5)  ;;  %v938_v30 = vld [vmem:[%s1548_s29 + $0x20] sm:$0xff] (%p1339_p5)  ;;  %931 = vst [vmem:[%s917_s15] sm:$0xff] (%p1339_p5), %v930_v21 }
 0x252   : > { %857 = vadd.xlane.f32.xlu0 %v856_v42  ;;  %v934_v27 = vld [vmem:[%s1548_s29 + $0x10] sm:$0xff] (%p1339_p5)  ;;  %v940_v31 = vld [vmem:[%s1548_s29 + $0x28] sm:$0xff] (%p1339_p5)  ;;  %933 = vst [vmem:[%s917_s15 + $0x8] sm:$0xff] (%p1339_p5), %v932_v26  ;;  %939 = vst [vmem:[%s917_s15 + $0x40] sm:$0xff] (%p1339_p5), %v938_v30 }
 0x253   : > { %v936_v28 = vld [vmem:[%s1548_s29 + $0x18] sm:$0xff] (%p1339_p5)  ;;  %935 = vst [vmem:[%s917_s15 + $0x20] sm:$0xff] (%p1339_p5), %v934_v27  ;;  %941 = vst [vmem:[%s917_s15 + $0x48] sm:$0xff] (%p1339_p5), %v940_v31  ;;  %v942_v32 = vld [vmem:[%s1548_s29 + $0x30] sm:$0xff] (%p1339_p5) }
 0x254   : > { %937 = vst [vmem:[%s917_s15 + $0x28] sm:$0xff] (%p1339_p5), %v936_v28  ;;  %v944_v33 = vld [vmem:[%s1548_s29 + $0x38] sm:$0xff] (%p1339_p5)  ;;  %943 = vst [vmem:[%s917_s15 + $0x60] sm:$0xff] (%p1339_p5), %v942_v32 }
 0x255   : > { %945 = vst [vmem:[%s917_s15 + $0x68] sm:$0xff] (%p1339_p5), %v944_v33 }
 0x2d9   : > { %v852_v47 = vpop.xlane.xlu1 %851 }
 0x2da   : > { %v862_v48 = vmul.f32 0.00390625, %v852_v47 }
 0x2db   : > { %v855_v49 = vpop.xlane.xlu0 %854 }
 0x2dc   : > { %v866_v50 = vsub.f32 %v823_v36, %v862_v48  ;;  %v867_v51 = vsub.f32 %v825_v37, %v862_v48  ;;  %v863_v52 = vmul.f32 0.00390625, %v855_v49 }
 0x2dd   : > { %v861_v53 = vpop.xlane.xlu1 %860 }
 0x2de   : > { %v868_v54 = vsub.f32 %v827_v39, %v863_v52  ;;  %v869_v57 = vsub.f32 %v829_v43, %v863_v52  ;;  %v865_v58 = vmul.f32 0.00390625, %v861_v53  ;;  %v874_v59 = vmul.f32 %v866_v50, %v866_v50 }
 0x2df   : > { %v858_v60 = vpop.xlane.xlu0 %857  ;;  %v875_v61 = vmul.f32 %v867_v51, %v867_v51 }
 0x2e0   : > { %v872_v62 = vsub.f32 %v837_v40, %v865_v58  ;;  %v873_v63 = vsub.f32 %v839_v44, %v865_v58  ;;  %v864_v0 = vmul.f32 0.00390625, %v858_v60  ;;  %v876_v1 = vmul.f32 %v868_v54, %v868_v54 }
 0x2e1   : > { %v882_v3 = vadd.f32 %v875_v61, %v874_v59  ;;  %v877_v5 = vmul.f32 %v869_v57, %v869_v57 }
 0x2e2   : > { %v870_v4 = vsub.f32 %v833_v25, %v864_v0  ;;  %v871_v6 = vsub.f32 %v835_v38, %v864_v0  ;;  %v880_v7 = vmul.f32 %v872_v62, %v872_v62  ;;  %v881_v8 = vmul.f32 %v873_v63, %v873_v63 }
 0x2e3   : > { %883 = vadd.xlane.f32.xlu0 %v882_v3  ;;  %v885_v23 = vadd.f32 %v877_v5, %v876_v1 }
 0x2e4   : > { %v891_v24 = vadd.f32 %v881_v8, %v880_v7  ;;  %v878_v10 = vmul.f32 %v870_v4, %v870_v4  ;;  %v879_v11 = vmul.f32 %v871_v6, %v871_v6 }
 0x2e5   : > { %886 = vadd.xlane.f32.xlu1 %v885_v23 }
 0x2e6   : > { %v888_v12 = vadd.f32 %v879_v11, %v878_v10 }
 0x2e8   : > { %889 = vadd.xlane.f32.xlu0 %v888_v12 }
 0x2e9   : > { %892 = vadd.xlane.f32.xlu1 %v891_v24 }
 0x370   : > { %v884_v13 = vpop.xlane.xlu0 %883 }
 0x371   : > { %v894_v14 = vsel %vm535_vm1, %v852_v47, %v884_v13 }
 0x372   : > { %899 = vst.msk [vmem:[%s398_s12] sm:$0xff] %vm898_vm7, %v894_v14  ;;  %v887_v15 = vpop.xlane.xlu1 %886  ;;  %914 = sbr.rel (!%p1339_p5) target bundleno = 889 (0x379), region = 94 }
 0x373   : > { %v895_v16 = vsel %vm535_vm1, %v855_v49, %v887_v15 }
 0x374   : > { %900 = vst.msk [vmem:[%s398_s12 + $0x8] sm:$0xff] %vm898_vm7, %v895_v16 }
 0x375   : > { %v890_v17 = vpop.xlane.xlu0 %889 }
 0x376   : > { %v893_v18 = vpop.xlane.xlu1 %892  ;;  %v896_v19 = vsel %vm535_vm1, %v858_v60, %v890_v17 }
 0x377   : > { %v897_v20 = vsel %vm535_vm1, %v861_v53, %v893_v18  ;;  %901 = vst.msk [vmem:[%s398_s12 + $0x10] sm:$0xff] %vm898_vm7, %v896_v19 }
 0x378   : > { %902 = vst.msk [vmem:[%s398_s12 + $0x18] sm:$0xff] %vm898_vm7, %v897_v20 }
 0x379 PF: > { %p15_p12 = scmp.ge.s32.totalorder %s1323_s28, 4   ;;  %s1607_s24 = smov %s1254_s25 }
 0x37a   : > { %s1608_s25 = smov %s1333_s8  ;;  %s1609_s26 = smov %s1323_s28 }
 0x37b   :  { %17 = sbr.rel (!%p15_p12) target bundleno = 2 (0x2), region = 171 }

// kernel: affine_layer_apply.13
= control target key start
LH: loop header
LB: loop body
LE: loop exit
PB: predicated region body
PF: predicated region fallthrough
CT: control target
= control target key end

     0   :  { %11 = vsyncpa [#allocation4], 0  ;;  %s1218_s0 = inlined_call_operand.vmem [shape: f32[32,512], index: 0, kind: input, shape index: {}]   ;;  %s1219_s1 = inlined_call_operand.vmem [shape: f32[32,3], index: 1, kind: input, shape index: {}]   ;;  %s1220_s2 = inlined_call_operand.vmem [shape: bf16[2,64], index: 2, kind: input, shape index: {}]   ;;  %s1221_s3 = inlined_call_operand.vmem [shape: f32[1,512], index: 3, kind: input, shape index: {}]   ;;  %s1222_s4 = inlined_call_operand.hbm [shape: f32[1,512], index: 4, kind: output, shape index: {0}]   ;;  %s1223_s5 = inlined_call_operand.hbm [shape: f32[1,512], index: 5, kind: output, shape index: {1}]  }
   0x1   :  { %13 = vsyncpa [#allocation4 + $0x1], 0 }
   0x2   :  { %14 = vsyncpa [#allocation6], 0 }
   0x3   :  { %16 = vsyncpa [#allocation6 + $0x1], 0  ;;  %s972_s18 = smov 0   ;;  %s974_s19 = smov 0  }
   0x4   :  { %s976_s20 = smov 0   ;;  %s978_s21 = smov 0  }
   0x5 LB: > { %s993_s22 = sadd.s32 4294967295, %s933_s21   ;;  %s722_s23 = sadd.s32 4294967294, %s933_s21   ;;  %s933_s21 = sphi %s978_s21, %s1235_s21   ;;  %s929_s20 = sphi %s976_s20, %s1234_s20   ;;  %s925_s19 = sphi %s974_s19, %s1233_s19   ;;  %s921_s18 = sphi %s972_s18, %s1232_s18  }
   0x6   : > { %s997_s24 = sadd.s32 1, %s933_s21   ;;  %s29_s25 = sadd.s32 1, %s929_s20 }
   0x7   : > { %s26_s26 = ssub.s32 %s933_s21, %s997_s24  ;;  %p36_p0 = scmp.ne.s32.totalorder %s929_s20, %s925_s19 }
   0x8   : > { %p27_p1 = scmp.eq.s32.totalorder %s26_s26, 0  ;;  %p37_p2 = scmp.eq.s32.totalorder %s933_s21, 0 }
   0x9   : > { %p134_p3 = scmp.eq.s32.totalorder %s993_s22, 1  ;;  %p139_p4 = scmp.ne.s32.totalorder %s925_s19, %s921_s18 }
   0xa   : > { %s1009_s27 = scalar_select %p27_p1, %s929_s20, %s29_s25  }
   0xb   : > { %p38_p5 = por %p37_p2, %p36_p0  ;;  %p1011_p6 = por %p134_p3, %p36_p0 }
   0xc   : > { %p140_p7 = scmp.eq.s32.totalorder %s722_s23, 1  ;;  %p724_p9 = scmp.ge.s32.totalorder %s933_s21, 2 }
   0xe   : > { %p1015_p8 = por %p140_p7, %p139_p4  ;;  %188 = sbr.rel (%p724_p9) target bundleno = 29 (0x1d), region = 24 }
  0x15   : > { %191 = sbr.rel (!%p38_p5) target bundleno = 29 (0x1d), region = 28  ;;  %s193_s30 = sand.u32 (%p38_p5), 1, %s929_s20  }
  0x16   : > { %s754_s6 = sshll.u32 (%p38_p5), %s933_s21, 4  ;;  %s725_s7 = sshll.u32 (%p38_p5), %s193_s30, 6 }
  0x17   : > { %s198_s10 = scalar_lea.vmem (%p38_p5), %s1218_s0, %s754_s6  ;;  %s195_s11 = scalar_lea.vmem (%p38_p5), [#allocation2], %s725_s7 }
  0x18   : > { %v211_v0 = vld [vmem:[%s198_s10] sm:$0xff] (%p38_p5)  ;;  %v213_v1 = vld [vmem:[%s198_s10 + $0x8] sm:$0xff] (%p38_p5) }
  0x19   : > { %v215_v2 = vld [vmem:[%s198_s10 + $0x20] sm:$0xff] (%p38_p5)  ;;  %212 = vst [vmem:[%s195_s11] sm:$0xff] (%p38_p5), %v211_v0  ;;  %214 = vst [vmem:[%s195_s11 + $0x8] sm:$0xff] (%p38_p5), %v213_v1  ;;  %v217_v3 = vld [vmem:[%s198_s10 + $0x28] sm:$0xff] (%p38_p5) }
  0x1a   : > { %216 = vst [vmem:[%s195_s11 + $0x10] sm:$0xff] (%p38_p5), %v215_v2  ;;  %v219_v4 = vld [vmem:[%s198_s10 + $0x40] sm:$0xff] (%p38_p5)  ;;  %v221_v5 = vld [vmem:[%s198_s10 + $0x48] sm:$0xff] (%p38_p5)  ;;  %218 = vst [vmem:[%s195_s11 + $0x18] sm:$0xff] (%p38_p5), %v217_v3 }
  0x1b   : > { %220 = vst [vmem:[%s195_s11 + $0x20] sm:$0xff] (%p38_p5), %v219_v4  ;;  %222 = vst [vmem:[%s195_s11 + $0x28] sm:$0xff] (%p38_p5), %v221_v5  ;;  %v223_v6 = vld [vmem:[%s198_s10 + $0x60] sm:$0xff] (%p38_p5)  ;;  %v225_v7 = vld [vmem:[%s198_s10 + $0x68] sm:$0xff] (%p38_p5) }
  0x1c   : > { %224 = vst [vmem:[%s195_s11 + $0x30] sm:$0xff] %v223_v6  ;;  %226 = vst [vmem:[%s195_s11 + $0x38] sm:$0xff] %v225_v7 }
  0x1d PF: > { %p728_p10 = scmp.ge.s32.totalorder %s933_s21, 1  ;;  %p239_p11 = scmp.lt.s32.totalorder %s933_s21, 3 }
  0x1f   : > { %p240_p12 = pnand %p728_p10, %p239_p11 }
  0x20   : > { %v306_v8 = vld [vmem:[%s1219_s1] sm:$0xff] (!%p240_p12)  ;;  %v935_v9 = vmov (!%p240_p12), 1   ;;  %v936_v10 = vmov (!%p240_p12), 0   ;;  %v307_v11 = vld [vmem:[%s1219_s1 + $0x8] sm:$0xff] (!%p240_p12)  ;;  %v308_v12 = vld [vmem:[%s1219_s1 + $0x10] sm:$0xff] (!%p240_p12)  ;;  %v937_v14 = vmov (!%p240_p12), 2  }
  0x21   : > { %243 = sbr.rel (%p240_p12) target bundleno = 593 (0x251), region = 55  ;;  %807 = vset.pattern.permute.xlu1 (!%p240_p12), %v935_v9  ;;  %806 = vset.pattern.permute.xlu0 (!%p240_p12), %v936_v10  ;;  %v309_v13 = vld [vmem:[%s1219_s1 + $0x18] sm:$0xff] (!%p240_p12)  ;;  %s1042_s26 = sand.u32 (!%p240_p12), 1, %s925_s19   ;;  %vm426_vm8 = vcmask (!%p240_p12), 7168   ;;  %vm464_vm13 = vcmask (!%p240_p12), 523264  }
  0x22   : > { %339 = vperm.xlu1 (!%p240_p12), %807, %v306_v8   ;;  %312 = vperm.xlu0 (!%p240_p12), %806, %v306_v8   ;;  %s729_s30 = sshll.u32 (!%p240_p12), %s1042_s26, 6  ;;  %s938_s7 = smov (!%p240_p12), 1  }
  0x23   : > { %500 = vmatprep.mubr.bf16.mxu0 (!%p240_p12), %v936_v10  ;;  %s1045_s6 = scalar_lea.vmem (!%p240_p12), [#allocation2], %s729_s30  ;;  %s732_s10 = sshll.u32 (!%p240_p12), %s993_s22, 1 }
  0x24   : > { %v298_v17 = vld [vmem:[%s1045_s6] sm:$0xff] (!%p240_p12)  ;;  %v299_v18 = vld [vmem:[%s1045_s6 + $0x8] sm:$0xff] (!%p240_p12)  ;;  %v300_v21 = vld [vmem:[%s1045_s6 + $0x10] sm:$0xff] (!%p240_p12)  ;;  %p284_p13 = scmp.lt.s32.totalorder (!%p240_p12), %s732_s10, 3  ;;  %s730_s14 = sshll.u32 (!%p240_p12), %s1042_s26, 1 }
  0x25   : > { %v301_v22 = vld [vmem:[%s1045_s6 + $0x18] sm:$0xff] (!%p240_p12)  ;;  %v302_v41 = vld [vmem:[%s1045_s6 + $0x20] sm:$0xff] (!%p240_p12)  ;;  %v303_v42 = vld [vmem:[%s1045_s6 + $0x28] sm:$0xff] (!%p240_p12)  ;;  %s755_s15 = sshll.u32 (!%p240_p12), %s993_s22, 5  ;;  %s274_s16 = scalar_lea.vmem (!%p240_p12), [#allocation3], %s730_s14 }
  0x26   : > { %343 = vperm.xlu1 (!%p240_p12), %807, %v307_v11   ;;  %317 = vperm.xlu0 (!%p240_p12), %806, %v307_v11   ;;  %v304_v52 = vld [vmem:[%s1045_s6 + $0x30] sm:$0xff] (!%p240_p12)  ;;  %v305_v53 = vld [vmem:[%s1045_s6 + $0x38] sm:$0xff] (!%p240_p12)  ;;  %s602_s17 = sshll.u32 (!%p240_p12), %s274_s16, 4  ;;  %s1137_s30 = scalar_lea.hbm (!%p240_p12), %s1222_s4, %s755_s15  ;;  %s1139_s17 = int_to_ptr.vmem [resolvable:$true] %s602_s17 }
  0x27   : > { %s583_s6 = scalar_lea.sflag (!%p240_p12), [#allocation4], %s1042_s26  ;;  %s940_s8 = smov (!%p240_p12), [#allocation3]  }
  0x28   : > { %s1237_s10 = smov (!%p284_p13, %s732_s10), 3  ;;  %s843_s9 = sshll.u32 %s940_s8, 4  ;;  %s844_s9 = int_to_ptr.vmem [resolvable:$false] %s843_s9 }
  0x29   : > { %s286_s13 = scalar_lea.vmem %s1221_s3, %s1237_s10  ;;  %s845_s10 = scalar_lea.vmem %s844_s9, 64 }
  0x2a   : > { %808 = vset.pattern.permute.xlu1 %v936_v10  ;;  %322 = vperm.xlu0 %806, %v308_v12   ;;  %p846_p3 = scmp.lt.s32.totalorder %s1139_s17, %s844_s9 }
  0x2b   : > { %327 = vperm.xlu1 %808, %v309_v13  }
  0x2e   : > { %809 = vset.pattern.permute.xlu0 %v937_v14 }
  0x2f   : > { %810 = vset.pattern.permute.xlu1 %v937_v14  ;;  %371 = vperm.xlu0 %809, %v306_v8  }
  0x30   : > { %375 = vperm.xlu1 %810, %v307_v11   ;;  %v291_v11 = vlaneseq }
  0x32   : > { %vm1128_vm14 = vcmp.lt.s32.totalorder %v291_v11, 256 }
  0x33   : > { %812 = vset.pattern.permute.xlu0 %v935_v9 }
  0x34   : > { %811 = vset.pattern.permute.xlu1 %v935_v9  ;;  %351 = vperm.xlu0 %812, %v309_v13  }
  0x35   : > { %347 = vperm.xlu1 %811, %v308_v12  }
  0x38   : > { %834 = vset.pattern.permute.xlu0 %v937_v14 }
  0x39   : > { %813 = vset.pattern.permute.xlu1 %v937_v14 }
  0x3a   : > { %379 = vperm.xlu1 %813, %v308_v12   ;;  %v292_v12 = vand.u32 127, %v291_v11 }
  0x3c   : > { %vm296_vm10 = vcmp.ne.s32.totalorder %v292_v12, 0 }
  0x3d   : > { %vm1087_vm12 = vmpackc.low %vm296_vm10, %vm296_vm10 }
  0x3e   : > { %383 = vperm.xlu1 %813, %v309_v13   ;;  %v293_v13 = vadd.s32 128, %v292_v12 }
  0x40   : > { %v295_v14 = vand.u32 127, %v293_v13 }
  0x42   : > { %vm1076_vm9 = vcmp.ne.s32.totalorder %v295_v14, 0 }
  0x43   : > { %vm733_vm11 = vmpackc.low %vm1076_vm9, %vm1076_vm9 }
  0xa1   : > { %v340_v15 = vpop.permute.xlu1 %339  ;;  %v313_v16 = vpop.permute.xlu0 %312 }
  0xa2   : > { %v330_v23 = vmul.f32 %v313_v16, %v298_v17  ;;  %v331_v24 = vmul.f32 %v313_v16, %v299_v18 }
  0xa4   : > { %v354_v29 = vadd.f32 %v340_v15, %v330_v23  ;;  %v355_v30 = vadd.f32 %v340_v15, %v331_v24 }
  0xa5   : > { %v344_v19 = vpop.permute.xlu1 %343  ;;  %v318_v20 = vpop.permute.xlu0 %317 }
  0xa6   : > { %v332_v25 = vmul.f32 %v318_v20, %v300_v21  ;;  %v333_v26 = vmul.f32 %v318_v20, %v301_v22  ;;  %vm362_vm0 = vcmp.ge.f32.partialorder %v354_v29, 0.0  ;;  %vm363_vm1 = vcmp.ge.f32.partialorder %v355_v30, 0.0 }
  0xa8   : > { %v356_v31 = vadd.f32 %v344_v19, %v332_v25  ;;  %v357_v32 = vadd.f32 %v344_v19, %v333_v26 }
  0xa9   : > { %v323_v27 = vpop.permute.xlu0 %322 }
  0xaa   : > { %v328_v28 = vpop.permute.xlu1 %327  ;;  %vm364_vm2 = vcmp.ge.f32.partialorder %v356_v31, 0.0  ;;  %vm365_vm3 = vcmp.ge.f32.partialorder %v357_v32, 0.0  ;;  %v334_v50 = vmul.f32 %v323_v27, %v302_v41  ;;  %v335_v51 = vmul.f32 %v323_v27, %v303_v42 }
  0xab   : > { %v336_v57 = vmul.f32 %v328_v28, %v304_v52  ;;  %v337_v58 = vmul.f32 %v328_v28, %v305_v53 }
  0xae   : > { %v372_v33 = vpop.permute.xlu0 %371 }
  0xaf   : > { %v386_v34 = vmul.f32 %v372_v33, %v354_v29  ;;  %v387_v35 = vmul.f32 %v372_v33, %v355_v30  ;;  %v376_v36 = vpop.permute.xlu1 %375 }
  0xb0   : > { %v388_v37 = vmul.f32 %v376_v36, %v356_v31  ;;  %v389_v38 = vmul.f32 %v376_v36, %v357_v32 }
  0xb1   : > { %v1051_v39 = vsel %vm362_vm0, %v354_v29, %v386_v34  ;;  %v1053_v40 = vsel %vm363_vm1, %v355_v30, %v387_v35 }
  0xb2   : > { %v814_v43 = vpack.i.bf16 %v1053_v40, %v1051_v39  ;;  %v1059_v44 = vsel %vm364_vm2, %v356_v31, %v388_v37  ;;  %v1061_v45 = vsel %vm365_vm3, %v357_v32, %v389_v38 }
  0xb3   : > { %v819_v46 = vpack.i.bf16 %v1061_v45, %v1059_v44  ;;  %v461_v47 = vpack.c.bf16 %v1061_v45, %v1053_v40  ;;  %v460_v48 = vpack.c.bf16 %v1059_v44, %v1051_v39  ;;  %v352_v56 = vpop.permute.xlu0 %351  ;;  %v511_v39 = vld [vmem:[%s286_s13] sm:$0x3] }
  0xb4   : > { %v348_v49 = vpop.permute.xlu1 %347  ;;  %815 = vrot.lane.b32.xlu0 %v814_v43, %s938_s7  ;;  %v360_v62 = vadd.f32 %v352_v56, %v336_v57  ;;  %v361_v63 = vadd.f32 %v352_v56, %v337_v58  ;;  %v455_v43 = vld [vmem:[%s1220_s2] sm:$0x1] }
  0xb5   : > { %820 = vrot.lane.b32.xlu1 %v819_v46, %s938_s7  ;;  %v358_v54 = vadd.f32 %v348_v49, %v334_v50  ;;  %v359_v55 = vadd.f32 %v348_v49, %v335_v51  ;;  %v514_v46 = vshrl.u32 %v291_v11, 7  ;;  %v939_v49 = vmov 1966171168  }
  0xb6   : > { %vm368_vm6 = vcmp.ge.f32.partialorder %v360_v62, 0.0  ;;  %vm369_vm7 = vcmp.ge.f32.partialorder %v361_v63, 0.0  ;;  %v537_v50 = vunpack.c.l.s4 %v939_v49 }
  0xb7   : > { %vm366_vm4 = vcmp.ge.f32.partialorder %v358_v54, 0.0  ;;  %vm367_vm5 = vcmp.ge.f32.partialorder %v359_v55, 0.0  ;;  %v515_v40 = vsub.s32 0, %v514_v46  ;;  %v519_v44 = vsub.s32 1, %v514_v46 }
  0xb8   : > { %v538_v58 = vunpack.c.0.s8 %v537_v50 }
  0xb9   : > { %v380_v59 = vpop.permute.xlu1 %379  ;;  %v516_v45 = vrot.slane %v511_v39, %v515_v40 }
  0xba   : > { %v390_v60 = vmul.f32 %v380_v59, %v358_v54  ;;  %v391_v61 = vmul.f32 %v380_v59, %v359_v55 }
  0xbc   : > { %v398_v0 = vsel %vm366_vm4, %v358_v54, %v390_v60  ;;  %v399_v1 = vsel %vm367_vm5, %v359_v55, %v391_v61 }
  0xbd   : > { %v384_v2 = vpop.permute.xlu1 %383  ;;  %v824_v3 = vpack.i.bf16 %v399_v1, %v398_v0 }
  0xbe   : > { %v392_v4 = vmul.f32 %v384_v2, %v360_v62  ;;  %v393_v5 = vmul.f32 %v384_v2, %v361_v63 }
  0xbf   : > { %825 = vrot.lane.b32.xlu0 %v824_v3, %s938_s7 }
  0xc0   : > { %v400_v6 = vsel %vm368_vm6, %v360_v62, %v392_v4  ;;  %v401_v7 = vsel %vm369_vm7, %v361_v63, %v393_v5  ;;  %v541_v63 = vsub.s32 %v538_v58, %v514_v46 }
  0xc1   : > { %v829_v8 = vpack.i.bf16 %v401_v7, %v400_v6  ;;  %v463_v9 = vpack.c.bf16 %v401_v7, %v399_v1  ;;  %v462_v10 = vpack.c.bf16 %v400_v6, %v398_v0 }
  0xc3   : > { %830 = vrot.lane.b32.xlu1 %v829_v8, %s938_s7  ;;  %s839_s7 = scalar_lea.vmem %s1139_s17, 32 }
  0xc4   : > { %p840_p0 = scmp.ne.s32.totalorder %s1139_s17, %s839_s7  ;;  %p847_p4 = scmp.lt.s32.totalorder %s845_s10, %s839_s7 }
  0xc6   : > { %p841_p1 = pnand %p840_p0, %p1011_p6  ;;  %p848_p5 = por %p847_p4, %p846_p3 }
  0xc8   : > { %p842_p2 = pneg %p841_p1 }
  0xca   : > { %p849_p7 = pnand %p848_p5, %p842_p2 }
 0x126   : > { %v816_v15 = vpop.permute.xlu0 %815 }
 0x127   : > { %v818_v16 = vunpack.i.h.bf16 %v816_v15  ;;  %v817_v17 = vunpack.i.l.bf16 %v816_v15  ;;  %v821_v18 = vpop.permute.xlu1 %820 }
 0x128   : > { %v823_v20 = vunpack.i.h.bf16 %v821_v18  ;;  %v822_v21 = vunpack.i.l.bf16 %v821_v18 }
 0x129   : > { %v439_v22 = vsel %vm426_vm8, 0.0, %v817_v17  ;;  %v427_v23 = vsel %vm426_vm8, %v817_v17, %v818_v16 }
 0x12a   : > { %v440_v24 = vsel %vm426_vm8, 0.0, %v822_v21  ;;  %v428_v25 = vsel %vm426_vm8, %v822_v21, %v823_v20 }
 0x12b   : > { %v734_v26 = vpack.c.bf16 %v428_v25, %v427_v23  ;;  %v737_v28 = vpack.c.bf16 %v440_v24, %v439_v22 }
 0x12d   : > { %735 = vmatprep.subr.msk.bf16.mxu0 %vm733_vm11, %v734_v26 }
 0x12e   : > { %738 = vmatpush1.bf16.msk.msra.mxu0 %vm1087_vm12, %v737_v28 }
 0x131   : > { %v826_v29 = vpop.permute.xlu0 %825 }
 0x132   : > { %v828_v30 = vunpack.i.h.bf16 %v826_v29  ;;  %v827_v31 = vunpack.i.l.bf16 %v826_v29 }
 0x134   : > { %v429_v35 = vsel %vm426_vm8, %v827_v31, %v828_v30  ;;  %v441_v36 = vsel %vm426_vm8, 0.0, %v827_v31 }
 0x135   : > { %v831_v32 = vpop.permute.xlu1 %830 }
 0x136   : > { %v833_v33 = vunpack.i.h.bf16 %v831_v32  ;;  %v832_v34 = vunpack.i.l.bf16 %v831_v32 }
 0x138   : > { %v430_v37 = vsel %vm426_vm8, %v832_v34, %v833_v33  ;;  %v442_v38 = vsel %vm426_vm8, 0.0, %v832_v34 }
 0x139   : > { %v740_v41 = vpack.c.bf16 %v430_v37, %v429_v35  ;;  %v743_v42 = vpack.c.bf16 %v442_v38, %v441_v36 }
 0x13b   : > { %741 = vmatprep.subr.msk.bf16.mxu0 %vm733_vm11, %v740_v41 }
 0x13c   : > { %744 = vmatpush1.bf16.msk.msra.mxu0 %vm1087_vm12, %v743_v42 }
 0x13d   : > { %472 = vmatprep.subr.bf16.mxu0 %v461_v47 }
 0x140   : > { %473 = vmatpush1.bf16.msra.mxu0 %v460_v48  ;;  %v520_v48 = vrot.slane %v511_v39, %v519_v44 }
 0x141   : > { %474 = vmatprep.subr.bf16.mxu0 %v463_v9 }
 0x144   : > { %475 = vmatpush1.bf16.msra.mxu0 %v462_v10 }
 0x147   : > { %745 = vmatmul.mubr.msk.bf16.vlgmr.msra.gmra.mrb[0].mxu0 %vm464_vm13, %v455_v43 }
 0x21a   : > { %v502_v47 = vpop.f32.mrb[0].mxu0 }
 0x21b   : > { %v509_v51 = vmax.f32 %v502_v47, 1e-08  ;;  %v504_v52 = vpop.f32.mrb[1].mxu0 }
 0x21c   : > { %v510_v53 = vmax.f32 %v504_v52, 1e-08  ;;  %v506_v54 = vpop.f32.mrb[2].mxu0 }
 0x21d   : > { %v523_v55 = vmul.f32 %v516_v45, %v509_v51  ;;  %835 = vlog2.f32 %v509_v51  ;;  %v507_v56 = vpop.f32.mrb[3].mxu0 }
 0x21e   : > { %v524_v57 = vmul.f32 %v520_v48, %v510_v53  ;;  %837 = vlog2.f32 %v510_v53 }
 0x21f   : > { %v527_v59 = vrot.slane %v523_v55, 1 }
 0x220   : > { %v528_v60 = vrot.slane %v524_v57, 1 }
 0x221   : > { %v531_v61 = vadd.f32 %v527_v59, %v502_v47 }
 0x222   : > { %v532_v62 = vadd.f32 %v528_v60, %v504_v52 }
 0x224   : > { %v535_v0 = vcombine.low %v531_v61, %v532_v62 }
 0x226   : > { %v542_v1 = vrot.slane %v535_v0, %v541_v63 }
 0x227   : > { %v836_v2 = vpop.eup %835 }
 0x228   : > { %v838_v4 = vpop.eup %837  ;;  %v557_v5 = vmul.f32 0.6931472, %v836_v2  ;;  %v549_v6 = vrot.slane %v542_v1, %v541_v63 }
 0x229   : > { %v559_v7 = vmul.f32 0.6931472, %v838_v4 }
 0x22a   : > { %v560_v8 = vsub.f32 0.0, %v557_v5  ;;  %555 = vst.msk [vmem:[%s274_s16] sm:$0x3] %vm1128_vm14, %v549_v6 }
 0x22b   : > { %v561_v9 = vsub.f32 0.0, %v559_v7 }
 0x22c   : > { %852 = shalt.err (!%p849_p7)
}
 0x22d   : > { %s853_s11 = scalar_lea.hbm %s1137_s30, 32  ;;  %s857_s16 = scalar_lea.hbm %s1222_s4, 64 }
 0x22e   : > { %p854_p10 = scmp.ne.s32.totalorder %s1137_s30, %s853_s11  ;;  %p858_p13 = scmp.lt.u32.totalorder %s1137_s30, %s1222_s4 }
 0x22f   : > { %p859_p0 = scmp.lt.u32.totalorder %s857_s16, %s853_s11  ;;  %p861_p2 = scmp.lt.u32.totalorder %s853_s11, %s1137_s30 }
 0x230   : > { %p855_p11 = pnand %p854_p10, %p1011_p6 }
 0x231   : > { %p860_p1 = por %p859_p0, %p858_p13 }
 0x232   : > { %p856_p12 = pneg %p855_p11 }
 0x233   : > { %p862_p3 = por %p861_p2, %p860_p1 }
 0x235   : > { %p863_p4 = pnand %p862_p3, %p856_p12 }
 0x237   : > { %866 = shalt.err (!%p863_p4)
}
 0x238   : > { %757 = dma.vmem_to_hbm [thread:$0]  (%p1011_p6), %s1139_s17, 32, %s1137_s30, %s583_s6   ;;  %v564_v10 = vcombine.low %v560_v8, %v561_v9 }
 0x239   : > { %s281_s7 = scalar_lea.vmem [#allocation5], %s730_s14  ;;  %s1172_s11 = scalar_lea.hbm %s1223_s5, %s755_s15 }
 0x23a   : > { %v571_v11 = vrot.slane %v564_v10, %v541_v63  ;;  %s616_s8 = sshll.u32 %s281_s7, 4  ;;  %s588_s17 = scalar_lea.sflag [#allocation6], %s1042_s26  ;;  %s1174_s8 = int_to_ptr.vmem [resolvable:$true] %s616_s8 }
 0x23b   : > { %s867_s30 = scalar_lea.vmem %s1174_s8, 32  ;;  %s941_s22 = smov [#allocation5]  }
 0x23c   : > { %v572_v12 = vcombine.high %v571_v11, %v571_v11  ;;  %p868_p5 = scmp.ne.s32.totalorder %s1174_s8, %s867_s30  ;;  %s871_s14 = sshll.u32 %s941_s22, 4  ;;  %s872_s14 = int_to_ptr.vmem [resolvable:$false] %s871_s14 }
 0x23d   : > { %s873_s6 = scalar_lea.vmem %s872_s14, 64  ;;  %p874_p11 = scmp.lt.s32.totalorder %s1174_s8, %s872_s14 }
 0x23e   : > { %v579_v13 = vrot.slane %v572_v12, %v541_v63  ;;  %p869_p7 = pnand %p868_p5, %p1011_p6  ;;  %p875_p12 = scmp.lt.s32.totalorder %s873_s6, %s867_s30 }
 0x240   : > { %581 = vst.msk [vmem:[%s281_s7] sm:$0x3] %vm1128_vm14, %v579_v13  ;;  %p870_p10 = pneg %p869_p7  ;;  %p876_p13 = por %p875_p12, %p874_p11 }
 0x242   : > { %p877_p0 = pnand %p876_p13, %p870_p10 }
 0x244   : > { %880 = shalt.err (!%p877_p0)
}
 0x245   : > { %s881_s26 = scalar_lea.hbm %s1172_s11, 32  ;;  %s885_s13 = scalar_lea.hbm %s1223_s5, 64 }
 0x246   : > { %p882_p1 = scmp.ne.s32.totalorder %s1172_s11, %s881_s26  ;;  %p886_p4 = scmp.lt.u32.totalorder %s1172_s11, %s1223_s5 }
 0x247   : > { %p887_p5 = scmp.lt.u32.totalorder %s885_s13, %s881_s26  ;;  %p889_p10 = scmp.lt.u32.totalorder %s881_s26, %s1172_s11 }
 0x248   : > { %p883_p2 = pnand %p882_p1, %p1011_p6 }
 0x249   : > { %p888_p7 = por %p887_p5, %p886_p4 }
 0x24a   : > { %p884_p3 = pneg %p883_p2 }
 0x24b   : > { %p890_p11 = por %p889_p10, %p888_p7 }
 0x24d   : > { %p891_p12 = pnand %p890_p11, %p884_p3 }
 0x24f   : > { %894 = shalt.err (!%p891_p12)
}
 0x250   : > { %758 = dma.vmem_to_hbm [thread:$0]  (%p1011_p6), %s1174_s8, 32, %s1172_s11, %s588_s17  }
 0x251 PF: > { %s628_s25 = sand.u32 1, %s921_s18   ;;  %p762_p13 = pnand %p724_p9, %p1015_p8 }
 0x252   : > { %s629_s7 = scalar_lea.sflag [#allocation4], %s628_s25 }
 0x253   : > { %912 = dma.done.wait (!%p762_p13), %s629_s7, 32  }
 0x254   : > { %914 = vsyncadd (!%p762_p13), %s629_s7, 4294967264  ;;  %s638_s9 = scalar_lea.sflag [#allocation6], %s628_s25 }
 0x255   : > { %916 = dma.done.wait (!%p762_p13), %s638_s9, 32  }
 0x256   : > { %918 = vsyncadd (!%p762_p13), %s638_s9, 4294967264  ;;  %p19_p6 = scmp.ge.s32.totalorder %s997_s24, 4   ;;  %s1232_s18 = smov %s925_s19 }
 0x257   : > { %s1233_s19 = smov %s929_s20  ;;  %s1234_s20 = smov %s1009_s27 }
 0x258   : > { %s1235_s21 = smov %s997_s24  ;;  %21 = sbr.rel (!%p19_p6) target bundleno = 5 (0x5), region = 119 }
 0x25f   :  { %643 = vsyncpa [#allocation4], 1 }
 0x260   :  { %645 = vsyncpa [#allocation4 + $0x1], 1 }
 0x261   :  { %646 = vsyncpa [#allocation6], 1 }
 0x262   :  { %648 = vsyncpa [#allocation6 + $0x1], 1 }

</bundles_post_ra>
